<compile_context>
chip_gen: v7x
topology: tpu7x:2x2x1
jax: 0.10.0
libtpu: 0.0.40
codegen_flags: <defaults>
</compile_context>

<pallas_src>
import functools

import jax
import jax.numpy as jnp
from jax.experimental import pallas as pl
from jax.experimental.pallas import tpu as pltpu

BF16 = jnp.bfloat16
F32 = jnp.float32


def _same_pad_geometry(kernel_sizes):
    # PyTorch Conv1d(padding='same'): left = (k-1)//2, right = (k-1) - left.
    lefts = [(k - 1) // 2 for k in kernel_sizes]
    rights = [(k - 1) - l for k, l in zip(kernel_sizes, lefts)]
    left, right = max(lefts), max(rights)
    return left, right, left + right + 1  # shared window width wk


def _bias_layout(C1, H, FCH):
    # One f32 bias blob; every segment starts on a 128-lane boundary.
    sizes = (C1, C1, 8 * H, FCH, FCH, 1)   # b1, b2, bih(+bhh), fb1, fb2, fb3
    offs, cur = [], 0
    for s in sizes:
        offs.append(cur)
        cur += ((s + 127) // 128) * 128
    return tuple(offs), cur


# ----------------------------------------------------------------------------
# Fused forward kernel (one batch tile of TB rows per grid step)
# ----------------------------------------------------------------------------
def _fused_kernel(x_ref, w1_ref, w2_ref, wih_ref, whh_ref,
                  fw1_ref, fw2_ref, fw3_ref, bias_ref,
                  out_ref,
                  xp1_ref, xp2_ref, xproj_ref,
                  *, TB, L0, C0, C1, wk, left, right, pool, L1, L2, H, FCH,
                  bias_offs):
    ob1, ob2, obih, obf1, obf2, obf3 = bias_offs

    def conv_relu_pool(xp_ref, w_ref, b_row, length, cin, lout):
        # Per-tap matmul accumulation: no im2col scratch, operands are
        # contiguous sublane-aligned row slices (start = multiple of TB=16).
        acc = jnp.dot(xp_ref[0:length * TB, :], w_ref[0:cin, :],
                      preferred_element_type=F32)
        for s in range(1, wk):
            acc += jnp.dot(xp_ref[s * TB:(s + length) * TB, :],
                           w_ref[s * cin:(s + 1) * cin, :],
                           preferred_element_type=F32)
        act = jnp.maximum(acc + b_row, 0.0)                       # bias + ReLU (f32)
        # MaxPool1d(pool, stride=pool, floor): rows are (l, b)-ordered, so this
        # is a pure major-dim regroup + VPU max.
        act = act[: lout * pool * TB, :].reshape(lout, pool * TB, C1)
        pooled = act[:, 0:TB, :]
        for p in range(1, pool):
            pooled = jnp.maximum(pooled, act[:, p * TB:(p + 1) * TB, :])
        return pooled.reshape(lout * TB, C1)                      # rows (m, b), f32

    # ---- conv layer 1 (both kernel-size branches merged into one weight) ----
    # 'same' padding in VMEM: zero ONLY the pad rows, write the interior once.
    if left > 0:
        xp1_ref[0:left * TB, :] = jnp.zeros((left * TB, C0), BF16)
    xp1_ref[left * TB:(left + L0) * TB, :] = x_ref[...].reshape(L0 * TB, C0)
    if right > 0:
        xp1_ref[(left + L0) * TB:(left + L0 + right) * TB, :] = (
            jnp.zeros((right * TB, C0), BF16))
    h1 = conv_relu_pool(xp1_ref, w1_ref, bias_ref[:, ob1:ob1 + C1], L0, C0, L1)

    # ---- conv layer 2 (conv-1 output goes straight into the padded scratch) ----
    if left > 0:
        xp2_ref[0:left * TB, :] = jnp.zeros((left * TB, C1), BF16)
    xp2_ref[left * TB:(left + L1) * TB, :] = h1.astype(BF16)
    if right > 0:
        xp2_ref[(left + L1) * TB:(left + L1 + right) * TB, :] = (
            jnp.zeros((right * TB, C1), BF16))
    h2 = conv_relu_pool(xp2_ref, w2_ref, bias_ref[:, ob2:ob2 + C1], L1, C1, L2)
    # h2: (L2*TB, C1), rows (t, b) == the LSTM's (seq, batch) layout.

    # ---- BiLSTM: input projection for all steps & both directions hoisted out
    #      of the recurrence and spilled to VMEM (bounds live ranges). ----
    xproj_ref[...] = (jnp.dot(h2.astype(BF16), wih_ref[...],
                              preferred_element_type=F32)
                      + bias_ref[:, obih:obih + 8 * H])

    def cell(g, c):                                   # PyTorch gate order i,f,g,o
        i = jax.nn.sigmoid(g[:, 0:H])
        f = jax.nn.sigmoid(g[:, H:2 * H])
        gg = jnp.tanh(g[:, 2 * H:3 * H])
        o = jax.nn.sigmoid(g[:, 3 * H:4 * H])
        c2 = f * c + i * gg
        return o * jnp.tanh(c2), c2

    # Recurrence kept in f32 (no per-step bf16 rounding of the hidden state);
    # one block-diagonal dot per step covers BOTH directions.
    whh = whh_ref[...]                                # (2H, 8H) f32 block-diag
    h_f = jnp.zeros((TB, H), F32)
    c_f = jnp.zeros((TB, H), F32)
    h_b = jnp.zeros((TB, H), F32)
    c_b = jnp.zeros((TB, H), F32)
    # FC1 (after Flatten + eval-mode Dropout) folded into the unrolled loop.
    z1 = jnp.broadcast_to(bias_ref[:, obf1:obf1 + FCH], (TB, FCH))
    for t in range(L2):
        s = L2 - 1 - t
        gall = jnp.dot(jnp.concatenate([h_f, h_b], axis=1), whh,
                       preferred_element_type=F32)                 # (TB, 8H)
        g_f = xproj_ref[t * TB:(t + 1) * TB, 0:4 * H] + gall[:, 0:4 * H]
        g_b = xproj_ref[s * TB:(s + 1) * TB, 4 * H:8 * H] + gall[:, 4 * H:8 * H]
        h_f, c_f = cell(g_f, c_f)
        h_b, c_b = cell(g_b, c_b)
        # Flatten column block for fwd@t is rows (2t)*H:(2t+1)*H of fw1,
        # for bwd@s it is rows (2s+1)*H:(2s+2)*H.
        z1 = z1 + jnp.dot(h_f.astype(BF16),
                          fw1_ref[(2 * t) * H:(2 * t + 1) * H, :],
                          preferred_element_type=F32)
        z1 = z1 + jnp.dot(h_b.astype(BF16),
                          fw1_ref[(2 * s + 1) * H:(2 * s + 2) * H, :],
                          preferred_element_type=F32)

    # ---- FC head ----
    z1 = jnp.maximum(z1, 0.0)
    z2 = jnp.maximum(jnp.dot(z1.astype(BF16), fw2_ref[...],
                             preferred_element_type=F32)
                     + bias_ref[:, obf2:obf2 + FCH], 0.0)
    out_ref[...] = (jnp.dot(z2.astype(BF16), fw3_ref[...],
                            preferred_element_type=F32)
                    + bias_ref[:, obf3:obf3 + 1])


# ----------------------------------------------------------------------------
# Weight packing (done once, outside the jitted forward)
# ----------------------------------------------------------------------------
def _merge_conv_weights(branches, kernel_sizes, left, wk):
    """Merge all kernel-size branches of one conv layer into a single
    (wk*Cin, Cout_total) matmul weight over the shared 'same'-padded window."""
    w0 = branches[0][0]
    cout_each, cin = w0.shape[0], w0.shape[1]
    cout_total = cout_each * len(branches)
    w_big = jnp.zeros((wk * cin, cout_total), jnp.float32)
    b_big = jnp.zeros((cout_total,), jnp.float32)
    for j, ((w, b), k) in enumerate(zip(branches, kernel_sizes)):
        off = left - (k - 1) // 2
        for t in range(k):
            si = off + t
            w_big = w_big.at[si * cin:(si + 1) * cin,
                             j * cout_each:(j + 1) * cout_each].set(w[:, :, t].T)
        b_big = b_big.at[j * cout_each:(j + 1) * cout_each].set(b)
    return w_big.astype(BF16), b_big


def pack_params(params, conv_kernel_sizes, lstm_hidden_dim, fc_hidden_dim):
    left, _, wk = _same_pad_geometry(conv_kernel_sizes)
    w1, b1 = _merge_conv_weights(params["conv1"], conv_kernel_sizes, left, wk)
    w2, b2 = _merge_conv_weights(params["conv2"], conv_kernel_sizes, left, wk)
    C1 = w1.shape[1]
    H, FCH = lstm_hidden_dim, fc_hidden_dim
    pf, pb = params["lstm"]["fwd"], params["lstm"]["bwd"]
    # Input weights (both dirs) as one (C1, 8H) bf16 matrix.
    wih = jnp.concatenate([pf["w_ih"].T, pb["w_ih"].T], axis=1).astype(BF16)
    bih = jnp.concatenate([pf["b_ih"] + pf["b_hh"], pb["b_ih"] + pb["b_hh"]])
    # Recurrent weights: f32 block-diagonal (2H, 8H) -> one dot per step.
    whh = jnp.zeros((2 * H, 8 * H), jnp.float32)
    whh = whh.at[0:H, 0:4 * H].set(pf["w_hh"].T)
    whh = whh.at[H:2 * H, 4 * H:8 * H].set(pb["w_hh"].T)
    fc = params["fc"]
    # Single 128-lane-aligned f32 bias blob (one DMA descriptor for 6 biases).
    offs, total = _bias_layout(C1, H, FCH)
    blob = jnp.zeros((1, total), jnp.float32)
    for off, vec in zip(offs, (b1, b2, bih, fc["b1"], fc["b2"], fc["b3"])):
        blob = blob.at[0, off:off + vec.shape[0]].set(vec)
    return dict(
        w1=w1, w2=w2, wih=wih, whh=whh,
        fw1=fc["w1"].T.astype(BF16),   # (L2*2H, FCH): per-(t, dir) H-row blocks
        fw2=fc["w2"].T.astype(BF16),
        fw3=fc["w3"].T.astype(BF16),
        bias=blob,
    )


# ----------------------------------------------------------------------------
# Parameters (deterministic, PyTorch-style uniform fan-in init)
# ----------------------------------------------------------------------------
def init_params(key, conv_out_dim, conv_kernel_sizes, pool_size,
                lstm_hidden_dim, fc_hidden_dim, seq_len):
    conv_each = conv_out_dim // len(conv_kernel_sizes)
    keys = iter(jax.random.split(key, 64))

    def unif(shape, fan_in):
        bound = 1.0 / (fan_in ** 0.5)
        return jax.random.uniform(next(keys), shape, jnp.float32, -bound, bound)

    params = {"conv1": [], "conv2": [], "lstm": {}, "fc": {}}
    for k in conv_kernel_sizes:
        params["conv1"].append(
            (unif((conv_each, 4, k), 4 * k), unif((conv_each,), 4 * k)))
    for k in conv_kernel_sizes:
        params["conv2"].append(
            (unif((conv_each, conv_out_dim, k), conv_out_dim * k),
             unif((conv_each,), conv_out_dim * k)))
    H = lstm_hidden_dim
    for d in ("fwd", "bwd"):
        params["lstm"][d] = dict(
            w_ih=unif((4 * H, conv_out_dim), H),
            w_hh=unif((4 * H, H), H),
            b_ih=unif((4 * H,), H),
            b_hh=unif((4 * H,), H),
        )
    l1 = (seq_len - pool_size) // pool_size + 1
    pool_out_len = (l1 - pool_size) // pool_size + 1
    fc_in = lstm_hidden_dim * 2 * pool_out_len
    params["fc"] = dict(
        w1=unif((fc_hidden_dim, fc_in), fc_in), b1=unif((fc_hidden_dim,), fc_in),
        w2=unif((fc_hidden_dim, fc_hidden_dim), fc_hidden_dim),
        b2=unif((fc_hidden_dim,), fc_hidden_dim),
        w3=unif((1, fc_hidden_dim), fc_hidden_dim), b3=unif((1,), fc_hidden_dim),
    )
    return params


# ----------------------------------------------------------------------------
# Full forward: one fused pallas_call, batch-parallel grid
# ----------------------------------------------------------------------------
def deepfamq_forward(x, packed, *, conv_kernel_sizes, pool_size,
                     lstm_hidden_dim, fc_hidden_dim, batch_tile=16):
    # x: (B, L, 4) -- same as the PyTorch module input (before its transpose(1,2)).
    B, L0, C0 = x.shape
    left, right, wk = _same_pad_geometry(conv_kernel_sizes)
    C1 = packed["w1"].shape[1]                        # conv_out_dim
    H, FCH, pool = lstm_hidden_dim, fc_hidden_dim, pool_size
    L1 = (L0 - pool) // pool + 1                      # after first MaxPool1d
    L2 = (L1 - pool) // pool + 1                      # after second MaxPool1d (= T)
    lp1 = L0 + left + right
    lp2 = L1 + left + right
    TB = batch_tile                                   # sublane-aligned batch tile
    B_pad = ((B + TB - 1) // TB) * TB

    # Single fused pad + bf16 cast + (l, b) reorder of the tiny 4-channel input
    # (the only wrapper-side op; every activation after this stays in VMEM).
    xin = x.astype(BF16)
    if B_pad != B:
        xin = jnp.pad(xin, ((0, B_pad - B), (0, 0), (0, 0)))
    xin = jnp.transpose(xin, (1, 0, 2))               # (L0, B_pad, C0)

    bias_offs, _ = _bias_layout(C1, H, FCH)
    kernel = functools.partial(
        _fused_kernel, TB=TB, L0=L0, C0=C0, C1=C1, wk=wk, left=left, right=right,
        pool=pool, L1=L1, L2=L2, H=H, FCH=FCH, bias_offs=bias_offs)

    def pinned(shape):
        zeros = (0,) * len(shape)
        return pl.BlockSpec(shape, lambda i: zeros)   # weight stays VMEM-resident

    y = pl.pallas_call(
        kernel,
        grid=(B_pad // TB,),
        out_shape=jax.ShapeDtypeStruct((B_pad, 1), jnp.float32),
        in_specs=[
            pl.BlockSpec((L0, TB, C0), lambda i: (0, i, 0)),   # per-tile input
            pinned(packed["w1"].shape),
            pinned(packed["w2"].shape),
            pinned(packed["wih"].shape),
            pinned(packed["whh"].shape),
            pinned(packed["fw1"].shape),
            pinned(packed["fw2"].shape),
            pinned(packed["fw3"].shape),
            pinned(packed["bias"].shape),
        ],
        out_specs=pl.BlockSpec((TB, 1), lambda i: (i, 0)),
        scratch_shapes=[
            pltpu.VMEM((lp1 * TB, C0), BF16),          # padded conv-1 input
            pltpu.VMEM((lp2 * TB, C1), BF16),          # padded conv-2 input
            pltpu.VMEM((L2 * TB, 8 * H), jnp.float32), # hoisted LSTM input proj
        ],
        compiler_params=pltpu.CompilerParams(
            dimension_semantics=("parallel",),         # 2nd TensorCore on v7x
            vmem_limit_bytes=48 * 1024 * 1024),        # <=~48MiB: v7x headroom
    )(xin, packed["w1"], packed["w2"], packed["wih"], packed["whh"],
      packed["fw1"], packed["fw2"], packed["fw3"], packed["bias"])
    return jnp.squeeze(y[:B])                          # matches x.squeeze()


if __name__ == "__main__":
    # Small, self-consistent hyperparameters (architecture identical, sizes shrunk).
    conv_out_dim = 16
    conv_kernel_sizes = [4, 5]   # includes an even kernel -> asymmetric 'same' pad
    pool_size = 3
    lstm_hidden_dim = 16
    fc_hidden_dim = 8
    batch, seq_len = 32, 36      # 36 -> pool -> 12 -> pool -> 4 LSTM time steps

    key = jax.random.PRNGKey(0)
    kx, kp = jax.random.split(key)
    x = jax.random.normal(kx, (batch, seq_len, 4), jnp.float32)
    params = init_params(kp, conv_out_dim, conv_kernel_sizes, pool_size,
                         lstm_hidden_dim, fc_hidden_dim, seq_len)
    packed = pack_params(params, conv_kernel_sizes, lstm_hidden_dim, fc_hidden_dim)

    fwd = jax.jit(functools.partial(
        deepfamq_forward,
        conv_kernel_sizes=tuple(conv_kernel_sizes),
        pool_size=pool_size,
        lstm_hidden_dim=lstm_hidden_dim,
        fc_hidden_dim=fc_hidden_dim,
    ))
    y = fwd(x, packed)
    jax.block_until_ready(y)
    assert y.shape == (batch,), y.shape
    assert bool(jnp.all(jnp.isfinite(y)))
    print("KERNEL_OK")
</pallas_src>

<mosaic_0001>
module attributes {stable_mosaic.version = 11 : i64} {
  func.func @_fused_kernel(%arg0: i32, %arg1: memref<36x16x4xbf16, #tpu.memory_space<vmem>>, %arg2: memref<20x16xbf16, #tpu.memory_space<vmem>>, %arg3: memref<80x16xbf16, #tpu.memory_space<vmem>>, %arg4: memref<16x128xbf16, #tpu.memory_space<vmem>>, %arg5: memref<32x128xf32, #tpu.memory_space<vmem>>, %arg6: memref<128x8xbf16, #tpu.memory_space<vmem>>, %arg7: memref<8x8xbf16, #tpu.memory_space<vmem>>, %arg8: memref<8x1xbf16, #tpu.memory_space<vmem>>, %arg9: memref<1x768xf32, #tpu.memory_space<vmem>>, %arg10: memref<16x1xf32, #tpu.memory_space<vmem>>, %arg11: memref<640x4xbf16, #tpu.memory_space<vmem>>, %arg12: memref<256x16xbf16, #tpu.memory_space<vmem>>, %arg13: memref<64x128xf32, #tpu.memory_space<vmem>>) attributes {dimension_semantics = [#tpu.dimension_semantics<parallel>], iteration_bounds = array<i64: 2>, scalar_prefetch = 0 : i64, scratch_operands = 3 : i64, tpu.core_type = #tpu.core_type<tc>, window_params = [{transform_indices = @transform_0, window_bounds = array<i64: 36, 16, 4>}, {pipeline_mode = #tpu.pipeline_mode<synchronous>, transform_indices = @transform_1, window_bounds = array<i64: 20, 16>}, {pipeline_mode = #tpu.pipeline_mode<synchronous>, transform_indices = @transform_2, window_bounds = array<i64: 80, 16>}, {pipeline_mode = #tpu.pipeline_mode<synchronous>, transform_indices = @transform_3, window_bounds = array<i64: 16, 128>}, {pipeline_mode = #tpu.pipeline_mode<synchronous>, transform_indices = @transform_4, window_bounds = array<i64: 32, 128>}, {pipeline_mode = #tpu.pipeline_mode<synchronous>, transform_indices = @transform_5, window_bounds = array<i64: 128, 8>}, {pipeline_mode = #tpu.pipeline_mode<synchronous>, transform_indices = @transform_6, window_bounds = array<i64: 8, 8>}, {pipeline_mode = #tpu.pipeline_mode<synchronous>, transform_indices = @transform_7, window_bounds = array<i64: 8, 1>}, {pipeline_mode = #tpu.pipeline_mode<synchronous>, transform_indices = @transform_8, window_bounds = array<i64: 1, 768>}, {transform_indices = @transform_9, window_bounds = array<i64: 16, 1>}]} {
    %cst = arith.constant 0.000000e+00 : bf16
    %0 = vector.broadcast %cst : bf16 to vector<32x4xbf16>
    %c0 = arith.constant 0 : index
    %c0_0 = arith.constant 0 : index
    %1 = vector.load %arg11[%c0, %c0_0] : memref<640x4xbf16, #tpu.memory_space<vmem>>, vector<32x4xbf16>
    tpu.vector_store %arg11[%c0, %c0_0], %0 {strides = array<i32>} : memref<640x4xbf16, #tpu.memory_space<vmem>>, vector<32x4xbf16>,
    %c0_1 = arith.constant 0 : index
    %c0_2 = arith.constant 0 : index
    %c0_3 = arith.constant 0 : index
    %2 = vector.load %arg1[%c0_1, %c0_2, %c0_3] : memref<36x16x4xbf16, #tpu.memory_space<vmem>>, vector<36x16x4xbf16>
    %3 = vector.shape_cast %2 : vector<36x16x4xbf16> to vector<576x4xbf16>
    %c32 = arith.constant 32 : index
    %c0_4 = arith.constant 0 : index
    %4 = vector.load %arg11[%c32, %c0_4] : memref<640x4xbf16, #tpu.memory_space<vmem>>, vector<576x4xbf16>
    tpu.vector_store %arg11[%c32, %c0_4], %3 {strides = array<i32>} : memref<640x4xbf16, #tpu.memory_space<vmem>>, vector<576x4xbf16>,
    %cst_5 = arith.constant 0.000000e+00 : bf16
    %5 = vector.broadcast %cst_5 : bf16 to vector<32x4xbf16>
    %c608 = arith.constant 608 : index
    %c0_6 = arith.constant 0 : index
    %6 = vector.load %arg11[%c608, %c0_6] : memref<640x4xbf16, #tpu.memory_space<vmem>>, vector<32x4xbf16>
    tpu.vector_store %arg11[%c608, %c0_6], %5 {strides = array<i32>} : memref<640x4xbf16, #tpu.memory_space<vmem>>, vector<32x4xbf16>,
    %c0_7 = arith.constant 0 : index
    %c0_8 = arith.constant 0 : index
    %7 = vector.load %arg9[%c0_7, %c0_8] : memref<1x768xf32, #tpu.memory_space<vmem>>, vector<1x16xf32>
    %c0_9 = arith.constant 0 : index
    %c0_10 = arith.constant 0 : index
    %8 = vector.load %arg11[%c0_9, %c0_10] : memref<640x4xbf16, #tpu.memory_space<vmem>>, vector<576x4xbf16>
    %c0_11 = arith.constant 0 : index
    %c0_12 = arith.constant 0 : index
    %9 = vector.load %arg2[%c0_11, %c0_12] : memref<20x16xbf16, #tpu.memory_space<vmem>>, vector<4x16xbf16>
    %cst_13 = arith.constant dense<0.000000e+00> : vector<576x16xf32>
    %10 = tpu.matmul %8, %9, %cst_13 {dimension_numbers = #tpu.dot_dimension_numbers<[1], [0], [0], [1], [0, 0, 1, 1], [], []>} : vector<576x4xbf16>, vector<4x16xbf16>, vector<576x16xf32> -> vector<576x16xf32>
    %c16 = arith.constant 16 : index
    %c0_14 = arith.constant 0 : index
    %11 = vector.load %arg11[%c16, %c0_14] : memref<640x4xbf16, #tpu.memory_space<vmem>>, vector<576x4xbf16>
    %c4 = arith.constant 4 : index
    %c0_15 = arith.constant 0 : index
    %12 = vector.load %arg2[%c4, %c0_15] : memref<20x16xbf16, #tpu.memory_space<vmem>>, vector<4x16xbf16>
    %cst_16 = arith.constant dense<0.000000e+00> : vector<576x16xf32>
    %13 = tpu.matmul %11, %12, %cst_16 {dimension_numbers = #tpu.dot_dimension_numbers<[1], [0], [0], [1], [0, 0, 1, 1], [], []>} : vector<576x4xbf16>, vector<4x16xbf16>, vector<576x16xf32> -> vector<576x16xf32>
    %14 = arith.addf %10, %13 : vector<576x16xf32>
    %c32_17 = arith.constant 32 : index
    %c0_18 = arith.constant 0 : index
    %15 = vector.load %arg11[%c32_17, %c0_18] : memref<640x4xbf16, #tpu.memory_space<vmem>>, vector<576x4xbf16>
    %c8 = arith.constant 8 : index
    %c0_19 = arith.constant 0 : index
    %16 = vector.load %arg2[%c8, %c0_19] : memref<20x16xbf16, #tpu.memory_space<vmem>>, vector<4x16xbf16>
    %cst_20 = arith.constant dense<0.000000e+00> : vector<576x16xf32>
    %17 = tpu.matmul %15, %16, %cst_20 {dimension_numbers = #tpu.dot_dimension_numbers<[1], [0], [0], [1], [0, 0, 1, 1], [], []>} : vector<576x4xbf16>, vector<4x16xbf16>, vector<576x16xf32> -> vector<576x16xf32>
    %18 = arith.addf %14, %17 : vector<576x16xf32>
    %c48 = arith.constant 48 : index
    %c0_21 = arith.constant 0 : index
    %19 = vector.load %arg11[%c48, %c0_21] : memref<640x4xbf16, #tpu.memory_space<vmem>>, vector<576x4xbf16>
    %c12 = arith.constant 12 : index
    %c0_22 = arith.constant 0 : index
    %20 = vector.load %arg2[%c12, %c0_22] : memref<20x16xbf16, #tpu.memory_space<vmem>>, vector<4x16xbf16>
    %cst_23 = arith.constant dense<0.000000e+00> : vector<576x16xf32>
    %21 = tpu.matmul %19, %20, %cst_23 {dimension_numbers = #tpu.dot_dimension_numbers<[1], [0], [0], [1], [0, 0, 1, 1], [], []>} : vector<576x4xbf16>, vector<4x16xbf16>, vector<576x16xf32> -> vector<576x16xf32>
    %22 = arith.addf %18, %21 : vector<576x16xf32>
    %c64 = arith.constant 64 : index
    %c0_24 = arith.constant 0 : index
    %23 = vector.load %arg11[%c64, %c0_24] : memref<640x4xbf16, #tpu.memory_space<vmem>>, vector<576x4xbf16>
    %c16_25 = arith.constant 16 : index
    %c0_26 = arith.constant 0 : index
    %24 = vector.load %arg2[%c16_25, %c0_26] : memref<20x16xbf16, #tpu.memory_space<vmem>>, vector<4x16xbf16>
    %cst_27 = arith.constant dense<0.000000e+00> : vector<576x16xf32>
    %25 = tpu.matmul %23, %24, %cst_27 {dimension_numbers = #tpu.dot_dimension_numbers<[1], [0], [0], [1], [0, 0, 1, 1], [], []>} : vector<576x4xbf16>, vector<4x16xbf16>, vector<576x16xf32> -> vector<576x16xf32>
    %26 = arith.addf %22, %25 : vector<576x16xf32>
    %27 = vector.broadcast %7 : vector<1x16xf32> to vector<576x16xf32>
    %28 = arith.addf %26, %27 : vector<576x16xf32>
    %cst_28 = arith.constant 0.000000e+00 : f32
    %29 = vector.broadcast %cst_28 : f32 to vector<576x16xf32>
    %30 = arith.maximumf %28, %29 : vector<576x16xf32>
    %31 = vector.shape_cast %30 : vector<576x16xf32> to vector<12x48x16xf32>
    %32 = vector.extract_strided_slice %31 {offsets = [0, 0, 0], sizes = [12, 16, 16], strides = [1, 1, 1]} : vector<12x48x16xf32> to vector<12x16x16xf32>
    %33 = vector.extract_strided_slice %31 {offsets = [0, 16, 0], sizes = [12, 16, 16], strides = [1, 1, 1]} : vector<12x48x16xf32> to vector<12x16x16xf32>
    %34 = arith.maximumf %32, %33 : vector<12x16x16xf32>
    %35 = vector.extract_strided_slice %31 {offsets = [0, 32, 0], sizes = [12, 16, 16], strides = [1, 1, 1]} : vector<12x48x16xf32> to vector<12x16x16xf32>
    %36 = arith.maximumf %34, %35 : vector<12x16x16xf32>
    %37 = vector.shape_cast %36 : vector<12x16x16xf32> to vector<192x16xf32>
    %cst_29 = arith.constant 0.000000e+00 : bf16
    %38 = vector.broadcast %cst_29 : bf16 to vector<32x16xbf16>
    %c0_30 = arith.constant 0 : index
    %c0_31 = arith.constant 0 : index
    %39 = vector.load %arg12[%c0_30, %c0_31] : memref<256x16xbf16, #tpu.memory_space<vmem>>, vector<32x16xbf16>
    tpu.vector_store %arg12[%c0_30, %c0_31], %38 {strides = array<i32>} : memref<256x16xbf16, #tpu.memory_space<vmem>>, vector<32x16xbf16>,
    %40 = arith.truncf %37 : vector<192x16xf32> to vector<192x16xbf16>
    %c32_32 = arith.constant 32 : index
    %c0_33 = arith.constant 0 : index
    %41 = vector.load %arg12[%c32_32, %c0_33] : memref<256x16xbf16, #tpu.memory_space<vmem>>, vector<192x16xbf16>
    tpu.vector_store %arg12[%c32_32, %c0_33], %40 {strides = array<i32>} : memref<256x16xbf16, #tpu.memory_space<vmem>>, vector<192x16xbf16>,
    %cst_34 = arith.constant 0.000000e+00 : bf16
    %42 = vector.broadcast %cst_34 : bf16 to vector<32x16xbf16>
    %c224 = arith.constant 224 : index
    %c0_35 = arith.constant 0 : index
    %43 = vector.load %arg12[%c224, %c0_35] : memref<256x16xbf16, #tpu.memory_space<vmem>>, vector<32x16xbf16>
    tpu.vector_store %arg12[%c224, %c0_35], %42 {strides = array<i32>} : memref<256x16xbf16, #tpu.memory_space<vmem>>, vector<32x16xbf16>,
    %c0_36 = arith.constant 0 : index
    %c128 = arith.constant 128 : index
    %44 = vector.load %arg9[%c0_36, %c128] : memref<1x768xf32, #tpu.memory_space<vmem>>, vector<1x16xf32>
    %c0_37 = arith.constant 0 : index
    %c0_38 = arith.constant 0 : index
    %45 = vector.load %arg12[%c0_37, %c0_38] : memref<256x16xbf16, #tpu.memory_space<vmem>>, vector<192x16xbf16>
    %c0_39 = arith.constant 0 : index
    %c0_40 = arith.constant 0 : index
    %46 = vector.load %arg3[%c0_39, %c0_40] : memref<80x16xbf16, #tpu.memory_space<vmem>>, vector<16x16xbf16>
    %cst_41 = arith.constant dense<0.000000e+00> : vector<192x16xf32>
    %47 = tpu.matmul %45, %46, %cst_41 {dimension_numbers = #tpu.dot_dimension_numbers<[1], [0], [0], [1], [0, 0, 1, 1], [], []>} : vector<192x16xbf16>, vector<16x16xbf16>, vector<192x16xf32> -> vector<192x16xf32>
    %c16_42 = arith.constant 16 : index
    %c0_43 = arith.constant 0 : index
    %48 = vector.load %arg12[%c16_42, %c0_43] : memref<256x16xbf16, #tpu.memory_space<vmem>>, vector<192x16xbf16>
    %c16_44 = arith.constant 16 : index
    %c0_45 = arith.constant 0 : index
    %49 = vector.load %arg3[%c16_44, %c0_45] : memref<80x16xbf16, #tpu.memory_space<vmem>>, vector<16x16xbf16>
    %cst_46 = arith.constant dense<0.000000e+00> : vector<192x16xf32>
    %50 = tpu.matmul %48, %49, %cst_46 {dimension_numbers = #tpu.dot_dimension_numbers<[1], [0], [0], [1], [0, 0, 1, 1], [], []>} : vector<192x16xbf16>, vector<16x16xbf16>, vector<192x16xf32> -> vector<192x16xf32>
    %51 = arith.addf %47, %50 : vector<192x16xf32>
    %c32_47 = arith.constant 32 : index
    %c0_48 = arith.constant 0 : index
    %52 = vector.load %arg12[%c32_47, %c0_48] : memref<256x16xbf16, #tpu.memory_space<vmem>>, vector<192x16xbf16>
    %c32_49 = arith.constant 32 : index
    %c0_50 = arith.constant 0 : index
    %53 = vector.load %arg3[%c32_49, %c0_50] : memref<80x16xbf16, #tpu.memory_space<vmem>>, vector<16x16xbf16>
    %cst_51 = arith.constant dense<0.000000e+00> : vector<192x16xf32>
    %54 = tpu.matmul %52, %53, %cst_51 {dimension_numbers = #tpu.dot_dimension_numbers<[1], [0], [0], [1], [0, 0, 1, 1], [], []>} : vector<192x16xbf16>, vector<16x16xbf16>, vector<192x16xf32> -> vector<192x16xf32>
    %55 = arith.addf %51, %54 : vector<192x16xf32>
    %c48_52 = arith.constant 48 : index
    %c0_53 = arith.constant 0 : index
    %56 = vector.load %arg12[%c48_52, %c0_53] : memref<256x16xbf16, #tpu.memory_space<vmem>>, vector<192x16xbf16>
    %c48_54 = arith.constant 48 : index
    %c0_55 = arith.constant 0 : index
    %57 = vector.load %arg3[%c48_54, %c0_55] : memref<80x16xbf16, #tpu.memory_space<vmem>>, vector<16x16xbf16>
    %cst_56 = arith.constant dense<0.000000e+00> : vector<192x16xf32>
    %58 = tpu.matmul %56, %57, %cst_56 {dimension_numbers = #tpu.dot_dimension_numbers<[1], [0], [0], [1], [0, 0, 1, 1], [], []>} : vector<192x16xbf16>, vector<16x16xbf16>, vector<192x16xf32> -> vector<192x16xf32>
    %59 = arith.addf %55, %58 : vector<192x16xf32>
    %c64_57 = arith.constant 64 : index
    %c0_58 = arith.constant 0 : index
    %60 = vector.load %arg12[%c64_57, %c0_58] : memref<256x16xbf16, #tpu.memory_space<vmem>>, vector<192x16xbf16>
    %c64_59 = arith.constant 64 : index
    %c0_60 = arith.constant 0 : index
    %61 = vector.load %arg3[%c64_59, %c0_60] : memref<80x16xbf16, #tpu.memory_space<vmem>>, vector<16x16xbf16>
    %cst_61 = arith.constant dense<0.000000e+00> : vector<192x16xf32>
    %62 = tpu.matmul %60, %61, %cst_61 {dimension_numbers = #tpu.dot_dimension_numbers<[1], [0], [0], [1], [0, 0, 1, 1], [], []>} : vector<192x16xbf16>, vector<16x16xbf16>, vector<192x16xf32> -> vector<192x16xf32>
    %63 = arith.addf %59, %62 : vector<192x16xf32>
    %64 = vector.broadcast %44 : vector<1x16xf32> to vector<192x16xf32>
    %65 = arith.addf %63, %64 : vector<192x16xf32>
    %cst_62 = arith.constant 0.000000e+00 : f32
    %66 = vector.broadcast %cst_62 : f32 to vector<192x16xf32>
    %67 = arith.maximumf %65, %66 : vector<192x16xf32>
    %68 = vector.shape_cast %67 : vector<192x16xf32> to vector<4x48x16xf32>
    %69 = vector.extract_strided_slice %68 {offsets = [0, 0, 0], sizes = [4, 16, 16], strides = [1, 1, 1]} : vector<4x48x16xf32> to vector<4x16x16xf32>
    %70 = vector.extract_strided_slice %68 {offsets = [0, 16, 0], sizes = [4, 16, 16], strides = [1, 1, 1]} : vector<4x48x16xf32> to vector<4x16x16xf32>
    %71 = arith.maximumf %69, %70 : vector<4x16x16xf32>
    %72 = vector.extract_strided_slice %68 {offsets = [0, 32, 0], sizes = [4, 16, 16], strides = [1, 1, 1]} : vector<4x48x16xf32> to vector<4x16x16xf32>
    %73 = arith.maximumf %71, %72 : vector<4x16x16xf32>
    %74 = vector.shape_cast %73 : vector<4x16x16xf32> to vector<64x16xf32>
    %75 = arith.truncf %74 : vector<64x16xf32> to vector<64x16xbf16>
    %c0_63 = arith.constant 0 : index
    %c0_64 = arith.constant 0 : index
    %76 = vector.load %arg4[%c0_63, %c0_64] : memref<16x128xbf16, #tpu.memory_space<vmem>>, vector<16x128xbf16>
    %cst_65 = arith.constant dense<0.000000e+00> : vector<64x128xf32>
    %77 = tpu.matmul %75, %76, %cst_65 {dimension_numbers = #tpu.dot_dimension_numbers<[1], [0], [0], [1], [0, 0, 1, 1], [], []>} : vector<64x16xbf16>, vector<16x128xbf16>, vector<64x128xf32> -> vector<64x128xf32>
    %c0_66 = arith.constant 0 : index
    %c256 = arith.constant 256 : index
    %78 = vector.load %arg9[%c0_66, %c256] : memref<1x768xf32, #tpu.memory_space<vmem>>, vector<1x128xf32>
    %79 = vector.broadcast %78 : vector<1x128xf32> to vector<64x128xf32>
    %80 = arith.addf %77, %79 : vector<64x128xf32>
    %c0_67 = arith.constant 0 : index
    %c0_68 = arith.constant 0 : index
    %81 = vector.load %arg13[%c0_67, %c0_68] : memref<64x128xf32, #tpu.memory_space<vmem>>, vector<64x128xf32>
    tpu.vector_store %arg13[%c0_67, %c0_68], %80 {strides = array<i32>} : memref<64x128xf32, #tpu.memory_space<vmem>>, vector<64x128xf32>,
    %c0_69 = arith.constant 0 : index
    %c0_70 = arith.constant 0 : index
    %82 = vector.load %arg5[%c0_69, %c0_70] : memref<32x128xf32, #tpu.memory_space<vmem>>, vector<32x128xf32>
    %cst_71 = arith.constant 0.000000e+00 : f32
    %83 = vector.broadcast %cst_71 : f32 to vector<16x16xf32>
    %cst_72 = arith.constant 0.000000e+00 : f32
    %84 = vector.broadcast %cst_72 : f32 to vector<16x16xf32>
    %cst_73 = arith.constant 0.000000e+00 : f32
    %85 = vector.broadcast %cst_73 : f32 to vector<16x16xf32>
    %cst_74 = arith.constant 0.000000e+00 : f32
    %86 = vector.broadcast %cst_74 : f32 to vector<16x16xf32>
    %c0_75 = arith.constant 0 : index
    %c384 = arith.constant 384 : index
    %87 = vector.load %arg9[%c0_75, %c384] : memref<1x768xf32, #tpu.memory_space<vmem>>, vector<1x8xf32>
    %88 = vector.shape_cast %87 : vector<1x8xf32> to vector<1x8xf32>
    %89 = vector.broadcast %88 : vector<1x8xf32> to vector<16x8xf32>
    %90 = tpu.concatenate %83, %85 in 1 : vector<16x16xf32>, vector<16x16xf32> -> vector<16x32xf32>
    %cst_76 = arith.constant dense<0.000000e+00> : vector<16x128xf32>
    %91 = tpu.matmul %90, %82, %cst_76 {dimension_numbers = #tpu.dot_dimension_numbers<[1], [0], [0], [1], [0, 0, 1, 1], [], []>} : vector<16x32xf32>, vector<32x128xf32>, vector<16x128xf32> -> vector<16x128xf32>
    %c0_77 = arith.constant 0 : index
    %c0_78 = arith.constant 0 : index
    %92 = vector.load %arg13[%c0_77, %c0_78] : memref<64x128xf32, #tpu.memory_space<vmem>>, vector<16x64xf32>
    %93 = vector.extract_strided_slice %91 {offsets = [0, 0], sizes = [16, 64], strides = [1, 1]} : vector<16x128xf32> to vector<16x64xf32>
    %94 = arith.addf %92, %93 : vector<16x64xf32>
    %c48_79 = arith.constant 48 : index
    %c64_80 = arith.constant 64 : index
    %95 = vector.load %arg13[%c48_79, %c64_80] : memref<64x128xf32, #tpu.memory_space<vmem>>, vector<16x64xf32>
    %96 = vector.extract_strided_slice %91 {offsets = [0, 64], sizes = [16, 64], strides = [1, 1]} : vector<16x128xf32> to vector<16x64xf32>
    %97 = arith.addf %95, %96 : vector<16x64xf32>
    %98 = vector.extract_strided_slice %94 {offsets = [0, 0], sizes = [16, 16], strides = [1, 1]} : vector<16x64xf32> to vector<16x16xf32>
    %99 = arith.negf %98 : vector<16x16xf32>
    %100 = math.exp %99 : vector<16x16xf32>
    %cst_81 = arith.constant 1.000000e+00 : f32
    %101 = vector.broadcast %cst_81 : f32 to vector<16x16xf32>
    %102 = arith.addf %101, %100 : vector<16x16xf32>
    %103 = arith.divf %101, %102 : vector<16x16xf32>
    %104 = vector.extract_strided_slice %94 {offsets = [0, 16], sizes = [16, 16], strides = [1, 1]} : vector<16x64xf32> to vector<16x16xf32>
    %105 = arith.negf %104 : vector<16x16xf32>
    %106 = math.exp %105 : vector<16x16xf32>
    %cst_82 = arith.constant 1.000000e+00 : f32
    %107 = vector.broadcast %cst_82 : f32 to vector<16x16xf32>
    %108 = arith.addf %107, %106 : vector<16x16xf32>
    %109 = arith.divf %107, %108 : vector<16x16xf32>
    %110 = vector.extract_strided_slice %94 {offsets = [0, 32], sizes = [16, 16], strides = [1, 1]} : vector<16x64xf32> to vector<16x16xf32>
    %111 = math.tanh %110 : vector<16x16xf32>
    %112 = vector.extract_strided_slice %94 {offsets = [0, 48], sizes = [16, 16], strides = [1, 1]} : vector<16x64xf32> to vector<16x16xf32>
    %113 = arith.negf %112 : vector<16x16xf32>
    %114 = math.exp %113 : vector<16x16xf32>
    %cst_83 = arith.constant 1.000000e+00 : f32
    %115 = vector.broadcast %cst_83 : f32 to vector<16x16xf32>
    %116 = arith.addf %115, %114 : vector<16x16xf32>
    %117 = arith.divf %115, %116 : vector<16x16xf32>
    %118 = arith.mulf %109, %84 : vector<16x16xf32>
    %119 = arith.mulf %103, %111 : vector<16x16xf32>
    %120 = arith.addf %118, %119 : vector<16x16xf32>
    %121 = math.tanh %120 : vector<16x16xf32>
    %122 = arith.mulf %117, %121 : vector<16x16xf32>
    %123 = vector.extract_strided_slice %97 {offsets = [0, 0], sizes = [16, 16], strides = [1, 1]} : vector<16x64xf32> to vector<16x16xf32>
    %124 = arith.negf %123 : vector<16x16xf32>
    %125 = math.exp %124 : vector<16x16xf32>
    %cst_84 = arith.constant 1.000000e+00 : f32
    %126 = vector.broadcast %cst_84 : f32 to vector<16x16xf32>
    %127 = arith.addf %126, %125 : vector<16x16xf32>
    %128 = arith.divf %126, %127 : vector<16x16xf32>
    %129 = vector.extract_strided_slice %97 {offsets = [0, 16], sizes = [16, 16], strides = [1, 1]} : vector<16x64xf32> to vector<16x16xf32>
    %130 = arith.negf %129 : vector<16x16xf32>
    %131 = math.exp %130 : vector<16x16xf32>
    %cst_85 = arith.constant 1.000000e+00 : f32
    %132 = vector.broadcast %cst_85 : f32 to vector<16x16xf32>
    %133 = arith.addf %132, %131 : vector<16x16xf32>
    %134 = arith.divf %132, %133 : vector<16x16xf32>
    %135 = vector.extract_strided_slice %97 {offsets = [0, 32], sizes = [16, 16], strides = [1, 1]} : vector<16x64xf32> to vector<16x16xf32>
    %136 = math.tanh %135 : vector<16x16xf32>
    %137 = vector.extract_strided_slice %97 {offsets = [0, 48], sizes = [16, 16], strides = [1, 1]} : vector<16x64xf32> to vector<16x16xf32>
    %138 = arith.negf %137 : vector<16x16xf32>
    %139 = math.exp %138 : vector<16x16xf32>
    %cst_86 = arith.constant 1.000000e+00 : f32
    %140 = vector.broadcast %cst_86 : f32 to vector<16x16xf32>
    %141 = arith.addf %140, %139 : vector<16x16xf32>
    %142 = arith.divf %140, %141 : vector<16x16xf32>
    %143 = arith.mulf %134, %86 : vector<16x16xf32>
    %144 = arith.mulf %128, %136 : vector<16x16xf32>
    %145 = arith.addf %143, %144 : vector<16x16xf32>
    %146 = math.tanh %145 : vector<16x16xf32>
    %147 = arith.mulf %142, %146 : vector<16x16xf32>
    %148 = arith.truncf %122 : vector<16x16xf32> to vector<16x16xbf16>
    %c0_87 = arith.constant 0 : index
    %c0_88 = arith.constant 0 : index
    %149 = vector.load %arg6[%c0_87, %c0_88] : memref<128x8xbf16, #tpu.memory_space<vmem>>, vector<16x8xbf16>
    %cst_89 = arith.constant dense<0.000000e+00> : vector<16x8xf32>
    %150 = tpu.matmul %148, %149, %cst_89 {dimension_numbers = #tpu.dot_dimension_numbers<[1], [0], [0], [1], [0, 0, 1, 1], [], []>} : vector<16x16xbf16>, vector<16x8xbf16>, vector<16x8xf32> -> vector<16x8xf32>
    %151 = arith.addf %89, %150 : vector<16x8xf32>
    %152 = arith.truncf %147 : vector<16x16xf32> to vector<16x16xbf16>
    %c112 = arith.constant 112 : index
    %c0_90 = arith.constant 0 : index
    %153 = vector.load %arg6[%c112, %c0_90] : memref<128x8xbf16, #tpu.memory_space<vmem>>, vector<16x8xbf16>
    %cst_91 = arith.constant dense<0.000000e+00> : vector<16x8xf32>
    %154 = tpu.matmul %152, %153, %cst_91 {dimension_numbers = #tpu.dot_dimension_numbers<[1], [0], [0], [1], [0, 0, 1, 1], [], []>} : vector<16x16xbf16>, vector<16x8xbf16>, vector<16x8xf32> -> vector<16x8xf32>
    %155 = arith.addf %151, %154 : vector<16x8xf32>
    %156 = tpu.concatenate %122, %147 in 1 : vector<16x16xf32>, vector<16x16xf32> -> vector<16x32xf32>
    %cst_92 = arith.constant dense<0.000000e+00> : vector<16x128xf32>
    %157 = tpu.matmul %156, %82, %cst_92 {dimension_numbers = #tpu.dot_dimension_numbers<[1], [0], [0], [1], [0, 0, 1, 1], [], []>} : vector<16x32xf32>, vector<32x128xf32>, vector<16x128xf32> -> vector<16x128xf32>
    %c16_93 = arith.constant 16 : index
    %c0_94 = arith.constant 0 : index
    %158 = vector.load %arg13[%c16_93, %c0_94] : memref<64x128xf32, #tpu.memory_space<vmem>>, vector<16x64xf32>
    %159 = vector.extract_strided_slice %157 {offsets = [0, 0], sizes = [16, 64], strides = [1, 1]} : vector<16x128xf32> to vector<16x64xf32>
    %160 = arith.addf %158, %159 : vector<16x64xf32>
    %c32_95 = arith.constant 32 : index
    %c64_96 = arith.constant 64 : index
    %161 = vector.load %arg13[%c32_95, %c64_96] : memref<64x128xf32, #tpu.memory_space<vmem>>, vector<16x64xf32>
    %162 = vector.extract_strided_slice %157 {offsets = [0, 64], sizes = [16, 64], strides = [1, 1]} : vector<16x128xf32> to vector<16x64xf32>
    %163 = arith.addf %161, %162 : vector<16x64xf32>
    %164 = vector.extract_strided_slice %160 {offsets = [0, 0], sizes = [16, 16], strides = [1, 1]} : vector<16x64xf32> to vector<16x16xf32>
    %165 = arith.negf %164 : vector<16x16xf32>
    %166 = math.exp %165 : vector<16x16xf32>
    %cst_97 = arith.constant 1.000000e+00 : f32
    %167 = vector.broadcast %cst_97 : f32 to vector<16x16xf32>
    %168 = arith.addf %167, %166 : vector<16x16xf32>
    %169 = arith.divf %167, %168 : vector<16x16xf32>
    %170 = vector.extract_strided_slice %160 {offsets = [0, 16], sizes = [16, 16], strides = [1, 1]} : vector<16x64xf32> to vector<16x16xf32>
    %171 = arith.negf %170 : vector<16x16xf32>
    %172 = math.exp %171 : vector<16x16xf32>
    %cst_98 = arith.constant 1.000000e+00 : f32
    %173 = vector.broadcast %cst_98 : f32 to vector<16x16xf32>
    %174 = arith.addf %173, %172 : vector<16x16xf32>
    %175 = arith.divf %173, %174 : vector<16x16xf32>
    %176 = vector.extract_strided_slice %160 {offsets = [0, 32], sizes = [16, 16], strides = [1, 1]} : vector<16x64xf32> to vector<16x16xf32>
    %177 = math.tanh %176 : vector<16x16xf32>
    %178 = vector.extract_strided_slice %160 {offsets = [0, 48], sizes = [16, 16], strides = [1, 1]} : vector<16x64xf32> to vector<16x16xf32>
    %179 = arith.negf %178 : vector<16x16xf32>
    %180 = math.exp %179 : vector<16x16xf32>
    %cst_99 = arith.constant 1.000000e+00 : f32
    %181 = vector.broadcast %cst_99 : f32 to vector<16x16xf32>
    %182 = arith.addf %181, %180 : vector<16x16xf32>
    %183 = arith.divf %181, %182 : vector<16x16xf32>
    %184 = arith.mulf %175, %120 : vector<16x16xf32>
    %185 = arith.mulf %169, %177 : vector<16x16xf32>
    %186 = arith.addf %184, %185 : vector<16x16xf32>
    %187 = math.tanh %186 : vector<16x16xf32>
    %188 = arith.mulf %183, %187 : vector<16x16xf32>
    %189 = vector.extract_strided_slice %163 {offsets = [0, 0], sizes = [16, 16], strides = [1, 1]} : vector<16x64xf32> to vector<16x16xf32>
    %190 = arith.negf %189 : vector<16x16xf32>
    %191 = math.exp %190 : vector<16x16xf32>
    %cst_100 = arith.constant 1.000000e+00 : f32
    %192 = vector.broadcast %cst_100 : f32 to vector<16x16xf32>
    %193 = arith.addf %192, %191 : vector<16x16xf32>
    %194 = arith.divf %192, %193 : vector<16x16xf32>
    %195 = vector.extract_strided_slice %163 {offsets = [0, 16], sizes = [16, 16], strides = [1, 1]} : vector<16x64xf32> to vector<16x16xf32>
    %196 = arith.negf %195 : vector<16x16xf32>
    %197 = math.exp %196 : vector<16x16xf32>
    %cst_101 = arith.constant 1.000000e+00 : f32
    %198 = vector.broadcast %cst_101 : f32 to vector<16x16xf32>
    %199 = arith.addf %198, %197 : vector<16x16xf32>
    %200 = arith.divf %198, %199 : vector<16x16xf32>
    %201 = vector.extract_strided_slice %163 {offsets = [0, 32], sizes = [16, 16], strides = [1, 1]} : vector<16x64xf32> to vector<16x16xf32>
    %202 = math.tanh %201 : vector<16x16xf32>
    %203 = vector.extract_strided_slice %163 {offsets = [0, 48], sizes = [16, 16], strides = [1, 1]} : vector<16x64xf32> to vector<16x16xf32>
    %204 = arith.negf %203 : vector<16x16xf32>
    %205 = math.exp %204 : vector<16x16xf32>
    %cst_102 = arith.constant 1.000000e+00 : f32
    %206 = vector.broadcast %cst_102 : f32 to vector<16x16xf32>
    %207 = arith.addf %206, %205 : vector<16x16xf32>
    %208 = arith.divf %206, %207 : vector<16x16xf32>
    %209 = arith.mulf %200, %145 : vector<16x16xf32>
    %210 = arith.mulf %194, %202 : vector<16x16xf32>
    %211 = arith.addf %209, %210 : vector<16x16xf32>
    %212 = math.tanh %211 : vector<16x16xf32>
    %213 = arith.mulf %208, %212 : vector<16x16xf32>
    %214 = arith.truncf %188 : vector<16x16xf32> to vector<16x16xbf16>
    %c32_103 = arith.constant 32 : index
    %c0_104 = arith.constant 0 : index
    %215 = vector.load %arg6[%c32_103, %c0_104] : memref<128x8xbf16, #tpu.memory_space<vmem>>, vector<16x8xbf16>
    %cst_105 = arith.constant dense<0.000000e+00> : vector<16x8xf32>
    %216 = tpu.matmul %214, %215, %cst_105 {dimension_numbers = #tpu.dot_dimension_numbers<[1], [0], [0], [1], [0, 0, 1, 1], [], []>} : vector<16x16xbf16>, vector<16x8xbf16>, vector<16x8xf32> -> vector<16x8xf32>
    %217 = arith.addf %155, %216 : vector<16x8xf32>
    %218 = arith.truncf %213 : vector<16x16xf32> to vector<16x16xbf16>
    %c80 = arith.constant 80 : index
    %c0_106 = arith.constant 0 : index
    %219 = vector.load %arg6[%c80, %c0_106] : memref<128x8xbf16, #tpu.memory_space<vmem>>, vector<16x8xbf16>
    %cst_107 = arith.constant dense<0.000000e+00> : vector<16x8xf32>
    %220 = tpu.matmul %218, %219, %cst_107 {dimension_numbers = #tpu.dot_dimension_numbers<[1], [0], [0], [1], [0, 0, 1, 1], [], []>} : vector<16x16xbf16>, vector<16x8xbf16>, vector<16x8xf32> -> vector<16x8xf32>
    %221 = arith.addf %217, %220 : vector<16x8xf32>
    %222 = tpu.concatenate %188, %213 in 1 : vector<16x16xf32>, vector<16x16xf32> -> vector<16x32xf32>
    %cst_108 = arith.constant dense<0.000000e+00> : vector<16x128xf32>
    %223 = tpu.matmul %222, %82, %cst_108 {dimension_numbers = #tpu.dot_dimension_numbers<[1], [0], [0], [1], [0, 0, 1, 1], [], []>} : vector<16x32xf32>, vector<32x128xf32>, vector<16x128xf32> -> vector<16x128xf32>
    %c32_109 = arith.constant 32 : index
    %c0_110 = arith.constant 0 : index
    %224 = vector.load %arg13[%c32_109, %c0_110] : memref<64x128xf32, #tpu.memory_space<vmem>>, vector<16x64xf32>
    %225 = vector.extract_strided_slice %223 {offsets = [0, 0], sizes = [16, 64], strides = [1, 1]} : vector<16x128xf32> to vector<16x64xf32>
    %226 = arith.addf %224, %225 : vector<16x64xf32>
    %c16_111 = arith.constant 16 : index
    %c64_112 = arith.constant 64 : index
    %227 = vector.load %arg13[%c16_111, %c64_112] : memref<64x128xf32, #tpu.memory_space<vmem>>, vector<16x64xf32>
    %228 = vector.extract_strided_slice %223 {offsets = [0, 64], sizes = [16, 64], strides = [1, 1]} : vector<16x128xf32> to vector<16x64xf32>
    %229 = arith.addf %227, %228 : vector<16x64xf32>
    %230 = vector.extract_strided_slice %226 {offsets = [0, 0], sizes = [16, 16], strides = [1, 1]} : vector<16x64xf32> to vector<16x16xf32>
    %231 = arith.negf %230 : vector<16x16xf32>
    %232 = math.exp %231 : vector<16x16xf32>
    %cst_113 = arith.constant 1.000000e+00 : f32
    %233 = vector.broadcast %cst_113 : f32 to vector<16x16xf32>
    %234 = arith.addf %233, %232 : vector<16x16xf32>
    %235 = arith.divf %233, %234 : vector<16x16xf32>
    %236 = vector.extract_strided_slice %226 {offsets = [0, 16], sizes = [16, 16], strides = [1, 1]} : vector<16x64xf32> to vector<16x16xf32>
    %237 = arith.negf %236 : vector<16x16xf32>
    %238 = math.exp %237 : vector<16x16xf32>
    %cst_114 = arith.constant 1.000000e+00 : f32
    %239 = vector.broadcast %cst_114 : f32 to vector<16x16xf32>
    %240 = arith.addf %239, %238 : vector<16x16xf32>
    %241 = arith.divf %239, %240 : vector<16x16xf32>
    %242 = vector.extract_strided_slice %226 {offsets = [0, 32], sizes = [16, 16], strides = [1, 1]} : vector<16x64xf32> to vector<16x16xf32>
    %243 = math.tanh %242 : vector<16x16xf32>
    %244 = vector.extract_strided_slice %226 {offsets = [0, 48], sizes = [16, 16], strides = [1, 1]} : vector<16x64xf32> to vector<16x16xf32>
    %245 = arith.negf %244 : vector<16x16xf32>
    %246 = math.exp %245 : vector<16x16xf32>
    %cst_115 = arith.constant 1.000000e+00 : f32
    %247 = vector.broadcast %cst_115 : f32 to vector<16x16xf32>
    %248 = arith.addf %247, %246 : vector<16x16xf32>
    %249 = arith.divf %247, %248 : vector<16x16xf32>
    %250 = arith.mulf %241, %186 : vector<16x16xf32>
    %251 = arith.mulf %235, %243 : vector<16x16xf32>
    %252 = arith.addf %250, %251 : vector<16x16xf32>
    %253 = math.tanh %252 : vector<16x16xf32>
    %254 = arith.mulf %249, %253 : vector<16x16xf32>
    %255 = vector.extract_strided_slice %229 {offsets = [0, 0], sizes = [16, 16], strides = [1, 1]} : vector<16x64xf32> to vector<16x16xf32>
    %256 = arith.negf %255 : vector<16x16xf32>
    %257 = math.exp %256 : vector<16x16xf32>
    %cst_116 = arith.constant 1.000000e+00 : f32
    %258 = vector.broadcast %cst_116 : f32 to vector<16x16xf32>
    %259 = arith.addf %258, %257 : vector<16x16xf32>
    %260 = arith.divf %258, %259 : vector<16x16xf32>
    %261 = vector.extract_strided_slice %229 {offsets = [0, 16], sizes = [16, 16], strides = [1, 1]} : vector<16x64xf32> to vector<16x16xf32>
    %262 = arith.negf %261 : vector<16x16xf32>
    %263 = math.exp %262 : vector<16x16xf32>
    %cst_117 = arith.constant 1.000000e+00 : f32
    %264 = vector.broadcast %cst_117 : f32 to vector<16x16xf32>
    %265 = arith.addf %264, %263 : vector<16x16xf32>
    %266 = arith.divf %264, %265 : vector<16x16xf32>
    %267 = vector.extract_strided_slice %229 {offsets = [0, 32], sizes = [16, 16], strides = [1, 1]} : vector<16x64xf32> to vector<16x16xf32>
    %268 = math.tanh %267 : vector<16x16xf32>
    %269 = vector.extract_strided_slice %229 {offsets = [0, 48], sizes = [16, 16], strides = [1, 1]} : vector<16x64xf32> to vector<16x16xf32>
    %270 = arith.negf %269 : vector<16x16xf32>
    %271 = math.exp %270 : vector<16x16xf32>
    %cst_118 = arith.constant 1.000000e+00 : f32
    %272 = vector.broadcast %cst_118 : f32 to vector<16x16xf32>
    %273 = arith.addf %272, %271 : vector<16x16xf32>
    %274 = arith.divf %272, %273 : vector<16x16xf32>
    %275 = arith.mulf %266, %211 : vector<16x16xf32>
    %276 = arith.mulf %260, %268 : vector<16x16xf32>
    %277 = arith.addf %275, %276 : vector<16x16xf32>
    %278 = math.tanh %277 : vector<16x16xf32>
    %279 = arith.mulf %274, %278 : vector<16x16xf32>
    %280 = arith.truncf %254 : vector<16x16xf32> to vector<16x16xbf16>
    %c64_119 = arith.constant 64 : index
    %c0_120 = arith.constant 0 : index
    %281 = vector.load %arg6[%c64_119, %c0_120] : memref<128x8xbf16, #tpu.memory_space<vmem>>, vector<16x8xbf16>
    %cst_121 = arith.constant dense<0.000000e+00> : vector<16x8xf32>
    %282 = tpu.matmul %280, %281, %cst_121 {dimension_numbers = #tpu.dot_dimension_numbers<[1], [0], [0], [1], [0, 0, 1, 1], [], []>} : vector<16x16xbf16>, vector<16x8xbf16>, vector<16x8xf32> -> vector<16x8xf32>
    %283 = arith.addf %221, %282 : vector<16x8xf32>
    %284 = arith.truncf %279 : vector<16x16xf32> to vector<16x16xbf16>
    %c48_122 = arith.constant 48 : index
    %c0_123 = arith.constant 0 : index
    %285 = vector.load %arg6[%c48_122, %c0_123] : memref<128x8xbf16, #tpu.memory_space<vmem>>, vector<16x8xbf16>
    %cst_124 = arith.constant dense<0.000000e+00> : vector<16x8xf32>
    %286 = tpu.matmul %284, %285, %cst_124 {dimension_numbers = #tpu.dot_dimension_numbers<[1], [0], [0], [1], [0, 0, 1, 1], [], []>} : vector<16x16xbf16>, vector<16x8xbf16>, vector<16x8xf32> -> vector<16x8xf32>
    %287 = arith.addf %283, %286 : vector<16x8xf32>
    %288 = tpu.concatenate %254, %279 in 1 : vector<16x16xf32>, vector<16x16xf32> -> vector<16x32xf32>
    %cst_125 = arith.constant dense<0.000000e+00> : vector<16x128xf32>
    %289 = tpu.matmul %288, %82, %cst_125 {dimension_numbers = #tpu.dot_dimension_numbers<[1], [0], [0], [1], [0, 0, 1, 1], [], []>} : vector<16x32xf32>, vector<32x128xf32>, vector<16x128xf32> -> vector<16x128xf32>
    %c48_126 = arith.constant 48 : index
    %c0_127 = arith.constant 0 : index
    %290 = vector.load %arg13[%c48_126, %c0_127] : memref<64x128xf32, #tpu.memory_space<vmem>>, vector<16x64xf32>
    %291 = vector.extract_strided_slice %289 {offsets = [0, 0], sizes = [16, 64], strides = [1, 1]} : vector<16x128xf32> to vector<16x64xf32>
    %292 = arith.addf %290, %291 : vector<16x64xf32>
    %c0_128 = arith.constant 0 : index
    %c64_129 = arith.constant 64 : index
    %293 = vector.load %arg13[%c0_128, %c64_129] : memref<64x128xf32, #tpu.memory_space<vmem>>, vector<16x64xf32>
    %294 = vector.extract_strided_slice %289 {offsets = [0, 64], sizes = [16, 64], strides = [1, 1]} : vector<16x128xf32> to vector<16x64xf32>
    %295 = arith.addf %293, %294 : vector<16x64xf32>
    %296 = vector.extract_strided_slice %292 {offsets = [0, 0], sizes = [16, 16], strides = [1, 1]} : vector<16x64xf32> to vector<16x16xf32>
    %297 = arith.negf %296 : vector<16x16xf32>
    %298 = math.exp %297 : vector<16x16xf32>
    %cst_130 = arith.constant 1.000000e+00 : f32
    %299 = vector.broadcast %cst_130 : f32 to vector<16x16xf32>
    %300 = arith.addf %299, %298 : vector<16x16xf32>
    %301 = arith.divf %299, %300 : vector<16x16xf32>
    %302 = vector.extract_strided_slice %292 {offsets = [0, 16], sizes = [16, 16], strides = [1, 1]} : vector<16x64xf32> to vector<16x16xf32>
    %303 = arith.negf %302 : vector<16x16xf32>
    %304 = math.exp %303 : vector<16x16xf32>
    %cst_131 = arith.constant 1.000000e+00 : f32
    %305 = vector.broadcast %cst_131 : f32 to vector<16x16xf32>
    %306 = arith.addf %305, %304 : vector<16x16xf32>
    %307 = arith.divf %305, %306 : vector<16x16xf32>
    %308 = vector.extract_strided_slice %292 {offsets = [0, 32], sizes = [16, 16], strides = [1, 1]} : vector<16x64xf32> to vector<16x16xf32>
    %309 = math.tanh %308 : vector<16x16xf32>
    %310 = vector.extract_strided_slice %292 {offsets = [0, 48], sizes = [16, 16], strides = [1, 1]} : vector<16x64xf32> to vector<16x16xf32>
    %311 = arith.negf %310 : vector<16x16xf32>
    %312 = math.exp %311 : vector<16x16xf32>
    %cst_132 = arith.constant 1.000000e+00 : f32
    %313 = vector.broadcast %cst_132 : f32 to vector<16x16xf32>
    %314 = arith.addf %313, %312 : vector<16x16xf32>
    %315 = arith.divf %313, %314 : vector<16x16xf32>
    %316 = arith.mulf %307, %252 : vector<16x16xf32>
    %317 = arith.mulf %301, %309 : vector<16x16xf32>
    %318 = arith.addf %316, %317 : vector<16x16xf32>
    %319 = math.tanh %318 : vector<16x16xf32>
    %320 = arith.mulf %315, %319 : vector<16x16xf32>
    %321 = vector.extract_strided_slice %295 {offsets = [0, 0], sizes = [16, 16], strides = [1, 1]} : vector<16x64xf32> to vector<16x16xf32>
    %322 = arith.negf %321 : vector<16x16xf32>
    %323 = math.exp %322 : vector<16x16xf32>
    %cst_133 = arith.constant 1.000000e+00 : f32
    %324 = vector.broadcast %cst_133 : f32 to vector<16x16xf32>
    %325 = arith.addf %324, %323 : vector<16x16xf32>
    %326 = arith.divf %324, %325 : vector<16x16xf32>
    %327 = vector.extract_strided_slice %295 {offsets = [0, 16], sizes = [16, 16], strides = [1, 1]} : vector<16x64xf32> to vector<16x16xf32>
    %328 = arith.negf %327 : vector<16x16xf32>
    %329 = math.exp %328 : vector<16x16xf32>
    %cst_134 = arith.constant 1.000000e+00 : f32
    %330 = vector.broadcast %cst_134 : f32 to vector<16x16xf32>
    %331 = arith.addf %330, %329 : vector<16x16xf32>
    %332 = arith.divf %330, %331 : vector<16x16xf32>
    %333 = vector.extract_strided_slice %295 {offsets = [0, 32], sizes = [16, 16], strides = [1, 1]} : vector<16x64xf32> to vector<16x16xf32>
    %334 = math.tanh %333 : vector<16x16xf32>
    %335 = vector.extract_strided_slice %295 {offsets = [0, 48], sizes = [16, 16], strides = [1, 1]} : vector<16x64xf32> to vector<16x16xf32>
    %336 = arith.negf %335 : vector<16x16xf32>
    %337 = math.exp %336 : vector<16x16xf32>
    %cst_135 = arith.constant 1.000000e+00 : f32
    %338 = vector.broadcast %cst_135 : f32 to vector<16x16xf32>
    %339 = arith.addf %338, %337 : vector<16x16xf32>
    %340 = arith.divf %338, %339 : vector<16x16xf32>
    %341 = arith.mulf %332, %277 : vector<16x16xf32>
    %342 = arith.mulf %326, %334 : vector<16x16xf32>
    %343 = arith.addf %341, %342 : vector<16x16xf32>
    %344 = math.tanh %343 : vector<16x16xf32>
    %345 = arith.mulf %340, %344 : vector<16x16xf32>
    %346 = arith.truncf %320 : vector<16x16xf32> to vector<16x16xbf16>
    %c96 = arith.constant 96 : index
    %c0_136 = arith.constant 0 : index
    %347 = vector.load %arg6[%c96, %c0_136] : memref<128x8xbf16, #tpu.memory_space<vmem>>, vector<16x8xbf16>
    %cst_137 = arith.constant dense<0.000000e+00> : vector<16x8xf32>
    %348 = tpu.matmul %346, %347, %cst_137 {dimension_numbers = #tpu.dot_dimension_numbers<[1], [0], [0], [1], [0, 0, 1, 1], [], []>} : vector<16x16xbf16>, vector<16x8xbf16>, vector<16x8xf32> -> vector<16x8xf32>
    %349 = arith.addf %287, %348 : vector<16x8xf32>
    %350 = arith.truncf %345 : vector<16x16xf32> to vector<16x16xbf16>
    %c16_138 = arith.constant 16 : index
    %c0_139 = arith.constant 0 : index
    %351 = vector.load %arg6[%c16_138, %c0_139] : memref<128x8xbf16, #tpu.memory_space<vmem>>, vector<16x8xbf16>
    %cst_140 = arith.constant dense<0.000000e+00> : vector<16x8xf32>
    %352 = tpu.matmul %350, %351, %cst_140 {dimension_numbers = #tpu.dot_dimension_numbers<[1], [0], [0], [1], [0, 0, 1, 1], [], []>} : vector<16x16xbf16>, vector<16x8xbf16>, vector<16x8xf32> -> vector<16x8xf32>
    %353 = arith.addf %349, %352 : vector<16x8xf32>
    %cst_141 = arith.constant 0.000000e+00 : f32
    %354 = vector.broadcast %cst_141 : f32 to vector<16x8xf32>
    %355 = arith.maximumf %353, %354 : vector<16x8xf32>
    %356 = arith.truncf %355 : vector<16x8xf32> to vector<16x8xbf16>
    %c0_142 = arith.constant 0 : index
    %c0_143 = arith.constant 0 : index
    %357 = vector.load %arg7[%c0_142, %c0_143] : memref<8x8xbf16, #tpu.memory_space<vmem>>, vector<8x8xbf16>
    %cst_144 = arith.constant dense<0.000000e+00> : vector<16x8xf32>
    %358 = tpu.matmul %356, %357, %cst_144 {dimension_numbers = #tpu.dot_dimension_numbers<[1], [0], [0], [1], [0, 0, 1, 1], [], []>} : vector<16x8xbf16>, vector<8x8xbf16>, vector<16x8xf32> -> vector<16x8xf32>
    %c0_145 = arith.constant 0 : index
    %c512 = arith.constant 512 : index
    %359 = vector.load %arg9[%c0_145, %c512] : memref<1x768xf32, #tpu.memory_space<vmem>>, vector<1x8xf32>
    %360 = vector.broadcast %359 : vector<1x8xf32> to vector<16x8xf32>
    %361 = arith.addf %358, %360 : vector<16x8xf32>
    %cst_146 = arith.constant 0.000000e+00 : f32
    %362 = vector.broadcast %cst_146 : f32 to vector<16x8xf32>
    %363 = arith.maximumf %361, %362 : vector<16x8xf32>
    %364 = arith.truncf %363 : vector<16x8xf32> to vector<16x8xbf16>
    %c0_147 = arith.constant 0 : index
    %c0_148 = arith.constant 0 : index
    %365 = vector.load %arg8[%c0_147, %c0_148] : memref<8x1xbf16, #tpu.memory_space<vmem>>, vector<8x1xbf16>
    %cst_149 = arith.constant dense<0.000000e+00> : vector<16x1xf32>
    %366 = tpu.matmul %364, %365, %cst_149 {dimension_numbers = #tpu.dot_dimension_numbers<[1], [0], [0], [1], [0, 0, 1, 1], [], []>} : vector<16x8xbf16>, vector<8x1xbf16>, vector<16x1xf32> -> vector<16x1xf32>
    %c0_150 = arith.constant 0 : index
    %c640 = arith.constant 640 : index
    %367 = vector.load %arg9[%c0_150, %c640] : memref<1x768xf32, #tpu.memory_space<vmem>>, vector<1x1xf32>
    %368 = vector.broadcast %367 : vector<1x1xf32> to vector<16x1xf32>
    %369 = arith.addf %366, %368 : vector<16x1xf32>
    %c0_151 = arith.constant 0 : index
    %c0_152 = arith.constant 0 : index
    %370 = vector.load %arg10[%c0_151, %c0_152] : memref<16x1xf32, #tpu.memory_space<vmem>>, vector<16x1xf32>
    tpu.vector_store %arg10[%c0_151, %c0_152], %369 {strides = array<i32>} : memref<16x1xf32, #tpu.memory_space<vmem>>, vector<16x1xf32>,
    return
  }
  func.func @transform_0(%arg0: i32) -> (i32, i32, i32) {
    %c0_i32 = arith.constant 0 : i32
    %c0_i32_0 = arith.constant 0 : i32
    %c0_i32_1 = arith.constant 0 : i32
    return %c0_i32, %arg0, %c0_i32_0 : i32, i32, i32
  }
  func.func @transform_1(%arg0: i32) -> (i32, i32) {
    %c0_i32 = arith.constant 0 : i32
    %c0_i32_0 = arith.constant 0 : i32
    %c0_i32_1 = arith.constant 0 : i32
    return %c0_i32, %c0_i32_0 : i32, i32
  }
  func.func @transform_2(%arg0: i32) -> (i32, i32) {
    %c0_i32 = arith.constant 0 : i32
    %c0_i32_0 = arith.constant 0 : i32
    %c0_i32_1 = arith.constant 0 : i32
    return %c0_i32, %c0_i32_0 : i32, i32
  }
  func.func @transform_3(%arg0: i32) -> (i32, i32) {
    %c0_i32 = arith.constant 0 : i32
    %c0_i32_0 = arith.constant 0 : i32
    %c0_i32_1 = arith.constant 0 : i32
    return %c0_i32, %c0_i32_0 : i32, i32
  }
  func.func @transform_4(%arg0: i32) -> (i32, i32) {
    %c0_i32 = arith.constant 0 : i32
    %c0_i32_0 = arith.constant 0 : i32
    %c0_i32_1 = arith.constant 0 : i32
    return %c0_i32, %c0_i32_0 : i32, i32
  }
  func.func @transform_5(%arg0: i32) -> (i32, i32) {
    %c0_i32 = arith.constant 0 : i32
    %c0_i32_0 = arith.constant 0 : i32
    %c0_i32_1 = arith.constant 0 : i32
    return %c0_i32, %c0_i32_0 : i32, i32
  }
  func.func @transform_6(%arg0: i32) -> (i32, i32) {
    %c0_i32 = arith.constant 0 : i32
    %c0_i32_0 = arith.constant 0 : i32
    %c0_i32_1 = arith.constant 0 : i32
    return %c0_i32, %c0_i32_0 : i32, i32
  }
  func.func @transform_7(%arg0: i32) -> (i32, i32) {
    %c0_i32 = arith.constant 0 : i32
    %c0_i32_0 = arith.constant 0 : i32
    %c0_i32_1 = arith.constant 0 : i32
    return %c0_i32, %c0_i32_0 : i32, i32
  }
  func.func @transform_8(%arg0: i32) -> (i32, i32) {
    %c0_i32 = arith.constant 0 : i32
    %c0_i32_0 = arith.constant 0 : i32
    %c0_i32_1 = arith.constant 0 : i32
    return %c0_i32, %c0_i32_0 : i32, i32
  }
  func.func @transform_9(%arg0: i32) -> (i32, i32) {
    %c0_i32 = arith.constant 0 : i32
    %c0_i32_0 = arith.constant 0 : i32
    return %arg0, %c0_i32 : i32, i32
  }
}

</mosaic_0001>

<bundles_post_ra>
// kernel: deepfamq_forward.1
= control target key start
LH: loop header
LB: loop body
LE: loop exit
PB: predicated region body
PF: predicated region fallthrough
CT: control target
= control target key end

     0   :  { %s8226_s30 = smov 0   ;;  %s8228_s10 = smov 0   ;;  %s9693_s0 = inlined_call_operand.vmem [shape: bf16[36,32,4], index: 0, kind: input, shape index: {}]   ;;  %s9694_s1 = inlined_call_operand.vmem [shape: bf16[20,16], index: 1, kind: input, shape index: {}]   ;;  %s9695_s2 = inlined_call_operand.vmem [shape: bf16[80,16], index: 2, kind: input, shape index: {}]   ;;  %s9696_s3 = inlined_call_operand.vmem [shape: bf16[16,128], index: 3, kind: input, shape index: {}]   ;;  %s9697_s4 = inlined_call_operand.vmem [shape: f32[32,128], index: 4, kind: input, shape index: {}]   ;;  %s9698_s5 = inlined_call_operand.vmem [shape: bf16[128,8], index: 5, kind: input, shape index: {}]   ;;  %s9699_s6 = inlined_call_operand.vmem [shape: bf16[8,8], index: 6, kind: input, shape index: {}]   ;;  %s9700_s7 = inlined_call_operand.vmem [shape: bf16[8,1], index: 7, kind: input, shape index: {}]   ;;  %s9701_s8 = inlined_call_operand.vmem [shape: f32[1,768], index: 8, kind: input, shape index: {}]   ;;  %s9702_s9 = inlined_call_operand.vmem [shape: f32[32,1], index: 9, kind: output, shape index: {}]  }
   0x1   :  { %s8230_s11 = smov 0  }
   0x2 LB: > { %s6219_s12 = sadd.s32 4294967295, %s8167_s11   ;;  %s8243_s13 = sadd.s32 1, %s8167_s11   ;;  %s8167_s11 = sphi %s8230_s11, %s9760_s11   ;;  %s8163_s10 = sphi %s8228_s10, %s9759_s10   ;;  %s8159_s30 = sphi %s8226_s30, %s9758_s30  }
   0x3   : > { %s23_s14 = ssub.s32 %s8167_s11, %s8243_s13  ;;  %s26_s15 = sadd.s32 1, %s8163_s10 }
   0x4   : > { %p24_p0 = scmp.eq.s32.totalorder %s23_s14, 0  ;;  %p33_p1 = scmp.ne.s32.totalorder %s8163_s10, %s8159_s30 }
   0x5   : > { %p34_p2 = scmp.eq.s32.totalorder %s8167_s11, 0  ;;  %p6222_p4 = scmp.ge.s32.totalorder %s8167_s11, 2 }
   0x6   : > { %s8252_s16 = scalar_select %p24_p0, %s8163_s10, %s26_s15  }
   0x7   : > { %p35_p3 = por %p34_p2, %p33_p1  ;;  %277 = sbr.rel (%p6222_p4) target bundleno = 36 (0x24), region = 48 }
   0xe   : > { %280 = sbr.rel (!%p35_p3) target bundleno = 36 (0x24), region = 52  ;;  %s282_s17 = sand.u32 (%p35_p3), 1, %s8163_s10  }
   0xf   : > { %s6564_s18 = sshll.u32 (%p35_p3), %s8167_s11, 3  ;;  %s7932_s19 = smul.u32 (%p35_p3), 288, %s282_s17 }
  0x10   : > { %s8260_s22 = scalar_lea.vmem (%p35_p3), %s9693_s0, %s6564_s18 }
  0x11   : > { %v303_v0 = vld [vmem:[%s8260_s22] sm:$0xff] (%p35_p3)   ;;  %v307_v1 = vld [vmem:[%s8260_s22 + $0x10] sm:$0xff] (%p35_p3)   ;;  %s8268_s23 = scalar_lea.vmem (%p35_p3), [#allocation5], %s7932_s19 }
  0x12   : > { %v311_v2 = vld [vmem:[%s8260_s22 + $0x20] sm:$0xff] (%p35_p3)   ;;  %v315_v3 = vld [vmem:[%s8260_s22 + $0x30] sm:$0xff] (%p35_p3)   ;;  %304 = vst [vmem:[%s8268_s23] sm:$0xff] (%p35_p3), %v303_v0   ;;  %308 = vst [vmem:[%s8268_s23 + $0x8] sm:$0xff] (%p35_p3), %v307_v1  }
  0x13   : > { %v319_v4 = vld [vmem:[%s8260_s22 + $0x40] sm:$0xff] (%p35_p3)   ;;  %v323_v5 = vld [vmem:[%s8260_s22 + $0x50] sm:$0xff] (%p35_p3)   ;;  %312 = vst [vmem:[%s8268_s23 + $0x10] sm:$0xff] (%p35_p3), %v311_v2   ;;  %316 = vst [vmem:[%s8268_s23 + $0x18] sm:$0xff] (%p35_p3), %v315_v3  }
  0x14   : > { %320 = vst [vmem:[%s8268_s23 + $0x20] sm:$0xff] (%p35_p3), %v319_v4   ;;  %324 = vst [vmem:[%s8268_s23 + $0x28] sm:$0xff] (%p35_p3), %v323_v5   ;;  %v327_v6 = vld [vmem:[%s8260_s22 + $0x60] sm:$0xff] (%p35_p3)   ;;  %v331_v7 = vld [vmem:[%s8260_s22 + $0x70] sm:$0xff] (%p35_p3)  }
  0x15   : > { %v335_v8 = vld [vmem:[%s8260_s22 + $0x80] sm:$0xff]   ;;  %328 = vst [vmem:[%s8268_s23 + $0x30] sm:$0xff] %v327_v6   ;;  %332 = vst [vmem:[%s8268_s23 + $0x38] sm:$0xff] %v331_v7   ;;  %v339_v9 = vld [vmem:[%s8260_s22 + $0x90] sm:$0xff]  }
  0x16   : > { %336 = vst [vmem:[%s8268_s23 + $0x40] sm:$0xff] %v335_v8   ;;  %v343_v10 = vld [vmem:[%s8260_s22 + $0xa0] sm:$0xff]   ;;  %v347_v11 = vld [vmem:[%s8260_s22 + $0xb0] sm:$0xff]   ;;  %340 = vst [vmem:[%s8268_s23 + $0x48] sm:$0xff] %v339_v9  }
  0x17   : > { %344 = vst [vmem:[%s8268_s23 + $0x50] sm:$0xff] %v343_v10   ;;  %348 = vst [vmem:[%s8268_s23 + $0x58] sm:$0xff] %v347_v11   ;;  %v351_v12 = vld [vmem:[%s8260_s22 + $0xc0] sm:$0xff]   ;;  %v355_v13 = vld [vmem:[%s8260_s22 + $0xd0] sm:$0xff]  }
  0x18   : > { %v359_v14 = vld [vmem:[%s8260_s22 + $0xe0] sm:$0xff]   ;;  %352 = vst [vmem:[%s8268_s23 + $0x60] sm:$0xff] %v351_v12   ;;  %356 = vst [vmem:[%s8268_s23 + $0x68] sm:$0xff] %v355_v13   ;;  %v363_v15 = vld [vmem:[%s8260_s22 + $0xf0] sm:$0xff]  }
  0x19   : > { %360 = vst [vmem:[%s8268_s23 + $0x70] sm:$0xff] %v359_v14   ;;  %v367_v16 = vld [vmem:[%s8260_s22 + $0x100] sm:$0xff]   ;;  %v371_v17 = vld [vmem:[%s8260_s22 + $0x110] sm:$0xff]   ;;  %364 = vst [vmem:[%s8268_s23 + $0x78] sm:$0xff] %v363_v15  }
  0x1a   : > { %368 = vst [vmem:[%s8268_s23 + $0x80] sm:$0xff] %v367_v16   ;;  %372 = vst [vmem:[%s8268_s23 + $0x88] sm:$0xff] %v371_v17   ;;  %v375_v18 = vld [vmem:[%s8260_s22 + $0x120] sm:$0xff]   ;;  %v379_v19 = vld [vmem:[%s8260_s22 + $0x130] sm:$0xff]  }
  0x1b   : > { %v383_v20 = vld [vmem:[%s8260_s22 + $0x140] sm:$0xff]   ;;  %376 = vst [vmem:[%s8268_s23 + $0x90] sm:$0xff] %v375_v18   ;;  %380 = vst [vmem:[%s8268_s23 + $0x98] sm:$0xff] %v379_v19   ;;  %v387_v21 = vld [vmem:[%s8260_s22 + $0x150] sm:$0xff]  }
  0x1c   : > { %384 = vst [vmem:[%s8268_s23 + $0xa0] sm:$0xff] %v383_v20   ;;  %v391_v22 = vld [vmem:[%s8260_s22 + $0x160] sm:$0xff]   ;;  %v395_v23 = vld [vmem:[%s8260_s22 + $0x170] sm:$0xff]   ;;  %388 = vst [vmem:[%s8268_s23 + $0xa8] sm:$0xff] %v387_v21  }
  0x1d   : > { %392 = vst [vmem:[%s8268_s23 + $0xb0] sm:$0xff] %v391_v22   ;;  %396 = vst [vmem:[%s8268_s23 + $0xb8] sm:$0xff] %v395_v23   ;;  %v399_v24 = vld [vmem:[%s8260_s22 + $0x180] sm:$0xff]   ;;  %v403_v25 = vld [vmem:[%s8260_s22 + $0x190] sm:$0xff]  }
  0x1e   : > { %v407_v26 = vld [vmem:[%s8260_s22 + $0x1a0] sm:$0xff]   ;;  %400 = vst [vmem:[%s8268_s23 + $0xc0] sm:$0xff] %v399_v24   ;;  %404 = vst [vmem:[%s8268_s23 + $0xc8] sm:$0xff] %v403_v25   ;;  %v411_v27 = vld [vmem:[%s8260_s22 + $0x1b0] sm:$0xff]  }
  0x1f   : > { %408 = vst [vmem:[%s8268_s23 + $0xd0] sm:$0xff] %v407_v26   ;;  %v415_v28 = vld [vmem:[%s8260_s22 + $0x1c0] sm:$0xff]   ;;  %v419_v29 = vld [vmem:[%s8260_s22 + $0x1d0] sm:$0xff]   ;;  %412 = vst [vmem:[%s8268_s23 + $0xd8] sm:$0xff] %v411_v27  }
  0x20   : > { %416 = vst [vmem:[%s8268_s23 + $0xe0] sm:$0xff] %v415_v28   ;;  %420 = vst [vmem:[%s8268_s23 + $0xe8] sm:$0xff] %v419_v29   ;;  %v423_v30 = vld [vmem:[%s8260_s22 + $0x1e0] sm:$0xff]   ;;  %v427_v31 = vld [vmem:[%s8260_s22 + $0x1f0] sm:$0xff]  }
  0x21   : > { %v431_v32 = vld [vmem:[%s8260_s22 + $0x200] sm:$0xff]   ;;  %424 = vst [vmem:[%s8268_s23 + $0xf0] sm:$0xff] %v423_v30   ;;  %428 = vst [vmem:[%s8268_s23 + $0xf8] sm:$0xff] %v427_v31   ;;  %v435_v33 = vld [vmem:[%s8260_s22 + $0x210] sm:$0xff]  }
  0x22   : > { %432 = vst [vmem:[%s8268_s23 + $0x100] sm:$0xff] %v431_v32   ;;  %v439_v34 = vld [vmem:[%s8260_s22 + $0x220] sm:$0xff]   ;;  %v443_v35 = vld [vmem:[%s8260_s22 + $0x230] sm:$0xff]   ;;  %436 = vst [vmem:[%s8268_s23 + $0x108] sm:$0xff] %v435_v33  }
  0x23   : > { %440 = vst [vmem:[%s8268_s23 + $0x110] sm:$0xff] %v439_v34   ;;  %444 = vst [vmem:[%s8268_s23 + $0x118] sm:$0xff] %v443_v35  }
  0x24 PF: > { %p6225_p5 = scmp.ge.s32.totalorder %s8167_s11, 1  ;;  %p612_p6 = scmp.lt.s32.totalorder %s8167_s11, 3 }
  0x26   : > { %p613_p7 = pnand %p6225_p5, %p612_p6 }
  0x28   : > { %616 = sbr.rel (%p613_p7) target bundleno = 4800 (0x12c0), region = 93 }
  0x2f   : > { %v8341_v36 = vld [vmem:[%s9694_s1] sm:$0x3]  ;;  %vm1143_vm0 = vcmask 1041408   ;;  %vm662_vm1 = vcmask 31744   ;;  %s619_s26 = sand.u32 1, %s8159_s30   ;;  %v8169_v38 = vmov 0  }
  0x30   : > { %7927 = vmatprep.subr.msk.bf16.mxu0 %vm1143_vm0, %v8341_v36  ;;  %v8348_v37 = vsel %vm1143_vm0, %v8341_v36, 0  ;;  %663 = vst.msk [vmem:[#allocation2] sm:$0xff] %vm662_vm1, %v8169_v38  ;;  %664 = vst.msk [vmem:[#allocation2 + $0x8] sm:$0xff] %vm662_vm1, %v8169_v38  ;;  %v1831_v39 = vld [vmem:[%s9694_s1 + $0x4] sm:$0x3]  ;;  %s7933_s29 = smul.u32 288, %s619_s26 }
  0x31   : > { %989 = vst.msk [vmem:[#allocation2 + $0x130] sm:$0xff] %vm662_vm1, %v8169_v38  ;;  %990 = vst.msk [vmem:[#allocation2 + $0x138] sm:$0xff] %vm662_vm1, %v8169_v38  ;;  %6939 = vmatpush3.bf16.msra.mxu0 %v8348_v37  ;;  %v8365_v40 = vld [vmem:[%s9694_s1 + $0x4] ss:$0 sps:$4 sm:$0xcc]   ;;  %v1941_v47 = vsel %vm1143_vm0, %v1831_v39, 0 }
  0x32   : > { %7929 = vmatprep.subr.msk.bf16.mxu0 %vm1143_vm0, %v1831_v39  ;;  %s8368_s15 = scalar_lea.vmem [#allocation5], %s7933_s29  ;;  %v2376_v48 = vrot.slane %v8365_v40, 2  ;;  %v8562_v40 = vld [vmem:[%s9694_s1 + $0x8] sm:$0x3]  ;;  %vm3620_vm2 = vcmask 130048   ;;  %s8171_s14 = smov 96  }
  0x33   : > { %v7965_v41 = vld [vmem:[%s8368_s15] sm:$0xff]   ;;  %v7966_v42 = vld [vmem:[%s8368_s15 + $0x8] sm:$0xff]   ;;  %v7967_v43 = vld [vmem:[%s8368_s15 + $0x10] sm:$0xff]   ;;  %3621 = vst.msk [vmem:[#allocation3] sm:$0xff] %vm3620_vm2, %v8169_v38  ;;  %s8173_s17 = smov 32   ;;  %vm8174_vm3 = vmmov 0  }
  0x34   : > { %953 = vst.msk [vmem:[#allocation2 + $0x10] sm:$0xff] %vm662_vm1, %v7965_v41  ;;  %954 = vst.msk [vmem:[#allocation2 + $0x18] sm:$0xff] %vm662_vm1, %v7966_v42  ;;  %v7968_v44 = vld [vmem:[%s8368_s15 + $0x18] sm:$0xff]   ;;  %v7969_v49 = vld [vmem:[%s8368_s15 + $0x20] sm:$0xff]   ;;  %s8175_s20 = smov 80   ;;  %vm4788_vm4 = vcmask 261120  }
  0x35   : > { %955 = vst.msk [vmem:[#allocation2 + $0x20] sm:$0xff] %vm662_vm1, %v7967_v43  ;;  %956 = vst.msk [vmem:[#allocation2 + $0x28] sm:$0xff] %vm662_vm1, %v7968_v44  ;;  %v7970_v50 = vld [vmem:[%s8368_s15 + $0x28] sm:$0xff]   ;;  %v7971_v51 = vld [vmem:[%s8368_s15 + $0x30] sm:$0xff]   ;;  %v2486_v44 = vsel %vm1143_vm0, %v2376_v48, 0  ;;  %vm6051_vm5 = vcmask 1043456  }
  0x36   : > { %957 = vst.msk [vmem:[#allocation2 + $0x30] sm:$0xff] %vm662_vm1, %v7969_v49  ;;  %958 = vst.msk [vmem:[#allocation2 + $0x38] sm:$0xff] %vm662_vm1, %v7970_v50  ;;  %v7972_v52 = vld [vmem:[%s8368_s15 + $0x38] sm:$0xff]   ;;  %v7973_v54 = vld [vmem:[%s8368_s15 + $0x40] sm:$0xff]   ;;  %vm6047_vm6 = vcmask 64512   ;;  %s6226_s27 = sshll.u32 %s6219_s12, 1 }
  0x37   : > { %v992_v45 = vld [vmem:[#allocation2] sm:$0xff]  ;;  %v993_v46 = vld [vmem:[#allocation2 + $0x8] sm:$0xff]  ;;  %959 = vst.msk [vmem:[#allocation2 + $0x40] sm:$0xff] %vm662_vm1, %v7971_v51  ;;  %960 = vst.msk [vmem:[#allocation2 + $0x48] sm:$0xff] %vm662_vm1, %v7972_v52  ;;  %p656_p8 = scmp.lt.s32.totalorder %s6226_s27, 3  ;;  %vm6154_vm7 = vcmask 7168  }
  0x38   : > { %6940 = vmatprep.mubr.msk.bf16.mxu0 %vm662_vm1, %v992_v45  ;;  %6866 = vmatprep.mubr.msk.bf16.mxu1 %vm662_vm1, %v993_v46  ;;  %961 = vst.msk [vmem:[#allocation2 + $0x50] sm:$0xff] %vm662_vm1, %v7973_v54  ;;  %v7974_v56 = vld [vmem:[%s8368_s15 + $0x48] sm:$0xff]   ;;  %v7975_v58 = vld [vmem:[%s8368_s15 + $0x50] sm:$0xff]   ;;  %v7976_v59 = vld [vmem:[%s8368_s15 + $0x58] sm:$0xff]  }
  0x39   : > { %6941 = vmatmul.mubr.msk.bf16.vlgmr.msra.gmra.mrb[0].mxu0 %vm662_vm1, %v993_v46  ;;  %962 = vst.msk [vmem:[#allocation2 + $0x58] sm:$0xff] %vm662_vm1, %v7974_v56  ;;  %963 = vst.msk [vmem:[#allocation2 + $0x60] sm:$0xff] %vm662_vm1, %v7975_v58  ;;  %v7977_v60 = vld [vmem:[%s8368_s15 + $0x60] sm:$0xff]   ;;  %v7978_v61 = vld [vmem:[%s8368_s15 + $0x68] sm:$0xff]   ;;  %s9762_s27 = smov (!%p656_p8, %s6226_s27), 3 }
  0x3a   : > { %7013 = vmatpush3.bf16.msra.mxu0 %v1941_v47  ;;  %964 = vst.msk [vmem:[#allocation2 + $0x68] sm:$0xff] %vm662_vm1, %v7976_v59  ;;  %965 = vst.msk [vmem:[#allocation2 + $0x70] sm:$0xff] %vm662_vm1, %v7977_v60  ;;  %v7979_v63 = vld [vmem:[%s8368_s15 + $0x70] sm:$0xff]   ;;  %v7980_v0 = vld [vmem:[%s8368_s15 + $0x78] sm:$0xff]   ;;  %s6227_s28 = sshll.u32 %s9762_s27, 3 }
  0x3b   : > { %7930 = vmatprep.subr.msk.bf16.mxu0 %vm1143_vm0, %v2376_v48  ;;  %v8392_v53 = vld [vmem:[#allocation2 + $0x10] sm:$0xff]  ;;  %v8399_v55 = vld [vmem:[#allocation2 + $0x18] sm:$0xff]  ;;  %966 = vst.msk [vmem:[#allocation2 + $0x78] sm:$0xff] %vm662_vm1, %v7978_v61  ;;  %967 = vst.msk [vmem:[#allocation2 + $0x80] sm:$0xff] %vm662_vm1, %v7979_v63  ;;  %v3027_v61 = vsel %vm1143_vm0, %v8562_v40, 0  ;;  %s659_s19 = scalar_lea.vmem %s9702_s9, %s6227_s28 }
  0x3c   : > { %6944 = vmatprep.mubr.msk.bf16.mxu0 %vm662_vm1, %v8392_v53  ;;  %v8403_v57 = vld [vmem:[#allocation2 + $0x20] sm:$0xff]  ;;  %v8417_v62 = vld [vmem:[#allocation2 + $0x28] sm:$0xff]  ;;  %968 = vst.msk [vmem:[#allocation2 + $0x88] sm:$0xff] %vm662_vm1, %v7980_v0  ;;  %v7983_v4 = vld [vmem:[%s8368_s15 + $0x90] sm:$0xff]  }
  0x3d   : > { %v8422_v1 = vld [vmem:[#allocation2 + $0x30] sm:$0xff]  ;;  %v7981_v2 = vld [vmem:[%s8368_s15 + $0x80] sm:$0xff]   ;;  %v7982_v3 = vld [vmem:[%s8368_s15 + $0x88] sm:$0xff]   ;;  %971 = vst.msk [vmem:[#allocation2 + $0xa0] sm:$0xff] %vm662_vm1, %v7983_v4 }
  0x3e   : > { %969 = vst.msk [vmem:[#allocation2 + $0x90] sm:$0xff] %vm662_vm1, %v7981_v2  ;;  %970 = vst.msk [vmem:[#allocation2 + $0x98] sm:$0xff] %vm662_vm1, %v7982_v3  ;;  %v7984_v5 = vld [vmem:[%s8368_s15 + $0x98] sm:$0xff]   ;;  %v7985_v6 = vld [vmem:[%s8368_s15 + $0xa0] sm:$0xff]  }
  0x3f   : > { %972 = vst.msk [vmem:[#allocation2 + $0xa8] sm:$0xff] %vm662_vm1, %v7984_v5  ;;  %v8439_v7 = vld [vmem:[#allocation2 + $0x38] sm:$0xff]  ;;  %v7986_v8 = vld [vmem:[%s8368_s15 + $0xa8] sm:$0xff]   ;;  %v8442_v9 = vld [vmem:[#allocation2 + $0x40] sm:$0xff] }
  0x40   : > { %973 = vst.msk [vmem:[#allocation2 + $0xb0] sm:$0xff] %vm662_vm1, %v7985_v6  ;;  %v7987_v10 = vld [vmem:[%s8368_s15 + $0xb0] sm:$0xff]   ;;  %974 = vst.msk [vmem:[#allocation2 + $0xb8] sm:$0xff] %vm662_vm1, %v7986_v8  ;;  %v7988_v11 = vld [vmem:[%s8368_s15 + $0xb8] sm:$0xff]  }
  0x41   : > { %6945 = vmatmul.mubr.msk.bf16.gmra.mrb[4].mxu0 %vm662_vm1, %v8399_v55  ;;  %975 = vst.msk [vmem:[#allocation2 + $0xc0] sm:$0xff] %vm662_vm1, %v7987_v10  ;;  %976 = vst.msk [vmem:[#allocation2 + $0xc8] sm:$0xff] %vm662_vm1, %v7988_v11  ;;  %v8454_v12 = vld [vmem:[#allocation2 + $0x48] sm:$0xff]  ;;  %v8456_v13 = vld [vmem:[#allocation2 + $0x50] sm:$0xff] }
  0x42   : > { %6948 = vmatprep.mubr.msk.bf16.mxu0 %vm662_vm1, %v8403_v57  ;;  %v8462_v14 = vld [vmem:[#allocation2 + $0x58] sm:$0xff]  ;;  %v8464_v15 = vld [vmem:[#allocation2 + $0x60] sm:$0xff]  ;;  %v8470_v16 = vld [vmem:[#allocation2 + $0x68] sm:$0xff]  ;;  %3622 = vst.msk [vmem:[#allocation3 + $0x8] sm:$0xff] %vm3620_vm2, %v8169_v38 }
  0x43   : > { %v8472_v17 = vld [vmem:[#allocation2 + $0x70] sm:$0xff]  ;;  %v8478_v18 = vld [vmem:[#allocation2 + $0x78] sm:$0xff]  ;;  %v8480_v19 = vld [vmem:[#allocation2 + $0x80] sm:$0xff]  ;;  %3647 = vst.msk [vmem:[#allocation3 + $0x70] sm:$0xff] %vm3620_vm2, %v8169_v38 }
  0x44   : > { %v8486_v20 = vld [vmem:[#allocation2 + $0x88] sm:$0xff]  ;;  %v7990_v21 = vld [vmem:[%s8368_s15 + $0xc0] sm:$0xff]   ;;  %v7992_v25 = vld [vmem:[%s8368_s15 + $0xd0] sm:$0xff]   ;;  %3648 = vst.msk [vmem:[#allocation3 + $0x78] sm:$0xff] %vm3620_vm2, %v8169_v38 }
  0x45   : > { %v8489_v22 = vld [vmem:[#allocation2 + $0x90] sm:$0xff]  ;;  %v7991_v23 = vld [vmem:[%s8368_s15 + $0xc8] sm:$0xff]   ;;  %977 = vst.msk [vmem:[#allocation2 + $0xd0] sm:$0xff] %vm662_vm1, %v7990_v21  ;;  %v8498_v24 = vld [vmem:[#allocation2 + $0x98] sm:$0xff] }
  0x46   : > { %978 = vst.msk [vmem:[#allocation2 + $0xd8] sm:$0xff] %vm662_vm1, %v7991_v23  ;;  %v8501_v26 = vld [vmem:[#allocation2 + $0xa0] sm:$0xff]  ;;  %v7993_v27 = vld [vmem:[%s8368_s15 + $0xd8] sm:$0xff]   ;;  %979 = vst.msk [vmem:[#allocation2 + $0xe0] sm:$0xff] %vm662_vm1, %v7992_v25 }
  0x47   : > { %980 = vst.msk [vmem:[#allocation2 + $0xe8] sm:$0xff] %vm662_vm1, %v7993_v27  ;;  %v8510_v28 = vld [vmem:[#allocation2 + $0xa8] sm:$0xff]  ;;  %v7994_v29 = vld [vmem:[%s8368_s15 + $0xe0] sm:$0xff]   ;;  %v8513_v30 = vld [vmem:[#allocation2 + $0xb0] sm:$0xff] }
  0x48   : > { %v7995_v31 = vld [vmem:[%s8368_s15 + $0xe8] sm:$0xff]   ;;  %981 = vst.msk [vmem:[#allocation2 + $0xf0] sm:$0xff] %vm662_vm1, %v7994_v29  ;;  %v8522_v32 = vld [vmem:[#allocation2 + $0xb8] sm:$0xff]  ;;  %v7996_v33 = vld [vmem:[%s8368_s15 + $0xf0] sm:$0xff]  }
  0x49   : > { %6949 = vmatmul.mubr.msk.bf16.gmra.mrb[8].mxu0 %vm662_vm1, %v8417_v62  ;;  %982 = vst.msk [vmem:[#allocation2 + $0xf8] sm:$0xff] %vm662_vm1, %v7995_v31  ;;  %v8525_v34 = vld [vmem:[#allocation2 + $0xc0] sm:$0xff]  ;;  %v7997_v35 = vld [vmem:[%s8368_s15 + $0xf8] sm:$0xff]   ;;  %983 = vst.msk [vmem:[#allocation2 + $0x100] sm:$0xff] %vm662_vm1, %v7996_v33 }
  0x4a   : > { %6952 = vmatprep.mubr.msk.bf16.mxu0 %vm662_vm1, %v8422_v1  ;;  %984 = vst.msk [vmem:[#allocation2 + $0x108] sm:$0xff] %vm662_vm1, %v7997_v35  ;;  %v8534_v39 = vld [vmem:[#allocation2 + $0xc8] sm:$0xff]  ;;  %v7998_v41 = vld [vmem:[%s8368_s15 + $0x100] sm:$0xff]   ;;  %v8000_v43 = vld [vmem:[%s8368_s15 + $0x110] sm:$0xff]  }
  0x4b   : > { %v7999_v42 = vld [vmem:[%s8368_s15 + $0x108] sm:$0xff]   ;;  %985 = vst.msk [vmem:[#allocation2 + $0x110] sm:$0xff] %vm662_vm1, %v7998_v41  ;;  %v8001_v45 = vld [vmem:[%s8368_s15 + $0x118] sm:$0xff]   ;;  %987 = vst.msk [vmem:[#allocation2 + $0x120] sm:$0xff] %vm662_vm1, %v8000_v43  ;;  %s8172_s15 = smov 16  }
  0x4c   : > { %986 = vst.msk [vmem:[#allocation2 + $0x118] sm:$0xff] %vm662_vm1, %v7999_v42  ;;  %988 = vst.msk [vmem:[#allocation2 + $0x128] sm:$0xff] %vm662_vm1, %v8001_v45  ;;  %v8002_v46 = vld [vmem:[%s9694_s1] ss:$0 sps:$4 sm:$0xcc]   ;;  %v8616_v49 = vld [vmem:[#allocation2 + $0xd0] sm:$0xff] }
  0x4d   : > { %v1034_v47 = vrot.slane %v8002_v46, 2  ;;  %v8003_v33 = vld [vmem:[%s9695_s2 + $0x8] sm:$0xff]  }
  0x4e   : > { %v8636_v50 = vld [vmem:[#allocation2 + $0xe8] sm:$0xff] }
  0x4f   : > { %7926 = vmatprep.subr.msk.bf16.mxu1 %vm1143_vm0, %v1034_v47  ;;  %v1145_v48 = vsel %vm1143_vm0, %v1034_v47, 0  ;;  %v8640_v51 = vld [vmem:[#allocation2 + $0xf0] sm:$0xff]  ;;  %v8967_v38 = vld [vmem:[#allocation3 + $0x8] sm:$0xff] }
  0x50   : > { %6865 = vmatpush3.bf16.msra.mxu1 %v1145_v48  ;;  %v8648_v52 = vld [vmem:[#allocation2 + $0xf8] sm:$0xff]  ;;  %9704 = vst [vmem:[#allocation6_spill] sm:$0xff] %v8967_v38 }
  0x51   : > { %6953 = vmatmul.mubr.msk.bf16.gmra.mrb[12].mxu0 %vm662_vm1, %v8439_v7  ;;  %7928 = vmatprep.subr.msk.bf16.mxu1 %vm1143_vm0, %v8341_v36  ;;  %v8624_v36 = vld [vmem:[#allocation2 + $0xd8] sm:$0xff]  ;;  %v8660_v54 = vld [vmem:[#allocation2 + $0x108] sm:$0xff] }
  0x52   : > { %6956 = vmatprep.mubr.msk.bf16.mxu0 %vm662_vm1, %v8442_v9  ;;  %v8664_v56 = vld [vmem:[#allocation2 + $0x110] sm:$0xff]  ;;  %v8676_v59 = vld [vmem:[#allocation2 + $0x120] sm:$0xff] }
  0x53   : > { %6867 = vmatmul.mubr.msk.bf16.vlgmr.msra.gmra.mrb[0].mxu1 %vm662_vm1, %v8392_v53  ;;  %v8672_v58 = vld [vmem:[#allocation2 + $0x118] sm:$0xff]  ;;  %v8684_v60 = vld [vmem:[#allocation2 + $0x128] sm:$0xff] }
  0x54   : > { %6870 = vmatprep.mubr.msk.bf16.mxu1 %vm662_vm1, %v8399_v55  ;;  %7511 = vmatpush3.bf16.msra.mxu1 %v8348_v37  ;;  %v8628_v37 = vld [vmem:[#allocation2 + $0xe0] sm:$0xff] }
  0x55   : > { %7234 = vmatprep.subr.bf16.mxu1 %v8003_v33 }
  0x59   : > { %6957 = vmatmul.mubr.msk.bf16.gmra.mrb[16].mxu0 %vm662_vm1, %v8454_v12 }
  0x5a   : > { %6960 = vmatprep.mubr.msk.bf16.mxu0 %vm662_vm1, %v8456_v13 }
  0x5b   : > { %6871 = vmatmul.mubr.msk.bf16.gmra.mrb[4].mxu1 %vm662_vm1, %v8403_v57 }
  0x5c   : > { %6874 = vmatprep.mubr.msk.bf16.mxu1 %vm662_vm1, %v8417_v62 }
  0x61   : > { %6961 = vmatmul.mubr.msk.bf16.gmra.mrb[20].mxu0 %vm662_vm1, %v8462_v14 }
  0x62   : > { %6964 = vmatprep.mubr.msk.bf16.mxu0 %vm662_vm1, %v8464_v15 }
  0x63   : > { %6875 = vmatmul.mubr.msk.bf16.gmra.mrb[8].mxu1 %vm662_vm1, %v8422_v1 }
  0x64   : > { %6878 = vmatprep.mubr.msk.bf16.mxu1 %vm662_vm1, %v8439_v7 }
  0x69   : > { %6965 = vmatmul.mubr.msk.bf16.gmra.mrb[24].mxu0 %vm662_vm1, %v8470_v16 }
  0x6a   : > { %6968 = vmatprep.mubr.msk.bf16.mxu0 %vm662_vm1, %v8472_v17 }
  0x6b   : > { %6879 = vmatmul.mubr.msk.bf16.gmra.mrb[12].mxu1 %vm662_vm1, %v8442_v9 }
  0x6c   : > { %6882 = vmatprep.mubr.msk.bf16.mxu1 %vm662_vm1, %v8454_v12 }
  0x71   : > { %6969 = vmatmul.mubr.msk.bf16.gmra.mrb[28].mxu0 %vm662_vm1, %v8478_v18 }
  0x72   : > { %6972 = vmatprep.mubr.msk.bf16.mxu0 %vm662_vm1, %v8480_v19 }
  0x73   : > { %6883 = vmatmul.mubr.msk.bf16.gmra.mrb[16].mxu1 %vm662_vm1, %v8456_v13 }
  0x74   : > { %6886 = vmatprep.mubr.msk.bf16.mxu1 %vm662_vm1, %v8462_v14 }
  0x79   : > { %6973 = vmatmul.mubr.msk.bf16.gmra.mrb[32].mxu0 %vm662_vm1, %v8486_v20 }
  0x7a   : > { %6976 = vmatprep.mubr.msk.bf16.mxu0 %vm662_vm1, %v8489_v22 }
  0x7b   : > { %6887 = vmatmul.mubr.msk.bf16.gmra.mrb[20].mxu1 %vm662_vm1, %v8464_v15 }
  0x7c   : > { %6890 = vmatprep.mubr.msk.bf16.mxu1 %vm662_vm1, %v8470_v16 }
  0x81   : > { %6977 = vmatmul.mubr.msk.bf16.gmra.mrb[36].mxu0 %vm662_vm1, %v8498_v24 }
  0x82   : > { %6980 = vmatprep.mubr.msk.bf16.mxu0 %vm662_vm1, %v8501_v26 }
  0x83   : > { %6891 = vmatmul.mubr.msk.bf16.gmra.mrb[24].mxu1 %vm662_vm1, %v8472_v17 }
  0x84   : > { %6894 = vmatprep.mubr.msk.bf16.mxu1 %vm662_vm1, %v8478_v18 }
  0x89   : > { %6981 = vmatmul.mubr.msk.bf16.gmra.mrb[40].mxu0 %vm662_vm1, %v8510_v28 }
  0x8a   : > { %6984 = vmatprep.mubr.msk.bf16.mxu0 %vm662_vm1, %v8513_v30 }
  0x8b   : > { %6895 = vmatmul.mubr.msk.bf16.gmra.mrb[28].mxu1 %vm662_vm1, %v8480_v19 }
  0x8c   : > { %6898 = vmatprep.mubr.msk.bf16.mxu1 %vm662_vm1, %v8486_v20 }
  0x91   : > { %6985 = vmatmul.mubr.msk.bf16.gmra.mrb[44].mxu0 %vm662_vm1, %v8522_v32 }
  0x92   : > { %6988 = vmatprep.mubr.msk.bf16.mxu0 %vm662_vm1, %v8525_v34 }
  0x93   : > { %6899 = vmatmul.mubr.msk.bf16.gmra.mrb[32].mxu1 %vm662_vm1, %v8489_v22 }
  0x94   : > { %6902 = vmatprep.mubr.msk.bf16.mxu1 %vm662_vm1, %v8498_v24 }
  0x99   : > { %6989 = vmatmul.mubr.msk.bf16.gmra.mrb[48].mxu0 %vm662_vm1, %v8534_v39 }
  0x9a   : > { %7014 = vmatprep.mubr.msk.bf16.mxu0 %vm662_vm1, %v8392_v53  ;;  %v8652_v53 = vld [vmem:[#allocation2 + $0x100] sm:$0xff] }
  0x9b   : > { %6903 = vmatmul.mubr.msk.bf16.gmra.mrb[36].mxu1 %vm662_vm1, %v8501_v26 }
  0x9c   : > { %6906 = vmatprep.mubr.msk.bf16.mxu1 %vm662_vm1, %v8510_v28 }
  0xa1   : > { %7015 = vmatmul.mubr.msk.bf16.vlgmr.msra.gmra.mrb[0].mxu0 %vm662_vm1, %v8399_v55 }
  0xa2   : > { %7087 = vmatpush3.bf16.msra.mxu0 %v2486_v44  ;;  %7018 = vmatprep.mubr.msk.bf16.mxu0 %vm662_vm1, %v8403_v57 }
  0xa3   : > { %7931 = vmatprep.subr.msk.bf16.mxu0 %vm1143_vm0, %v8562_v40  ;;  %6907 = vmatmul.mubr.msk.bf16.gmra.mrb[40].mxu1 %vm662_vm1, %v8513_v30 }
  0xa4   : > { %6910 = vmatprep.mubr.msk.bf16.mxu1 %vm662_vm1, %v8522_v32 }
  0xa9   : > { %7019 = vmatmul.mubr.msk.bf16.gmra.mrb[4].mxu0 %vm662_vm1, %v8417_v62 }
  0xaa   : > { %7022 = vmatprep.mubr.msk.bf16.mxu0 %vm662_vm1, %v8422_v1 }
  0xab   : > { %6911 = vmatmul.mubr.msk.bf16.gmra.mrb[44].mxu1 %vm662_vm1, %v8525_v34 }
  0xac   : > { %6914 = vmatprep.mubr.msk.bf16.mxu1 %vm662_vm1, %v8534_v39 }
  0xb1   : > { %7023 = vmatmul.mubr.msk.bf16.gmra.mrb[8].mxu0 %vm662_vm1, %v8439_v7 }
  0xb2   : > { %7026 = vmatprep.mubr.msk.bf16.mxu0 %vm662_vm1, %v8442_v9 }
  0xb3   : > { %6915 = vmatmul.mubr.msk.bf16.gmra.mrb[48].mxu1 %vm662_vm1, %v8616_v49 }
  0xb4   : > { %6918 = vmatprep.mubr.msk.bf16.mxu1 %vm662_vm1, %v8624_v36 }
  0xb9   : > { %7027 = vmatmul.mubr.msk.bf16.gmra.mrb[12].mxu0 %vm662_vm1, %v8454_v12 }
  0xba   : > { %7030 = vmatprep.mubr.msk.bf16.mxu0 %vm662_vm1, %v8456_v13 }
  0xbb   : > { %6919 = vmatmul.mubr.msk.bf16.gmra.mrb[52].mxu1 %vm662_vm1, %v8628_v37 }
  0xbc   : > { %6922 = vmatprep.mubr.msk.bf16.mxu1 %vm662_vm1, %v8636_v50 }
  0xc1   : > { %7031 = vmatmul.mubr.msk.bf16.gmra.mrb[16].mxu0 %vm662_vm1, %v8462_v14 }
  0xc2   : > { %7034 = vmatprep.mubr.msk.bf16.mxu0 %vm662_vm1, %v8464_v15 }
  0xc3   : > { %6923 = vmatmul.mubr.msk.bf16.gmra.mrb[56].mxu1 %vm662_vm1, %v8640_v51 }
  0xc4   : > { %6926 = vmatprep.mubr.msk.bf16.mxu1 %vm662_vm1, %v8648_v52 }
  0xc9   : > { %7035 = vmatmul.mubr.msk.bf16.gmra.mrb[20].mxu0 %vm662_vm1, %v8470_v16 }
  0xca   : > { %7038 = vmatprep.mubr.msk.bf16.mxu0 %vm662_vm1, %v8472_v17 }
  0xcb   : > { %6927 = vmatmul.mubr.msk.bf16.gmra.mrb[60].mxu1 %vm662_vm1, %v8652_v53 }
  0xcc   : > { %6930 = vmatprep.mubr.msk.bf16.mxu1 %vm662_vm1, %v8660_v54 }
  0xd1   : > { %7039 = vmatmul.mubr.msk.bf16.gmra.mrb[24].mxu0 %vm662_vm1, %v8478_v18 }
  0xd2   : > { %7042 = vmatprep.mubr.msk.bf16.mxu0 %vm662_vm1, %v8480_v19 }
  0xd3   : > { %6931 = vmatmul.mubr.msk.bf16.gmra.mrb[64].mxu1 %vm662_vm1, %v8664_v56 }
  0xd4   : > { %6934 = vmatprep.mubr.msk.bf16.mxu1 %vm662_vm1, %v8672_v58 }
  0xd9   : > { %7043 = vmatmul.mubr.msk.bf16.gmra.mrb[28].mxu0 %vm662_vm1, %v8486_v20 }
  0xda   : > { %7046 = vmatprep.mubr.msk.bf16.mxu0 %vm662_vm1, %v8489_v22 }
  0xdb   : > { %6935 = vmatmul.mubr.msk.bf16.gmra.mrb[68].mxu1 %vm662_vm1, %v8676_v59 }
  0xdc   : > { %6992 = vmatprep.mubr.msk.bf16.mxu1 %vm662_vm1, %v8616_v49 }
  0xe1   : > { %7047 = vmatmul.mubr.msk.bf16.gmra.mrb[32].mxu0 %vm662_vm1, %v8498_v24 }
  0xe2   : > { %7050 = vmatprep.mubr.msk.bf16.mxu0 %vm662_vm1, %v8501_v26 }
  0xe3   : > { %6993 = vmatmul.mubr.msk.bf16.vlgmr.msra.gmra.mrb[52].mxu1 %vm662_vm1, %v8624_v36 }
  0xe4   : > { %6996 = vmatprep.mubr.msk.bf16.mxu1 %vm662_vm1, %v8628_v37  ;;  %7235 = vmatpush3.bf16.msra.mxu1 %v8003_v33 }
  0xe9   : > { %7051 = vmatmul.mubr.msk.bf16.gmra.mrb[36].mxu0 %vm662_vm1, %v8510_v28 }
  0xea   : > { %7054 = vmatprep.mubr.msk.bf16.mxu0 %vm662_vm1, %v8513_v30 }
  0xeb   : > { %6997 = vmatmul.mubr.msk.bf16.gmra.mrb[56].mxu1 %vm662_vm1, %v8636_v50 }
  0xec   : > { %7000 = vmatprep.mubr.msk.bf16.mxu1 %vm662_vm1, %v8640_v51 }
  0xf1   : > { %7055 = vmatmul.mubr.msk.bf16.gmra.mrb[40].mxu0 %vm662_vm1, %v8522_v32 }
  0xf2   : > { %7058 = vmatprep.mubr.msk.bf16.mxu0 %vm662_vm1, %v8525_v34 }
  0xf3   : > { %7001 = vmatmul.mubr.msk.bf16.gmra.mrb[60].mxu1 %vm662_vm1, %v8648_v52 }
  0xf4   : > { %7004 = vmatprep.mubr.msk.bf16.mxu1 %vm662_vm1, %v8652_v53 }
  0xf9   : > { %7059 = vmatmul.mubr.msk.bf16.gmra.mrb[44].mxu0 %vm662_vm1, %v8534_v39 }
  0xfa   : > { %7062 = vmatprep.mubr.msk.bf16.mxu0 %vm662_vm1, %v8616_v49 }
  0xfb   : > { %7005 = vmatmul.mubr.msk.bf16.gmra.mrb[64].mxu1 %vm662_vm1, %v8660_v54 }
  0xfc   : > { %7008 = vmatprep.mubr.msk.bf16.mxu1 %vm662_vm1, %v8664_v56 }
 0x101   : > { %7063 = vmatmul.mubr.msk.bf16.gmra.mrb[48].mxu0 %vm662_vm1, %v8624_v36 }
 0x102   : > { %7066 = vmatprep.mubr.msk.bf16.mxu0 %vm662_vm1, %v8628_v37 }
 0x103   : > { %7009 = vmatmul.mubr.msk.bf16.gmra.mrb[68].mxu1 %vm662_vm1, %v8672_v58 }
 0x104   : > { %7236 = vmatprep.mubr.msk.bf16.mxu1 %vm3620_vm2, %v8967_v38 }
 0x109   : > { %7067 = vmatmul.mubr.msk.bf16.gmra.mrb[52].mxu0 %vm662_vm1, %v8636_v50 }
 0x10a   : > { %7070 = vmatprep.mubr.msk.bf16.mxu0 %vm662_vm1, %v8640_v51 }
 0x111   : > { %7071 = vmatmul.mubr.msk.bf16.gmra.mrb[56].mxu0 %vm662_vm1, %v8648_v52 }
 0x112   : > { %7074 = vmatprep.mubr.msk.bf16.mxu0 %vm662_vm1, %v8652_v53 }
 0x119   : > { %7075 = vmatmul.mubr.msk.bf16.gmra.mrb[60].mxu0 %vm662_vm1, %v8660_v54 }
 0x11a   : > { %7078 = vmatprep.mubr.msk.bf16.mxu0 %vm662_vm1, %v8664_v56 }
 0x121   : > { %7079 = vmatmul.mubr.msk.bf16.gmra.mrb[64].mxu0 %vm662_vm1, %v8672_v58 }
 0x122   : > { %7082 = vmatprep.mubr.msk.bf16.mxu0 %vm662_vm1, %v8676_v59 }
 0x126   : > { %v8834_v63 = vpop.f32.mrb[0].mxu1 }
 0x127   : > { %v8838_v0 = vpop.f32.mrb[1].mxu1 }
 0x128   : > { %v8840_v2 = vpop.f32.mrb[2].mxu1 }
 0x129   : > { %7083 = vmatmul.mubr.msk.bf16.gmra.mrb[68].mxu0 %vm662_vm1, %v8684_v60  ;;  %v8842_v3 = vpop.f32.mrb[3].mxu1 }
 0x12a   : > { %7088 = vmatprep.mubr.msk.bf16.mxu0 %vm662_vm1, %v8399_v55  ;;  %v8822_v55 = vld [vmem:[#allocation2 + $0x130] sm:$0xff] }
 0x131   : > { %7089 = vmatmul.mubr.msk.bf16.vlgmr.msra.gmra.mrb[0].mxu0 %vm662_vm1, %v8403_v57 }
 0x132   : > { %7161 = vmatpush3.bf16.msra.mxu0 %v3027_v61  ;;  %7092 = vmatprep.mubr.msk.bf16.mxu0 %vm662_vm1, %v8417_v62 }
 0x139   : > { %7093 = vmatmul.mubr.msk.bf16.gmra.mrb[4].mxu0 %vm662_vm1, %v8422_v1 }
 0x13a   : > { %7096 = vmatprep.mubr.msk.bf16.mxu0 %vm662_vm1, %v8439_v7 }
 0x141   : > { %7097 = vmatmul.mubr.msk.bf16.gmra.mrb[8].mxu0 %vm662_vm1, %v8442_v9 }
 0x142   : > { %7100 = vmatprep.mubr.msk.bf16.mxu0 %vm662_vm1, %v8454_v12 }
 0x149   : > { %7101 = vmatmul.mubr.msk.bf16.gmra.mrb[12].mxu0 %vm662_vm1, %v8456_v13 }
 0x14a   : > { %7104 = vmatprep.mubr.msk.bf16.mxu0 %vm662_vm1, %v8462_v14 }
 0x151   : > { %7105 = vmatmul.mubr.msk.bf16.gmra.mrb[16].mxu0 %vm662_vm1, %v8464_v15 }
 0x152   : > { %7108 = vmatprep.mubr.msk.bf16.mxu0 %vm662_vm1, %v8470_v16 }
 0x159   : > { %7109 = vmatmul.mubr.msk.bf16.gmra.mrb[20].mxu0 %vm662_vm1, %v8472_v17 }
 0x15a   : > { %7112 = vmatprep.mubr.msk.bf16.mxu0 %vm662_vm1, %v8478_v18 }
 0x161   : > { %7113 = vmatmul.mubr.msk.bf16.gmra.mrb[24].mxu0 %vm662_vm1, %v8480_v19 }
 0x162   : > { %7116 = vmatprep.mubr.msk.bf16.mxu0 %vm662_vm1, %v8486_v20 }
 0x169   : > { %7117 = vmatmul.mubr.msk.bf16.gmra.mrb[28].mxu0 %vm662_vm1, %v8489_v22 }
 0x16a   : > { %7120 = vmatprep.mubr.msk.bf16.mxu0 %vm662_vm1, %v8498_v24 }
 0x171   : > { %7121 = vmatmul.mubr.msk.bf16.gmra.mrb[32].mxu0 %vm662_vm1, %v8501_v26 }
 0x172   : > { %7124 = vmatprep.mubr.msk.bf16.mxu0 %vm662_vm1, %v8510_v28 }
 0x179   : > { %7125 = vmatmul.mubr.msk.bf16.gmra.mrb[36].mxu0 %vm662_vm1, %v8513_v30 }
 0x17a   : > { %7128 = vmatprep.mubr.msk.bf16.mxu0 %vm662_vm1, %v8522_v32 }
 0x181   : > { %7129 = vmatmul.mubr.msk.bf16.gmra.mrb[40].mxu0 %vm662_vm1, %v8525_v34 }
 0x182   : > { %7132 = vmatprep.mubr.msk.bf16.mxu0 %vm662_vm1, %v8534_v39 }
 0x189   : > { %7133 = vmatmul.mubr.msk.bf16.gmra.mrb[44].mxu0 %vm662_vm1, %v8616_v49 }
 0x18a   : > { %7136 = vmatprep.mubr.msk.bf16.mxu0 %vm662_vm1, %v8624_v36 }
 0x191   : > { %7137 = vmatmul.mubr.msk.bf16.gmra.mrb[48].mxu0 %vm662_vm1, %v8628_v37 }
 0x192   : > { %7140 = vmatprep.mubr.msk.bf16.mxu0 %vm662_vm1, %v8636_v50 }
 0x199   : > { %7141 = vmatmul.mubr.msk.bf16.gmra.mrb[52].mxu0 %vm662_vm1, %v8640_v51 }
 0x19a   : > { %7144 = vmatprep.mubr.msk.bf16.mxu0 %vm662_vm1, %v8648_v52 }
 0x1a1   : > { %7145 = vmatmul.mubr.msk.bf16.gmra.mrb[56].mxu0 %vm662_vm1, %v8652_v53 }
 0x1a2   : > { %7148 = vmatprep.mubr.msk.bf16.mxu0 %vm662_vm1, %v8660_v54 }
 0x1a9   : > { %7149 = vmatmul.mubr.msk.bf16.gmra.mrb[60].mxu0 %vm662_vm1, %v8664_v56 }
 0x1aa   : > { %7152 = vmatprep.mubr.msk.bf16.mxu0 %vm662_vm1, %v8672_v58 }
 0x1b1   : > { %7153 = vmatmul.mubr.msk.bf16.gmra.mrb[64].mxu0 %vm662_vm1, %v8676_v59 }
 0x1b2   : > { %7156 = vmatprep.mubr.msk.bf16.mxu0 %vm662_vm1, %v8684_v60 }
 0x1b9   : > { %7157 = vmatmul.mubr.msk.bf16.gmra.mrb[68].mxu0 %vm662_vm1, %v8822_v55 }
 0x1ba   : > { %7162 = vmatprep.mubr.msk.bf16.mxu0 %vm662_vm1, %v8403_v57  ;;  %v8844_v57 = vpop.f32.mrb[4].mxu1 }
 0x1c1   : > { %7163 = vmatmul.mubr.msk.bf16.vlgmr.msra.gmra.mrb[0].mxu0 %vm662_vm1, %v8417_v62  ;;  %v8846_v62 = vpop.f32.mrb[5].mxu1 }
 0x1c2   : > { %7166 = vmatprep.mubr.msk.bf16.mxu0 %vm662_vm1, %v8422_v1  ;;  %v8848_v4 = vpop.f32.mrb[6].mxu1 }
 0x1c3   : > { %v8850_v1 = vpop.f32.mrb[7].mxu1 }
 0x1c4   : > { %v8854_v5 = vpop.f32.mrb[8].mxu1 }
 0x1c5   : > { %v8858_v6 = vpop.f32.mrb[9].mxu1 }
 0x1c9   : > { %7167 = vmatmul.mubr.msk.bf16.gmra.mrb[4].mxu0 %vm662_vm1, %v8439_v7  ;;  %v8860_v7 = vpop.f32.mrb[10].mxu1 }
 0x1ca   : > { %7170 = vmatprep.mubr.msk.bf16.mxu0 %vm662_vm1, %v8442_v9  ;;  %v8862_v8 = vpop.f32.mrb[11].mxu1 }
 0x1cb   : > { %v8866_v9 = vpop.f32.mrb[12].mxu1 }
 0x1cc   : > { %v8870_v10 = vpop.f32.mrb[13].mxu1 }
 0x1cd   : > { %v8872_v11 = vpop.f32.mrb[14].mxu1 }
 0x1d1   : > { %7171 = vmatmul.mubr.msk.bf16.gmra.mrb[8].mxu0 %vm662_vm1, %v8454_v12  ;;  %v8874_v12 = vpop.f32.mrb[15].mxu1 }
 0x1d2   : > { %7174 = vmatprep.mubr.msk.bf16.mxu0 %vm662_vm1, %v8456_v13  ;;  %v8878_v13 = vpop.f32.mrb[16].mxu1 }
 0x1d9   : > { %7175 = vmatmul.mubr.msk.bf16.gmra.mrb[12].mxu0 %vm662_vm1, %v8462_v14  ;;  %v8882_v14 = vpop.f32.mrb[17].mxu1 }
 0x1da   : > { %7178 = vmatprep.mubr.msk.bf16.mxu0 %vm662_vm1, %v8464_v15  ;;  %v8884_v21 = vpop.f32.mrb[18].mxu1 }
 0x1db   : > { %v8886_v23 = vpop.f32.mrb[19].mxu1 }
 0x1dc   : > { %v8890_v15 = vpop.f32.mrb[20].mxu1 }
 0x1e1   : > { %7179 = vmatmul.mubr.msk.bf16.gmra.mrb[16].mxu0 %vm662_vm1, %v8470_v16  ;;  %v8894_v16 = vpop.f32.mrb[21].mxu1 }
 0x1e2   : > { %7182 = vmatprep.mubr.msk.bf16.mxu0 %vm662_vm1, %v8472_v17  ;;  %v8896_v25 = vpop.f32.mrb[22].mxu1 }
 0x1e3   : > { %v8898_v27 = vpop.f32.mrb[23].mxu1 }
 0x1e4   : > { %v8922_v17 = vpop.f32.mrb[24].mxu1 }
 0x1e9   : > { %7183 = vmatmul.mubr.msk.bf16.gmra.mrb[20].mxu0 %vm662_vm1, %v8478_v18  ;;  %v8926_v18 = vpop.f32.mrb[25].mxu1 }
 0x1ea   : > { %7186 = vmatprep.mubr.msk.bf16.mxu0 %vm662_vm1, %v8480_v19  ;;  %v8928_v19 = vpop.f32.mrb[26].mxu1 }
 0x1f1   : > { %7187 = vmatmul.mubr.msk.bf16.gmra.mrb[24].mxu0 %vm662_vm1, %v8486_v20  ;;  %v8930_v20 = vpop.f32.mrb[27].mxu1 }
 0x1f2   : > { %7190 = vmatprep.mubr.msk.bf16.mxu0 %vm662_vm1, %v8489_v22  ;;  %v8934_v22 = vpop.f32.mrb[28].mxu1 }
 0x1f9   : > { %7191 = vmatmul.mubr.msk.bf16.gmra.mrb[28].mxu0 %vm662_vm1, %v8498_v24  ;;  %v8938_v24 = vpop.f32.mrb[29].mxu1 }
 0x1fa   : > { %7194 = vmatprep.mubr.msk.bf16.mxu0 %vm662_vm1, %v8501_v26  ;;  %v8940_v26 = vpop.f32.mrb[30].mxu1 }
 0x201   : > { %7195 = vmatmul.mubr.msk.bf16.gmra.mrb[32].mxu0 %vm662_vm1, %v8510_v28  ;;  %v8942_v28 = vpop.f32.mrb[31].mxu1 }
 0x202   : > { %7198 = vmatprep.mubr.msk.bf16.mxu0 %vm662_vm1, %v8513_v30  ;;  %v8954_v29 = vpop.f32.mrb[32].mxu1 }
 0x203   : > { %v8958_v30 = vpop.f32.mrb[33].mxu1 }
 0x204   : > { %v8960_v31 = vpop.f32.mrb[34].mxu1 }
 0x209   : > { %7199 = vmatmul.mubr.msk.bf16.gmra.mrb[36].mxu0 %vm662_vm1, %v8522_v32  ;;  %v8962_v32 = vpop.f32.mrb[35].mxu1 }
 0x20a   : > { %7202 = vmatprep.mubr.msk.bf16.mxu0 %vm662_vm1, %v8525_v34  ;;  %v8971_v34 = vpop.f32.mrb[36].mxu1 }
 0x20b   : > { %v8977_v35 = vpop.f32.mrb[37].mxu1 }
 0x211   : > { %7203 = vmatmul.mubr.msk.bf16.gmra.mrb[40].mxu0 %vm662_vm1, %v8534_v39  ;;  %v8979_v39 = vpop.f32.mrb[38].mxu1 }
 0x212   : > { %7206 = vmatprep.mubr.msk.bf16.mxu0 %vm662_vm1, %v8616_v49  ;;  %v8981_v41 = vpop.f32.mrb[39].mxu1  ;;  %v2916_v49 = vld [vmem:[#allocation2 + $0x138] sm:$0xff] }
 0x213   : > { %v8985_v42 = vpop.f32.mrb[40].mxu1 }
 0x214   : > { %v8989_v43 = vpop.f32.mrb[41].mxu1 }
 0x215   : > { %v8991_v44 = vpop.f32.mrb[42].mxu1 }
 0x216   : > { %v8993_v45 = vpop.f32.mrb[43].mxu1 }
 0x217   : > { %v8997_v40 = vpop.f32.mrb[44].mxu1 }
 0x218   : > { %v9001_v46 = vpop.f32.mrb[45].mxu1 }
 0x219   : > { %7207 = vmatmul.mubr.msk.bf16.gmra.mrb[44].mxu0 %vm662_vm1, %v8624_v36  ;;  %v9003_v47 = vpop.f32.mrb[46].mxu1 }
 0x21a   : > { %7210 = vmatprep.mubr.msk.bf16.mxu0 %vm662_vm1, %v8628_v37  ;;  %9705 = vst [vmem:[#allocation7_spill] sm:$0xff] %v9003_v47  ;;  %v9005_v48 = vpop.f32.mrb[47].mxu1 }
 0x21b   : > { %9706 = vst [vmem:[#allocation8_spill] sm:$0xff] %v9005_v48  ;;  %v9008_v36 = vpop.f32.mrb[48].mxu1 }
 0x21c   : > { %9707 = vst [vmem:[#allocation9_spill] sm:$0xff] %v9008_v36  ;;  %v9010_v37 = vpop.f32.mrb[49].mxu1 }
 0x21d   : > { %9708 = vst [vmem:[#allocation10_spill] sm:$0xff] %v9010_v37 }
 0x221   : > { %7211 = vmatmul.mubr.msk.bf16.gmra.mrb[48].mxu0 %vm662_vm1, %v8636_v50  ;;  %v9012_v50 = vpop.f32.mrb[50].mxu1 }
 0x222   : > { %7214 = vmatprep.mubr.msk.bf16.mxu0 %vm662_vm1, %v8640_v51  ;;  %9709 = vst [vmem:[#allocation11_spill] sm:$0xff] %v9012_v50  ;;  %v9014_v51 = vpop.f32.mrb[51].mxu1 }
 0x223   : > { %9710 = vst [vmem:[#allocation12_spill] sm:$0xff] %v9014_v51 }
 0x229   : > { %7215 = vmatmul.mubr.msk.bf16.gmra.mrb[52].mxu0 %vm662_vm1, %v8648_v52  ;;  %v9016_v52 = vpop.f32.mrb[52].mxu1 }
 0x22a   : > { %7218 = vmatprep.mubr.msk.bf16.mxu0 %vm662_vm1, %v8652_v53  ;;  %9711 = vst [vmem:[#allocation13_spill] sm:$0xff] %v9016_v52  ;;  %v9018_v53 = vpop.f32.mrb[53].mxu1 }
 0x22b   : > { %9712 = vst [vmem:[#allocation14_spill] sm:$0xff] %v9018_v53 }
 0x231   : > { %7219 = vmatmul.mubr.msk.bf16.gmra.mrb[56].mxu0 %vm662_vm1, %v8660_v54  ;;  %v9020_v54 = vpop.f32.mrb[54].mxu1 }
 0x232   : > { %7222 = vmatprep.mubr.msk.bf16.mxu0 %vm662_vm1, %v8664_v56  ;;  %9713 = vst [vmem:[#allocation15_spill] sm:$0xff] %v9020_v54  ;;  %v9022_v56 = vpop.f32.mrb[55].mxu1 }
 0x233   : > { %9714 = vst [vmem:[#allocation16_spill] sm:$0xff] %v9022_v56 }
 0x239   : > { %7223 = vmatmul.mubr.msk.bf16.gmra.mrb[60].mxu0 %vm662_vm1, %v8672_v58  ;;  %v9024_v58 = vpop.f32.mrb[56].mxu1 }
 0x23a   : > { %7226 = vmatprep.mubr.msk.bf16.mxu0 %vm662_vm1, %v8676_v59  ;;  %9715 = vst [vmem:[#allocation17_spill] sm:$0xff] %v9024_v58  ;;  %v9026_v59 = vpop.f32.mrb[57].mxu1 }
 0x23b   : > { %9716 = vst [vmem:[#allocation18_spill] sm:$0xff] %v9026_v59 }
 0x241   : > { %7227 = vmatmul.mubr.msk.bf16.gmra.mrb[64].mxu0 %vm662_vm1, %v8684_v60  ;;  %v9028_v60 = vpop.f32.mrb[58].mxu1 }
 0x242   : > { %7230 = vmatprep.mubr.msk.bf16.mxu0 %vm662_vm1, %v8822_v55  ;;  %9717 = vst [vmem:[#allocation19_spill] sm:$0xff] %v9028_v60  ;;  %v9030_v61 = vpop.f32.mrb[59].mxu1 }
 0x243   : > { %9718 = vst [vmem:[#allocation20_spill] sm:$0xff] %v9030_v61  ;;  %v9032_v55 = vpop.f32.mrb[60].mxu1 }
 0x244   : > { %9719 = vst [vmem:[#allocation21_spill] sm:$0xff] %v9032_v55  ;;  %v9034_v33 = vpop.f32.mrb[61].mxu1 }
 0x245   : > { %9720 = vst [vmem:[#allocation22_spill] sm:$0xff] %v9034_v33 }
 0x249   : > { %7231 = vmatmul.mubr.msk.bf16.gmra.mrb[68].mxu0 %vm662_vm1, %v2916_v49  ;;  %v9036_v49 = vpop.f32.mrb[62].mxu1 }
 0x24a   : > { %9721 = vst [vmem:[#allocation23_spill] sm:$0xff] %v9036_v49  ;;  %v9038_v38 = vpop.f32.mrb[63].mxu1 }
 0x24b   : > { %9722 = vst [vmem:[#allocation24_spill] sm:$0xff] %v9038_v38  ;;  %v9040_v53 = vpop.f32.mrb[64].mxu1  ;;  %v9059_v38 = vld [vmem:[%s9695_s2] sm:$0xff]  }
 0x24c   : > { %9723 = vst [vmem:[#allocation25_spill] sm:$0xff] %v9040_v53  ;;  %v9042_v54 = vpop.f32.mrb[65].mxu1  ;;  %7260 = vmatprep.subr.bf16.mxu1 %v9059_v38 }
 0x24d   : > { %9724 = vst [vmem:[#allocation26_spill] sm:$0xff] %v9042_v54  ;;  %v9044_v56 = vpop.f32.mrb[66].mxu1 }
 0x24e   : > { %9725 = vst [vmem:[#allocation27_spill] sm:$0xff] %v9044_v56  ;;  %v9046_v58 = vpop.f32.mrb[67].mxu1  ;;  %v9065_v56 = vld [vmem:[%s9701_s8] ss:$0 sm:$0xff] }
 0x24f   : > { %9726 = vst [vmem:[#allocation28_spill] sm:$0xff] %v9046_v58  ;;  %v9048_v59 = vpop.f32.mrb[68].mxu1 }
 0x250   : > { %9727 = vst [vmem:[#allocation29_spill] sm:$0xff] %v9048_v59  ;;  %v9050_v60 = vpop.f32.mrb[69].mxu1 }
 0x251   : > { %9728 = vst [vmem:[#allocation30_spill] sm:$0xff] %v9050_v60  ;;  %v9052_v61 = vpop.f32.mrb[70].mxu1 }
 0x252   : > { %9729 = vst [vmem:[#allocation31_spill] sm:$0xff] %v9052_v61  ;;  %v9054_v55 = vpop.f32.mrb[71].mxu1 }
 0x253   : > { %9730 = vst [vmem:[#allocation32_spill] sm:$0xff] %v9054_v55 }
 0x294   : > { %v7164_v58 = vpop.f32.mrb[0].mxu0 }
 0x295   : > { %v7512_v59 = vadd.f32 %v7164_v58, %v8834_v63  ;;  %v3063_v60 = vpop.f32.mrb[1].mxu0 }
 0x296   : > { %v7513_v61 = vadd.f32 %v3063_v60, %v8838_v0  ;;  %v7165_v54 = vpop.f32.mrb[2].mxu0 }
 0x297   : > { %v3430_v55 = vadd.f32 %v7512_v59, %v9065_v56  ;;  %v7514_v53 = vadd.f32 %v7165_v54, %v8840_v2  ;;  %v3066_v49 = vpop.f32.mrb[3].mxu0 }
 0x298   : > { %v3428_v33 = vadd.f32 %v7513_v61, %v9065_v56  ;;  %v7515_v52 = vadd.f32 %v3066_v49, %v8842_v3 }
 0x299   : > { %v3502_v51 = vmax.f32 %v3430_v55, 0.0  ;;  %v3431_v50 = vadd.f32 %v7514_v53, %v9065_v56 }
 0x29a   : > { %v3500_v37 = vmax.f32 %v3428_v33, 0.0  ;;  %v3429_v36 = vadd.f32 %v7515_v52, %v9065_v56 }
 0x29b   : > { %v3503_v63 = vmax.f32 %v3431_v50, 0.0 }
 0x29c   : > { %v3572_v58 = vmax.f32 %v3500_v37, %v3502_v51  ;;  %v3501_v48 = vmax.f32 %v3429_v36, 0.0  ;;  %v7168_v0 = vpop.f32.mrb[4].mxu0 }
 0x29d   : > { %v7516_v60 = vadd.f32 %v7168_v0, %v8844_v57  ;;  %v3079_v59 = vpop.f32.mrb[5].mxu0 }
 0x29e   : > { %v3573_v47 = vmax.f32 %v3501_v48, %v3503_v63  ;;  %v7517_v2 = vadd.f32 %v3079_v59, %v8846_v62  ;;  %v7169_v54 = vpop.f32.mrb[6].mxu0 }
 0x29f   : > { %v7518_v61 = vadd.f32 %v7169_v54, %v8848_v4  ;;  %v3082_v3 = vpop.f32.mrb[7].mxu0  ;;  %v3434_v48 = vadd.f32 %v7516_v60, %v9065_v56 }
 0x2a0   : > { %v3432_v55 = vadd.f32 %v7517_v2, %v9065_v56  ;;  %v7519_v53 = vadd.f32 %v3082_v3, %v8850_v1 }
 0x2a1   : > { %v3435_v63 = vadd.f32 %v7518_v61, %v9065_v56 }
 0x2a2   : > { %v3504_v33 = vmax.f32 %v3432_v55, 0.0  ;;  %v3433_v50 = vadd.f32 %v7519_v53, %v9065_v56 }
 0x2a3   : > { %v3507_v3 = vmax.f32 %v3435_v63, 0.0 }
 0x2a4   : > { %v3596_v37 = vmax.f32 %v3572_v58, %v3504_v33  ;;  %v3505_v36 = vmax.f32 %v3433_v50, 0.0  ;;  %v7172_v51 = vpop.f32.mrb[8].mxu0 }
 0x2a5   : > { %v7520_v57 = vadd.f32 %v7172_v51, %v8854_v5  ;;  %v3095_v52 = vpop.f32.mrb[9].mxu0  ;;  %v3506_v5 = vmax.f32 %v3434_v48, 0.0 }
 0x2a6   : > { %v3597_v62 = vmax.f32 %v3573_v47, %v3505_v36  ;;  %v7521_v49 = vadd.f32 %v3095_v52, %v8858_v6  ;;  %v7173_v4 = vpop.f32.mrb[10].mxu0 }
 0x2a7   : > { %v7522_v0 = vadd.f32 %v7173_v4, %v8860_v7  ;;  %v3098_v1 = vpop.f32.mrb[11].mxu0  ;;  %v3438_v2 = vadd.f32 %v7520_v57, %v9065_v56 }
 0x2a8   : > { %v3623_v59 = vpack.c.bf16 %v3597_v62, %v3596_v37  ;;  %v3436_v58 = vadd.f32 %v7521_v49, %v9065_v56  ;;  %v7523_v54 = vadd.f32 %v3098_v1, %v8862_v8 }
 0x2a9   : > { %v3439_v47 = vadd.f32 %v7522_v0, %v9065_v56  ;;  %v3510_v61 = vmax.f32 %v3438_v2, 0.0 }
 0x2aa   : > { %3635 = vst.msk [vmem:[#allocation3 + $0x10] sm:$0xff] %vm3620_vm2, %v3623_v59  ;;  %v3508_v60 = vmax.f32 %v3436_v58, 0.0  ;;  %v3437_v6 = vadd.f32 %v7523_v54, %v9065_v56 }
 0x2ab   : > { %v3511_v36 = vmax.f32 %v3439_v47, 0.0 }
 0x2ac   : > { %v3574_v55 = vmax.f32 %v3506_v5, %v3508_v60  ;;  %v3509_v7 = vmax.f32 %v3437_v6, 0.0  ;;  %v7176_v53 = vpop.f32.mrb[12].mxu0 }
 0x2ad   : > { %v7524_v33 = vadd.f32 %v7176_v53, %v8866_v9  ;;  %v3111_v50 = vpop.f32.mrb[13].mxu0  ;;  %v9101_v9 = vld [vmem:[%s9695_s2 + $0x10] sm:$0xff]  }
 0x2ae   : > { %v3598_v37 = vmax.f32 %v3574_v55, %v3510_v61  ;;  %v3575_v51 = vmax.f32 %v3507_v3, %v3509_v7  ;;  %v7525_v8 = vadd.f32 %v3111_v50, %v8870_v10  ;;  %v7177_v57 = vpop.f32.mrb[14].mxu0 }
 0x2af   : > { %v3442_v52 = vadd.f32 %v7524_v33, %v9065_v56  ;;  %v7526_v48 = vadd.f32 %v7177_v57, %v8872_v11  ;;  %v3114_v62 = vpop.f32.mrb[15].mxu0 }
 0x2b0   : > { %v3599_v49 = vmax.f32 %v3575_v51, %v3511_v36  ;;  %v3440_v4 = vadd.f32 %v7525_v8, %v9065_v56  ;;  %v7527_v63 = vadd.f32 %v3114_v62, %v8874_v12 }
 0x2b1   : > { %v3514_v0 = vmax.f32 %v3442_v52, 0.0  ;;  %v3443_v1 = vadd.f32 %v7526_v48, %v9065_v56  ;;  %v9104_v10 = vld [vmem:[#allocation3 + $0x10] sm:$0xff] }
 0x2b2   : > { %v3624_v59 = vpack.c.bf16 %v3599_v49, %v3598_v37  ;;  %v3512_v2 = vmax.f32 %v3440_v4, 0.0  ;;  %v3441_v11 = vadd.f32 %v7527_v63, %v9065_v56  ;;  %7237 = vmatmul.mubr.msk.bf16.vlgmr.msra.gmra.mrb[72].mxu1 %vm3620_vm2, %v9104_v10 }
 0x2b3   : > { %v3515_v58 = vmax.f32 %v3443_v1, 0.0  ;;  %7261 = vmatpush3.bf16.msra.mxu1 %v9059_v38 }
 0x2b4   : > { %3636 = vst.msk [vmem:[#allocation3 + $0x18] sm:$0xff] %vm3620_vm2, %v3624_v59  ;;  %v3576_v12 = vmax.f32 %v3512_v2, %v3514_v0  ;;  %v3513_v54 = vmax.f32 %v3441_v11, 0.0  ;;  %v7180_v5 = vpop.f32.mrb[16].mxu0  ;;  %7286 = vmatprep.subr.bf16.mxu1 %v9101_v9 }
 0x2b5   : > { %v7528_v60 = vadd.f32 %v7180_v5, %v8878_v13  ;;  %v3127_v47 = vpop.f32.mrb[17].mxu0 }
 0x2b6   : > { %v3577_v6 = vmax.f32 %v3513_v54, %v3515_v58  ;;  %v7529_v3 = vadd.f32 %v3127_v47, %v8882_v14  ;;  %v7181_v61 = vpop.f32.mrb[18].mxu0 }
 0x2b7   : > { %v7530_v55 = vadd.f32 %v7181_v61, %v8884_v21  ;;  %v3130_v7 = vpop.f32.mrb[19].mxu0  ;;  %v3446_v21 = vadd.f32 %v7528_v60, %v9065_v56 }
 0x2b8   : > { %v3444_v53 = vadd.f32 %v7529_v3, %v9065_v56  ;;  %v7531_v38 = vadd.f32 %v3130_v7, %v8886_v23 }
 0x2b9   : > { %v3447_v48 = vadd.f32 %v7530_v55, %v9065_v56 }
 0x2ba   : > { %v3516_v33 = vmax.f32 %v3444_v53, 0.0  ;;  %v3445_v50 = vadd.f32 %v7531_v38, %v9065_v56 }
 0x2bb   : > { %v9118_v37 = vld [vmem:[#allocation3 + $0x18] sm:$0xff]  ;;  %v3519_v11 = vmax.f32 %v3447_v48, 0.0 }
 0x2bc   : > { %v3600_v36 = vmax.f32 %v3576_v12, %v3516_v33  ;;  %v3517_v51 = vmax.f32 %v3445_v50, 0.0  ;;  %v7184_v13 = vpop.f32.mrb[20].mxu0  ;;  %7240 = vmatprep.mubr.msk.bf16.mxu1 %vm3620_vm2, %v9118_v37 }
 0x2bd   : > { %v7532_v14 = vadd.f32 %v7184_v13, %v8890_v15  ;;  %v3143_v8 = vpop.f32.mrb[21].mxu0  ;;  %v3518_v15 = vmax.f32 %v3446_v21, 0.0 }
 0x2be   : > { %v3601_v57 = vmax.f32 %v3577_v6, %v3517_v51  ;;  %v7533_v52 = vadd.f32 %v3143_v8, %v8894_v16  ;;  %v7185_v23 = vpop.f32.mrb[22].mxu0 }
 0x2bf   : > { %v7534_v62 = vadd.f32 %v7185_v23, %v8896_v25  ;;  %v3146_v49 = vpop.f32.mrb[23].mxu0  ;;  %v3450_v63 = vadd.f32 %v7532_v14, %v9065_v56 }
 0x2c0   : > { %v3625_v4 = vpack.c.bf16 %v3601_v57, %v3600_v36  ;;  %v3448_v0 = vadd.f32 %v7533_v52, %v9065_v56  ;;  %v7535_v1 = vadd.f32 %v3146_v49, %v8898_v27 }
 0x2c1   : > { %v3451_v2 = vadd.f32 %v7534_v62, %v9065_v56  ;;  %v3522_v58 = vmax.f32 %v3450_v63, 0.0 }
 0x2c2   : > { %3637 = vst.msk [vmem:[#allocation3 + $0x20] sm:$0xff] %vm3620_vm2, %v3625_v4  ;;  %v3520_v59 = vmax.f32 %v3448_v0, 0.0  ;;  %v3449_v16 = vadd.f32 %v7535_v1, %v9065_v56 }
 0x2c3   : > { %v3523_v6 = vmax.f32 %v3451_v2, 0.0 }
 0x2c4   : > { %v3578_v12 = vmax.f32 %v3518_v15, %v3520_v59  ;;  %v3521_v25 = vmax.f32 %v3449_v16, 0.0  ;;  %v7188_v54 = vpop.f32.mrb[24].mxu0 }
 0x2c5   : > { %v7536_v5 = vadd.f32 %v7188_v54, %v8922_v17  ;;  %v3159_v60 = vpop.f32.mrb[25].mxu0 }
 0x2c6   : > { %v3602_v47 = vmax.f32 %v3578_v12, %v3522_v58  ;;  %v3579_v3 = vmax.f32 %v3519_v11, %v3521_v25  ;;  %v7537_v27 = vadd.f32 %v3159_v60, %v8926_v18  ;;  %v7189_v61 = vpop.f32.mrb[26].mxu0 }
 0x2c7   : > { %v3454_v55 = vadd.f32 %v7536_v5, %v9065_v56  ;;  %v7538_v7 = vadd.f32 %v7189_v61, %v8928_v19  ;;  %v3162_v53 = vpop.f32.mrb[27].mxu0 }
 0x2c8   : > { %v3603_v38 = vmax.f32 %v3579_v3, %v3523_v6  ;;  %v3452_v33 = vadd.f32 %v7537_v27, %v9065_v56  ;;  %v7539_v50 = vadd.f32 %v3162_v53, %v8930_v20 }
 0x2c9   : > { %v3526_v36 = vmax.f32 %v3454_v55, 0.0  ;;  %v3455_v17 = vadd.f32 %v7538_v7, %v9065_v56  ;;  %v9140_v51 = vld [vmem:[#allocation3 + $0x20] sm:$0xff] }
 0x2ca   : > { %v3626_v13 = vpack.c.bf16 %v3603_v38, %v3602_v47  ;;  %v3524_v14 = vmax.f32 %v3452_v33, 0.0  ;;  %v3453_v18 = vadd.f32 %v7539_v50, %v9065_v56  ;;  %7241 = vmatmul.mubr.msk.bf16.gmra.mrb[76].mxu1 %vm3620_vm2, %v9140_v51 }
 0x2cb   : > { %v3527_v8 = vmax.f32 %v3455_v17, 0.0 }
 0x2cc   : > { %3638 = vst.msk [vmem:[#allocation3 + $0x28] sm:$0xff] %vm3620_vm2, %v3626_v13  ;;  %v3580_v19 = vmax.f32 %v3524_v14, %v3526_v36  ;;  %v3525_v21 = vmax.f32 %v3453_v18, 0.0  ;;  %v7192_v57 = vpop.f32.mrb[28].mxu0 }
 0x2cd   : > { %v7540_v20 = vadd.f32 %v7192_v57, %v8934_v22  ;;  %v3175_v52 = vpop.f32.mrb[29].mxu0 }
 0x2ce   : > { %v3581_v23 = vmax.f32 %v3525_v21, %v3527_v8  ;;  %v7541_v48 = vadd.f32 %v3175_v52, %v8938_v24  ;;  %v7193_v62 = vpop.f32.mrb[30].mxu0 }
 0x2cf   : > { %v7542_v49 = vadd.f32 %v7193_v62, %v8940_v26  ;;  %v3178_v4 = vpop.f32.mrb[31].mxu0  ;;  %v3458_v26 = vadd.f32 %v7540_v20, %v9065_v56 }
 0x2d0   : > { %v3456_v63 = vadd.f32 %v7541_v48, %v9065_v56  ;;  %v7543_v0 = vadd.f32 %v3178_v4, %v8942_v28 }
 0x2d1   : > { %v3459_v25 = vadd.f32 %v7542_v49, %v9065_v56 }
 0x2d2   : > { %v3528_v1 = vmax.f32 %v3456_v63, 0.0  ;;  %v3457_v15 = vadd.f32 %v7543_v0, %v9065_v56 }
 0x2d3   : > { %v9152_v59 = vld [vmem:[#allocation3 + $0x28] sm:$0xff]  ;;  %v3531_v55 = vmax.f32 %v3459_v25, 0.0 }
 0x2d4   : > { %v3604_v2 = vmax.f32 %v3580_v19, %v3528_v1  ;;  %v3529_v16 = vmax.f32 %v3457_v15, 0.0  ;;  %v7196_v22 = vpop.f32.mrb[32].mxu0  ;;  %7244 = vmatprep.mubr.msk.bf16.mxu1 %vm3620_vm2, %v9152_v59 }
 0x2d5   : > { %v7544_v24 = vadd.f32 %v7196_v22, %v8954_v29  ;;  %v3191_v11 = vpop.f32.mrb[33].mxu0  ;;  %v3530_v29 = vmax.f32 %v3458_v26, 0.0 }
 0x2d6   : > { %v3605_v58 = vmax.f32 %v3581_v23, %v3529_v16  ;;  %v7545_v12 = vadd.f32 %v3191_v11, %v8958_v30  ;;  %v7197_v28 = vpop.f32.mrb[34].mxu0 }
 0x2d7   : > { %v7546_v54 = vadd.f32 %v7197_v28, %v8960_v31  ;;  %v3194_v5 = vpop.f32.mrb[35].mxu0  ;;  %v3462_v47 = vadd.f32 %v7544_v24, %v9065_v56 }
 0x2d8   : > { %v3627_v60 = vpack.c.bf16 %v3605_v58, %v3604_v2  ;;  %v3460_v6 = vadd.f32 %v7545_v12, %v9065_v56  ;;  %v7547_v3 = vadd.f32 %v3194_v5, %v8962_v32 }
 0x2d9   : > { %v3463_v61 = vadd.f32 %v7546_v54, %v9065_v56  ;;  %v3534_v7 = vmax.f32 %v3462_v47, 0.0 }
 0x2da   : > { %3639 = vst.msk [vmem:[#allocation3 + $0x30] sm:$0xff] %vm3620_vm2, %v3627_v60  ;;  %v3532_v27 = vmax.f32 %v3460_v6, 0.0  ;;  %v3461_v30 = vadd.f32 %v7547_v3, %v9065_v56  ;;  %v9731_v6 = vld [vmem:[#allocation7_spill] sm:$0xff] }
 0x2db   : > { %v3535_v17 = vmax.f32 %v3463_v61, 0.0 }
 0x2dc   : > { %v3582_v53 = vmax.f32 %v3530_v29, %v3532_v27  ;;  %v3533_v31 = vmax.f32 %v3461_v30, 0.0  ;;  %v7200_v38 = vpop.f32.mrb[36].mxu0 }
 0x2dd   : > { %v7548_v33 = vadd.f32 %v7200_v38, %v8971_v34  ;;  %v3207_v50 = vpop.f32.mrb[37].mxu0 }
 0x2de   : > { %v3606_v36 = vmax.f32 %v3582_v53, %v3534_v7  ;;  %v3583_v13 = vmax.f32 %v3531_v55, %v3533_v31  ;;  %v7549_v32 = vadd.f32 %v3207_v50, %v8977_v35  ;;  %v7201_v14 = vpop.f32.mrb[38].mxu0  ;;  %v9732_v55 = vld [vmem:[#allocation8_spill] sm:$0xff] }
 0x2df   : > { %v3466_v18 = vadd.f32 %v7548_v33, %v9065_v56  ;;  %v7550_v8 = vadd.f32 %v7201_v14, %v8979_v39  ;;  %v3210_v19 = vpop.f32.mrb[39].mxu0 }
 0x2e0   : > { %v3607_v21 = vmax.f32 %v3583_v13, %v3535_v17  ;;  %v3464_v57 = vadd.f32 %v7549_v32, %v9065_v56  ;;  %v7551_v20 = vadd.f32 %v3210_v19, %v8981_v41  ;;  %v9733_v13 = vld [vmem:[#allocation9_spill] sm:$0xff] }
 0x2e1   : > { %v3538_v52 = vmax.f32 %v3466_v18, 0.0  ;;  %v3467_v34 = vadd.f32 %v7550_v8, %v9065_v56  ;;  %v9174_v23 = vld [vmem:[#allocation3 + $0x30] sm:$0xff] }
 0x2e2   : > { %v3628_v48 = vpack.c.bf16 %v3607_v21, %v3606_v36  ;;  %v3536_v62 = vmax.f32 %v3464_v57, 0.0  ;;  %v3465_v35 = vadd.f32 %v7551_v20, %v9065_v56  ;;  %7245 = vmatmul.mubr.msk.bf16.gmra.mrb[80].mxu1 %vm3620_vm2, %v9174_v23  ;;  %v9734_v21 = vld [vmem:[#allocation10_spill] sm:$0xff] }
 0x2e3   : > { %v3539_v49 = vmax.f32 %v3467_v34, 0.0  ;;  %v9735_v34 = vld [vmem:[#allocation11_spill] sm:$0xff] }
 0x2e4   : > { %3640 = vst.msk [vmem:[#allocation3 + $0x38] sm:$0xff] %vm3620_vm2, %v3628_v48  ;;  %v3584_v39 = vmax.f32 %v3536_v62, %v3538_v52  ;;  %v3537_v4 = vmax.f32 %v3465_v35, 0.0  ;;  %v7204_v63 = vpop.f32.mrb[40].mxu0 }
 0x2e5   : > { %v7552_v41 = vadd.f32 %v7204_v63, %v8985_v42  ;;  %v3223_v0 = vpop.f32.mrb[41].mxu0 }
 0x2e6   : > { %v3585_v1 = vmax.f32 %v3537_v4, %v3539_v49  ;;  %v7553_v15 = vadd.f32 %v3223_v0, %v8989_v43  ;;  %v7205_v2 = vpop.f32.mrb[42].mxu0 }
 0x2e7   : > { %v7554_v16 = vadd.f32 %v7205_v2, %v8991_v44  ;;  %v3226_v22 = vpop.f32.mrb[43].mxu0  ;;  %v3470_v44 = vadd.f32 %v7552_v41, %v9065_v56 }
 0x2e8   : > { %v3468_v24 = vadd.f32 %v7553_v15, %v9065_v56  ;;  %v7555_v11 = vadd.f32 %v3226_v22, %v8993_v45 }
 0x2e9   : > { %v3471_v47 = vadd.f32 %v7554_v16, %v9065_v56 }
 0x2ea   : > { %v3540_v26 = vmax.f32 %v3468_v24, 0.0  ;;  %v3469_v58 = vadd.f32 %v7555_v11, %v9065_v56 }
 0x2eb   : > { %v9186_v12 = vld [vmem:[#allocation3 + $0x38] sm:$0xff]  ;;  %v3543_v38 = vmax.f32 %v3471_v47, 0.0  ;;  %v9740_v47 = vld [vmem:[#allocation16_spill] sm:$0xff] }
 0x2ec   : > { %v3608_v28 = vmax.f32 %v3584_v39, %v3540_v26  ;;  %v3541_v25 = vmax.f32 %v3469_v58, 0.0  ;;  %v7208_v42 = vpop.f32.mrb[44].mxu0  ;;  %7248 = vmatprep.mubr.msk.bf16.mxu1 %vm3620_vm2, %v9186_v12  ;;  %v9736_v39 = vld [vmem:[#allocation12_spill] sm:$0xff]  ;;  %v9737_v26 = vld [vmem:[#allocation13_spill] sm:$0xff] }
 0x2ed   : > { %v7556_v43 = vadd.f32 %v7208_v42, %v8997_v40  ;;  %v3239_v54 = vpop.f32.mrb[45].mxu0  ;;  %v3542_v40 = vmax.f32 %v3470_v44, 0.0  ;;  %v9738_v42 = vld [vmem:[#allocation14_spill] sm:$0xff]  ;;  %v9739_v44 = vld [vmem:[#allocation15_spill] sm:$0xff] }
 0x2ee   : > { %v3609_v5 = vmax.f32 %v3585_v1, %v3541_v25  ;;  %v7557_v60 = vadd.f32 %v3239_v54, %v9001_v46  ;;  %v7209_v45 = vpop.f32.mrb[46].mxu0 }
 0x2ef   : > { %v7558_v3 = vadd.f32 %v7209_v45, %v9731_v6  ;;  %v3242_v29 = vpop.f32.mrb[47].mxu0  ;;  %v3474_v61 = vadd.f32 %v7556_v43, %v9065_v56 }
 0x2f0   : > { %v3629_v27 = vpack.c.bf16 %v3609_v5, %v3608_v28  ;;  %v3472_v30 = vadd.f32 %v7557_v60, %v9065_v56  ;;  %v7559_v7 = vadd.f32 %v3242_v29, %v9732_v55 }
 0x2f1   : > { %v3475_v31 = vadd.f32 %v7558_v3, %v9065_v56  ;;  %v3546_v33 = vmax.f32 %v3474_v61, 0.0 }
 0x2f2   : > { %3641 = vst.msk [vmem:[#allocation3 + $0x40] sm:$0xff] %vm3620_vm2, %v3629_v27  ;;  %v3544_v53 = vmax.f32 %v3472_v30, 0.0  ;;  %v3473_v46 = vadd.f32 %v7559_v7, %v9065_v56  ;;  %v9741_v7 = vld [vmem:[#allocation17_spill] sm:$0xff] }
 0x2f3   : > { %v3547_v8 = vmax.f32 %v3475_v31, 0.0 }
 0x2f4   : > { %v3586_v50 = vmax.f32 %v3542_v40, %v3544_v53  ;;  %v3545_v36 = vmax.f32 %v3473_v46, 0.0  ;;  %v7212_v17 = vpop.f32.mrb[48].mxu0 }
 0x2f5   : > { %v7560_v32 = vadd.f32 %v7212_v17, %v9733_v13  ;;  %v3255_v14 = vpop.f32.mrb[49].mxu0  ;;  %v9743_v17 = vld [vmem:[#allocation19_spill] sm:$0xff] }
 0x2f6   : > { %v3610_v18 = vmax.f32 %v3586_v50, %v3546_v33  ;;  %v3587_v19 = vmax.f32 %v3543_v38, %v3545_v36  ;;  %v7561_v57 = vadd.f32 %v3255_v14, %v9734_v21  ;;  %v7213_v20 = vpop.f32.mrb[50].mxu0  ;;  %v9742_v38 = vld [vmem:[#allocation18_spill] sm:$0xff] }
 0x2f7   : > { %v3478_v52 = vadd.f32 %v7560_v32, %v9065_v56  ;;  %v7562_v48 = vadd.f32 %v7213_v20, %v9735_v34  ;;  %v3258_v62 = vpop.f32.mrb[51].mxu0 }
 0x2f8   : > { %v3611_v35 = vmax.f32 %v3587_v19, %v3547_v8  ;;  %v3476_v49 = vadd.f32 %v7561_v57, %v9065_v56  ;;  %v7563_v4 = vadd.f32 %v3258_v62, %v9736_v39  ;;  %v9744_v19 = vld [vmem:[#allocation20_spill] sm:$0xff] }
 0x2f9   : > { %v3550_v63 = vmax.f32 %v3478_v52, 0.0  ;;  %v3479_v41 = vadd.f32 %v7562_v48, %v9065_v56  ;;  %v9208_v0 = vld [vmem:[#allocation3 + $0x40] sm:$0xff] }
 0x2fa   : > { %v3630_v1 = vpack.c.bf16 %v3611_v35, %v3610_v18  ;;  %v3548_v15 = vmax.f32 %v3476_v49, 0.0  ;;  %v3477_v2 = vadd.f32 %v7563_v4, %v9065_v56  ;;  %7249 = vmatmul.mubr.msk.bf16.gmra.mrb[84].mxu1 %vm3620_vm2, %v9208_v0  ;;  %v9745_v4 = vld [vmem:[#allocation21_spill] sm:$0xff] }
 0x2fb   : > { %v3551_v16 = vmax.f32 %v3479_v41, 0.0 }
 0x2fc   : > { %3642 = vst.msk [vmem:[#allocation3 + $0x48] sm:$0xff] %vm3620_vm2, %v3630_v1  ;;  %v3588_v22 = vmax.f32 %v3548_v15, %v3550_v63  ;;  %v3549_v24 = vmax.f32 %v3477_v2, 0.0  ;;  %v7216_v11 = vpop.f32.mrb[52].mxu0 }
 0x2fd   : > { %v7564_v58 = vadd.f32 %v7216_v11, %v9737_v26  ;;  %v3271_v28 = vpop.f32.mrb[53].mxu0  ;;  %v9747_v26 = vld [vmem:[#allocation23_spill] sm:$0xff] }
 0x2fe   : > { %v3589_v25 = vmax.f32 %v3549_v24, %v3551_v16  ;;  %v7565_v43 = vadd.f32 %v3271_v28, %v9738_v42  ;;  %v7217_v54 = vpop.f32.mrb[54].mxu0  ;;  %v9746_v16 = vld [vmem:[#allocation22_spill] sm:$0xff] }
 0x2ff   : > { %v7566_v5 = vadd.f32 %v7217_v54, %v9739_v44  ;;  %v3274_v60 = vpop.f32.mrb[55].mxu0  ;;  %v3482_v31 = vadd.f32 %v7564_v58, %v9065_v56 }
 0x300   : > { %v3480_v45 = vadd.f32 %v7565_v43, %v9065_v56  ;;  %v7567_v6 = vadd.f32 %v3274_v60, %v9740_v47  ;;  %v9748_v43 = vld [vmem:[#allocation24_spill] sm:$0xff] }
 0x301   : > { %v3483_v36 = vadd.f32 %v7566_v5, %v9065_v56  ;;  %v3554_v57 = vmax.f32 %v3482_v31, 0.0  ;;  %v9750_v31 = vld [vmem:[#allocation26_spill] sm:$0xff] }
 0x302   : > { %v3552_v3 = vmax.f32 %v3480_v45, 0.0  ;;  %v3481_v29 = vadd.f32 %v7567_v6, %v9065_v56 }
 0x303   : > { %v9220_v27 = vld [vmem:[#allocation3 + $0x48] sm:$0xff]  ;;  %v3555_v48 = vmax.f32 %v3483_v36, 0.0 }
 0x304   : > { %v3612_v61 = vmax.f32 %v3588_v22, %v3552_v3  ;;  %v3553_v30 = vmax.f32 %v3481_v29, 0.0  ;;  %v7220_v55 = vpop.f32.mrb[56].mxu0  ;;  %7252 = vmatprep.mubr.msk.bf16.mxu1 %vm3620_vm2, %v9220_v27 }
 0x305   : > { %v7568_v40 = vadd.f32 %v7220_v55, %v9741_v7  ;;  %v3287_v53 = vpop.f32.mrb[57].mxu0  ;;  %v9749_v55 = vld [vmem:[#allocation25_spill] sm:$0xff] }
 0x306   : > { %v3613_v46 = vmax.f32 %v3589_v25, %v3553_v30  ;;  %v7569_v33 = vadd.f32 %v3287_v53, %v9742_v38  ;;  %v7221_v50 = vpop.f32.mrb[58].mxu0 }
 0x307   : > { %v7570_v13 = vadd.f32 %v7221_v50, %v9743_v17  ;;  %v3290_v32 = vpop.f32.mrb[59].mxu0  ;;  %v3486_v18 = vadd.f32 %v7568_v40, %v9065_v56 }
 0x308   : > { %v3631_v14 = vpack.c.bf16 %v3613_v46, %v3612_v61  ;;  %v3484_v8 = vadd.f32 %v7569_v33, %v9065_v56  ;;  %v7571_v21 = vadd.f32 %v3290_v32, %v9744_v19  ;;  %v9751_v33 = vld [vmem:[#allocation27_spill] sm:$0xff] }
 0x309   : > { %v3487_v52 = vadd.f32 %v7570_v13, %v9065_v56  ;;  %v3558_v62 = vmax.f32 %v3486_v18, 0.0  ;;  %v9752_v13 = vld [vmem:[#allocation28_spill] sm:$0xff] }
 0x30a   : > { %3643 = vst.msk [vmem:[#allocation3 + $0x50] sm:$0xff] %vm3620_vm2, %v3631_v14  ;;  %v3556_v20 = vmax.f32 %v3484_v8, 0.0  ;;  %v3485_v34 = vadd.f32 %v7571_v21, %v9065_v56 }
 0x30b   : > { %v3559_v15 = vmax.f32 %v3487_v52, 0.0 }
 0x30c   : > { %v3590_v35 = vmax.f32 %v3554_v57, %v3556_v20  ;;  %v3557_v49 = vmax.f32 %v3485_v34, 0.0  ;;  %v7224_v39 = vpop.f32.mrb[60].mxu0  ;;  %v9753_v20 = vld [vmem:[#allocation29_spill] sm:$0xff] }
 0x30d   : > { %v7572_v63 = vadd.f32 %v7224_v39, %v9745_v4  ;;  %v3303_v41 = vpop.f32.mrb[61].mxu0 }
 0x30e   : > { %v3614_v1 = vmax.f32 %v3590_v35, %v3558_v62  ;;  %v3591_v2 = vmax.f32 %v3555_v48, %v3557_v49  ;;  %v7573_v22 = vadd.f32 %v3303_v41, %v9746_v16  ;;  %v7225_v24 = vpop.f32.mrb[62].mxu0  ;;  %v9754_v35 = vld [vmem:[#allocation30_spill] sm:$0xff] }
 0x30f   : > { %v3490_v11 = vadd.f32 %v7572_v63, %v9065_v56  ;;  %v7574_v58 = vadd.f32 %v7225_v24, %v9747_v26  ;;  %v3306_v28 = vpop.f32.mrb[63].mxu0  ;;  %v9755_v63 = vld [vmem:[#allocation31_spill] sm:$0xff] }
 0x310   : > { %v3615_v25 = vmax.f32 %v3591_v2, %v3559_v15  ;;  %v3488_v42 = vadd.f32 %v7573_v22, %v9065_v56  ;;  %v7575_v54 = vadd.f32 %v3306_v28, %v9748_v43  ;;  %v9756_v22 = vld [vmem:[#allocation32_spill] sm:$0xff] }
 0x311   : > { %v3562_v44 = vmax.f32 %v3490_v11, 0.0  ;;  %v3491_v5 = vadd.f32 %v7574_v58, %v9065_v56  ;;  %v9242_v60 = vld [vmem:[#allocation3 + $0x50] sm:$0xff] }
 0x312   : > { %v3632_v45 = vpack.c.bf16 %v3615_v25, %v3614_v1  ;;  %v3560_v47 = vmax.f32 %v3488_v42, 0.0  ;;  %v3489_v6 = vadd.f32 %v7575_v54, %v9065_v56  ;;  %7253 = vmatmul.mubr.msk.bf16.gmra.mrb[88].mxu1 %vm3620_vm2, %v9242_v60 }
 0x313   : > { %v3563_v3 = vmax.f32 %v3491_v5, 0.0 }
 0x314   : > { %3644 = vst.msk [vmem:[#allocation3 + $0x58] sm:$0xff] %vm3620_vm2, %v3632_v45  ;;  %v3592_v29 = vmax.f32 %v3560_v47, %v3562_v44  ;;  %v3561_v61 = vmax.f32 %v3489_v6, 0.0  ;;  %v7228_v30 = vpop.f32.mrb[64].mxu0  ;;  %v3650_v6 = vld [vmem:[#allocation3] sm:$0xff] }
 0x315   : > { %v7576_v7 = vadd.f32 %v7228_v30, %v9749_v55  ;;  %v3319_v40 = vpop.f32.mrb[65].mxu0  ;;  %v8008_v30 = vld [vmem:[%s9696_s3] sm:$0xff]  }
 0x316   : > { %v3593_v53 = vmax.f32 %v3561_v61, %v3563_v3  ;;  %v7577_v46 = vadd.f32 %v3319_v40, %v9750_v31  ;;  %v7229_v38 = vpop.f32.mrb[66].mxu0  ;;  %v9757_v61 = vld [vmem:[#allocation6_spill] sm:$0xff] }
 0x317   : > { %v7578_v50 = vadd.f32 %v7229_v38, %v9751_v33  ;;  %v3322_v36 = vpop.f32.mrb[67].mxu0  ;;  %v3494_v48 = vadd.f32 %v7576_v7, %v9065_v56 }
 0x318   : > { %v3492_v17 = vadd.f32 %v7577_v46, %v9065_v56  ;;  %v7579_v32 = vadd.f32 %v3322_v36, %v9752_v13 }
 0x319   : > { %v3495_v4 = vadd.f32 %v7578_v50, %v9065_v56  ;;  %v3566_v11 = vmax.f32 %v3494_v48, 0.0 }
 0x31a   : > { %v3564_v14 = vmax.f32 %v3492_v17, 0.0  ;;  %v3493_v18 = vadd.f32 %v7579_v32, %v9065_v56 }
 0x31b   : > { %v9254_v8 = vld [vmem:[#allocation3 + $0x58] sm:$0xff]  ;;  %v3567_v25 = vmax.f32 %v3495_v4, 0.0 }
 0x31c   : > { %v3616_v19 = vmax.f32 %v3592_v29, %v3564_v14  ;;  %v3565_v21 = vmax.f32 %v3493_v18, 0.0  ;;  %v7232_v57 = vpop.f32.mrb[68].mxu0  ;;  %7256 = vmatprep.mubr.msk.bf16.mxu1 %vm3620_vm2, %v9254_v8 }
 0x31d   : > { %v7580_v52 = vadd.f32 %v7232_v57, %v9753_v20  ;;  %v3335_v34 = vpop.f32.mrb[69].mxu0 }
 0x31e   : > { %v3617_v62 = vmax.f32 %v3593_v53, %v3565_v21  ;;  %v7581_v49 = vadd.f32 %v3335_v34, %v9754_v35  ;;  %v7233_v39 = vpop.f32.mrb[70].mxu0 }
 0x31f   : > { %v7582_v41 = vadd.f32 %v7233_v39, %v9755_v63  ;;  %v3338_v1 = vpop.f32.mrb[71].mxu0  ;;  %v3498_v2 = vadd.f32 %v7580_v52, %v9065_v56 }
 0x320   : > { %v3633_v15 = vpack.c.bf16 %v3617_v62, %v3616_v19  ;;  %v3496_v16 = vadd.f32 %v7581_v49, %v9065_v56  ;;  %v7583_v24 = vadd.f32 %v3338_v1, %v9756_v22 }
 0x321   : > { %v3499_v58 = vadd.f32 %v7582_v41, %v9065_v56  ;;  %v3570_v42 = vmax.f32 %v3498_v2, 0.0 }
 0x322   : > { %3645 = vst.msk [vmem:[#allocation3 + $0x60] sm:$0xff] %vm3620_vm2, %v3633_v15  ;;  %v3568_v26 = vmax.f32 %v3496_v16, 0.0  ;;  %v3497_v28 = vadd.f32 %v7583_v24, %v9065_v56  ;;  %v8006_v56 = vld [vmem:[%s9695_s2 + $0x18] sm:$0xff]  }
 0x323   : > { %v3571_v5 = vmax.f32 %v3499_v58, 0.0 }
 0x324   : > { %v3594_v43 = vmax.f32 %v3566_v11, %v3568_v26  ;;  %v3569_v54 = vmax.f32 %v3497_v28, 0.0 }
 0x326   : > { %v3618_v44 = vmax.f32 %v3594_v43, %v3570_v42  ;;  %v3595_v45 = vmax.f32 %v3567_v25, %v3569_v54 }
 0x328   : > { %v3619_v47 = vmax.f32 %v3595_v45, %v3571_v5  ;;  %v4779_v5 = vld [vmem:[%s9697_s4 + $0x10] sm:$0xff]  ;;  %v4780_v45 = vld [vmem:[%s9697_s4 + $0x18] sm:$0xff] }
 0x329   : > { %v3664_v3 = vld [vmem:[#allocation3 + $0x60] sm:$0xff] }
 0x32a   : > { %v3634_v29 = vpack.c.bf16 %v3619_v47, %v3618_v44  ;;  %7257 = vmatmul.mubr.msk.bf16.gmra.mrb[92].mxu1 %vm3620_vm2, %v3664_v3 }
 0x32b   : > { %7262 = vmatprep.mubr.msk.bf16.mxu1 %vm3620_vm2, %v3650_v6 }
 0x32c   : > { %3646 = vst.msk [vmem:[#allocation3 + $0x68] sm:$0xff] %vm3620_vm2, %v3634_v29 }
 0x332   : > { %7263 = vmatmul.mubr.msk.bf16.vlgmr.msra.gmra.mrb[72].mxu1 %vm3620_vm2, %v9757_v61 }
 0x333   : > { %7287 = vmatpush3.bf16.msra.mxu1 %v9101_v9  ;;  %7266 = vmatprep.mubr.msk.bf16.mxu1 %vm3620_vm2, %v9104_v10  ;;  %v8007_v9 = vld [vmem:[%s9695_s2 + $0x20] sm:$0xff]  }
 0x334   : > { %7312 = vmatprep.subr.bf16.mxu1 %v8006_v56 }
 0x33a   : > { %7267 = vmatmul.mubr.msk.bf16.gmra.mrb[76].mxu1 %vm3620_vm2, %v9118_v37 }
 0x33b   : > { %7270 = vmatprep.mubr.msk.bf16.mxu1 %vm3620_vm2, %v9140_v51 }
 0x342   : > { %7271 = vmatmul.mubr.msk.bf16.gmra.mrb[80].mxu1 %vm3620_vm2, %v9152_v59 }
 0x343   : > { %7274 = vmatprep.mubr.msk.bf16.mxu1 %vm3620_vm2, %v9174_v23 }
 0x34a   : > { %7275 = vmatmul.mubr.msk.bf16.gmra.mrb[84].mxu1 %vm3620_vm2, %v9186_v12 }
 0x34b   : > { %7278 = vmatprep.mubr.msk.bf16.mxu1 %vm3620_vm2, %v9208_v0 }
 0x352   : > { %7279 = vmatmul.mubr.msk.bf16.gmra.mrb[88].mxu1 %vm3620_vm2, %v9220_v27 }
 0x353   : > { %7282 = vmatprep.mubr.msk.bf16.mxu1 %vm3620_vm2, %v9242_v60 }
 0x35a   : > { %7283 = vmatmul.mubr.msk.bf16.gmra.mrb[92].mxu1 %vm3620_vm2, %v9254_v8 }
 0x35b   : > { %7288 = vmatprep.mubr.msk.bf16.mxu1 %vm3620_vm2, %v9104_v10  ;;  %v3987_v10 = vld [vmem:[#allocation3 + $0x68] sm:$0xff] }
 0x362   : > { %7289 = vmatmul.mubr.msk.bf16.vlgmr.msra.gmra.mrb[72].mxu1 %vm3620_vm2, %v9118_v37 }
 0x363   : > { %7313 = vmatpush3.bf16.msra.mxu1 %v8006_v56  ;;  %7292 = vmatprep.mubr.msk.bf16.mxu1 %vm3620_vm2, %v9140_v51 }
 0x364   : > { %7338 = vmatprep.subr.bf16.mxu1 %v8007_v9 }
 0x36a   : > { %7293 = vmatmul.mubr.msk.bf16.gmra.mrb[76].mxu1 %vm3620_vm2, %v9152_v59 }
 0x36b   : > { %7296 = vmatprep.mubr.msk.bf16.mxu1 %vm3620_vm2, %v9174_v23 }
 0x372   : > { %7297 = vmatmul.mubr.msk.bf16.gmra.mrb[80].mxu1 %vm3620_vm2, %v9186_v12 }
 0x373   : > { %7300 = vmatprep.mubr.msk.bf16.mxu1 %vm3620_vm2, %v9208_v0 }
 0x37a   : > { %7301 = vmatmul.mubr.msk.bf16.gmra.mrb[84].mxu1 %vm3620_vm2, %v9220_v27 }
 0x37b   : > { %7304 = vmatprep.mubr.msk.bf16.mxu1 %vm3620_vm2, %v9242_v60 }
 0x382   : > { %7305 = vmatmul.mubr.msk.bf16.gmra.mrb[88].mxu1 %vm3620_vm2, %v9254_v8 }
 0x383   : > { %7308 = vmatprep.mubr.msk.bf16.mxu1 %vm3620_vm2, %v3664_v3 }
 0x38a   : > { %7309 = vmatmul.mubr.msk.bf16.gmra.mrb[92].mxu1 %vm3620_vm2, %v3987_v10 }
 0x38b   : > { %7314 = vmatprep.mubr.msk.bf16.mxu1 %vm3620_vm2, %v9118_v37  ;;  %v4196_v37 = vld [vmem:[#allocation3 + $0x70] sm:$0xff] }
 0x392   : > { %7315 = vmatmul.mubr.msk.bf16.vlgmr.msra.gmra.mrb[72].mxu1 %vm3620_vm2, %v9140_v51 }
 0x393   : > { %7339 = vmatpush3.bf16.msra.mxu1 %v8007_v9  ;;  %7318 = vmatprep.mubr.msk.bf16.mxu1 %vm3620_vm2, %v9152_v59 }
 0x394   : > { %7364 = vmatprep.subr.bf16.mxu1 %v8008_v30 }
 0x39a   : > { %7319 = vmatmul.mubr.msk.bf16.gmra.mrb[76].mxu1 %vm3620_vm2, %v9174_v23 }
 0x39b   : > { %7322 = vmatprep.mubr.msk.bf16.mxu1 %vm3620_vm2, %v9186_v12 }
 0x3a2   : > { %7323 = vmatmul.mubr.msk.bf16.gmra.mrb[80].mxu1 %vm3620_vm2, %v9208_v0 }
 0x3a3   : > { %7326 = vmatprep.mubr.msk.bf16.mxu1 %vm3620_vm2, %v9220_v27 }
 0x3aa   : > { %7327 = vmatmul.mubr.msk.bf16.gmra.mrb[84].mxu1 %vm3620_vm2, %v9242_v60 }
 0x3ab   : > { %7330 = vmatprep.mubr.msk.bf16.mxu1 %vm3620_vm2, %v9254_v8 }
 0x3b2   : > { %7331 = vmatmul.mubr.msk.bf16.gmra.mrb[88].mxu1 %vm3620_vm2, %v3664_v3 }
 0x3b3   : > { %7334 = vmatprep.mubr.msk.bf16.mxu1 %vm3620_vm2, %v3987_v10 }
 0x3ba   : > { %7335 = vmatmul.mubr.msk.bf16.gmra.mrb[92].mxu1 %vm3620_vm2, %v4196_v37 }
 0x3bb   : > { %7340 = vmatprep.mubr.msk.bf16.mxu1 %vm3620_vm2, %v9140_v51  ;;  %v4405_v51 = vld [vmem:[#allocation3 + $0x78] sm:$0xff] }
 0x3c2   : > { %7341 = vmatmul.mubr.msk.bf16.vlgmr.msra.gmra.mrb[72].mxu1 %vm3620_vm2, %v9152_v59  ;;  %v4777_v59 = vld [vmem:[%s9697_s4] sm:$0xff] }
 0x3c3   : > { %7344 = vmatprep.mubr.msk.bf16.mxu1 %vm3620_vm2, %v9174_v23  ;;  %7365 = vmatpush3.bf16.msra.mxu1 %v8008_v30  ;;  %v4778_v23 = vld [vmem:[%s9697_s4 + $0x8] sm:$0xff] }
 0x3ca   : > { %7345 = vmatmul.mubr.msk.bf16.gmra.mrb[76].mxu1 %vm3620_vm2, %v9186_v12  ;;  %v9373_v12 = vpack.c.bf16 %v4778_v23, %v4777_v59 }
 0x3cb   : > { %7348 = vmatprep.mubr.msk.bf16.mxu1 %vm3620_vm2, %v9208_v0  ;;  %v9379_v0 = vld [vmem:[%s9701_s8 + $0x1] ss:$0 sm:$0xff] }
 0x3cc   : > { %7479 = vmatprep.subr.bf16.mxu1 %v9373_v12 }
 0x3d2   : > { %7349 = vmatmul.mubr.msk.bf16.gmra.mrb[80].mxu1 %vm3620_vm2, %v9220_v27 }
 0x3d3   : > { %7352 = vmatprep.mubr.msk.bf16.mxu1 %vm3620_vm2, %v9242_v60 }
 0x3da   : > { %7353 = vmatmul.mubr.msk.bf16.gmra.mrb[84].mxu1 %vm3620_vm2, %v9254_v8 }
 0x3db   : > { %7356 = vmatprep.mubr.msk.bf16.mxu1 %vm3620_vm2, %v3664_v3 }
 0x3e2   : > { %7357 = vmatmul.mubr.msk.bf16.gmra.mrb[88].mxu1 %vm3620_vm2, %v3987_v10 }
 0x3e3   : > { %7360 = vmatprep.mubr.msk.bf16.mxu1 %vm3620_vm2, %v4196_v37  ;;  %v9404_v37 = vpack.c.bf16 %v4780_v45, %v4779_v5 }
 0x3ea   : > { %7361 = vmatmul.mubr.msk.bf16.gmra.mrb[92].mxu1 %vm3620_vm2, %v4405_v51 }
 0x495   : > { %v7342_v27 = vpop.f32.mrb[72].mxu1 }
 0x496   : > { %v4611_v60 = vadd.f32 %v7342_v27, %v9379_v0  ;;  %v4484_v55 = vpop.f32.mrb[73].mxu1 }
 0x497   : > { %v4609_v7 = vadd.f32 %v9379_v0, %v4484_v55  ;;  %v7343_v40 = vpop.f32.mrb[74].mxu1 }
 0x498   : > { %v4635_v53 = vmax.f32 %v4611_v60, 0.0  ;;  %v4612_v31 = vadd.f32 %v7343_v40, %v9379_v0  ;;  %v4487_v46 = vpop.f32.mrb[75].mxu1 }
 0x499   : > { %v4633_v38 = vmax.f32 %v4609_v7, 0.0  ;;  %v4610_v33 = vadd.f32 %v9379_v0, %v4487_v46 }
 0x49a   : > { %v4636_v50 = vmax.f32 %v4612_v31, 0.0 }
 0x49b   : > { %v4657_v36 = vmax.f32 %v4633_v38, %v4635_v53  ;;  %v4634_v17 = vmax.f32 %v4610_v33, 0.0  ;;  %v8170_v38 = vmov 0.0  }
 0x49d   : > { %v4658_v13 = vmax.f32 %v4634_v17, %v4636_v50  ;;  %v7346_v32 = vpop.f32.mrb[76].mxu1 }
 0x49e   : > { %v4500_v14 = vpop.f32.mrb[77].mxu1  ;;  %v4615_v34 = vadd.f32 %v7346_v32, %v9379_v0 }
 0x49f   : > { %v4613_v18 = vadd.f32 %v9379_v0, %v4500_v14  ;;  %v7347_v8 = vpop.f32.mrb[78].mxu1 }
 0x4a0   : > { %v4503_v19 = vpop.f32.mrb[79].mxu1  ;;  %v4616_v49 = vadd.f32 %v7347_v8, %v9379_v0  ;;  %v4639_v15 = vmax.f32 %v4615_v34, 0.0 }
 0x4a1   : > { %v4637_v21 = vmax.f32 %v4613_v18, 0.0  ;;  %v4614_v57 = vadd.f32 %v9379_v0, %v4503_v19 }
 0x4a2   : > { %v4640_v24 = vmax.f32 %v4616_v49, 0.0 }
 0x4a3   : > { %v4665_v20 = vmax.f32 %v4657_v36, %v4637_v21  ;;  %v4638_v52 = vmax.f32 %v4614_v57, 0.0 }
 0x4a5   : > { %v4666_v48 = vmax.f32 %v4658_v13, %v4638_v52  ;;  %v7350_v62 = vpop.f32.mrb[80].mxu1 }
 0x4a6   : > { %v4516_v35 = vpop.f32.mrb[81].mxu1  ;;  %v4619_v4 = vadd.f32 %v7350_v62, %v9379_v0 }
 0x4a7   : > { %v4673_v39 = vpack.c.bf16 %v4666_v48, %v4665_v20  ;;  %v4617_v63 = vadd.f32 %v9379_v0, %v4516_v35  ;;  %v7351_v41 = vpop.f32.mrb[82].mxu1 }
 0x4a8   : > { %v4519_v1 = vpop.f32.mrb[83].mxu1  ;;  %v4620_v16 = vadd.f32 %v7351_v41, %v9379_v0  ;;  %v4643_v11 = vmax.f32 %v4619_v4, 0.0 }
 0x4a9   : > { %v4641_v2 = vmax.f32 %v4617_v63, 0.0  ;;  %v4618_v22 = vadd.f32 %v9379_v0, %v4519_v1  ;;  %7366 = vmatprep.mubr.msk.bf16.mxu1 %vm3620_vm2, %v4673_v39 }
 0x4aa   : > { %v4644_v25 = vmax.f32 %v4620_v16, 0.0 }
 0x4ab   : > { %v4659_v26 = vmax.f32 %v4639_v15, %v4641_v2  ;;  %v4642_v58 = vmax.f32 %v4618_v22, 0.0 }
 0x4ad   : > { %v4667_v28 = vmax.f32 %v4659_v26, %v4643_v11  ;;  %v4660_v42 = vmax.f32 %v4640_v24, %v4642_v58  ;;  %v7354_v43 = vpop.f32.mrb[84].mxu1 }
 0x4ae   : > { %v4623_v54 = vadd.f32 %v7354_v43, %v9379_v0  ;;  %v4532_v44 = vpop.f32.mrb[85].mxu1 }
 0x4af   : > { %v4668_v47 = vmax.f32 %v4660_v42, %v4644_v25  ;;  %v4621_v6 = vadd.f32 %v9379_v0, %v4532_v44  ;;  %v7355_v3 = vpop.f32.mrb[86].mxu1 }
 0x4b0   : > { %v4647_v29 = vmax.f32 %v4623_v54, 0.0  ;;  %v4624_v56 = vadd.f32 %v7355_v3, %v9379_v0  ;;  %v4535_v61 = vpop.f32.mrb[87].mxu1 }
 0x4b1   : > { %v4674_v9 = vpack.c.bf16 %v4668_v47, %v4667_v28  ;;  %v4645_v10 = vmax.f32 %v4621_v6, 0.0  ;;  %v4622_v30 = vadd.f32 %v9379_v0, %v4535_v61 }
 0x4b2   : > { %v4648_v51 = vmax.f32 %v4624_v56, 0.0 }
 0x4b3   : > { %v4661_v59 = vmax.f32 %v4645_v10, %v4647_v29  ;;  %v4646_v23 = vmax.f32 %v4622_v30, 0.0  ;;  %7367 = vmatmul.mubr.msk.bf16.vlgmr.msra.gmra.mrb[96].mxu1 %vm3620_vm2, %v4674_v9 }
 0x4b4   : > { %7481 = vmatpush3.bf16.msra.mxu1 %v9373_v12 }
 0x4b5   : > { %v4662_v27 = vmax.f32 %v4646_v23, %v4648_v51  ;;  %v7358_v60 = vpop.f32.mrb[88].mxu1  ;;  %7483 = vmatprep.subr.bf16.mxu1 %v9404_v37 }
 0x4b6   : > { %v4548_v55 = vpop.f32.mrb[89].mxu1  ;;  %v4627_v36 = vadd.f32 %v7358_v60, %v9379_v0 }
 0x4b7   : > { %v4625_v7 = vadd.f32 %v9379_v0, %v4548_v55  ;;  %v7359_v40 = vpop.f32.mrb[90].mxu1 }
 0x4b8   : > { %v4551_v53 = vpop.f32.mrb[91].mxu1  ;;  %7485 = vmatpush3.bf16.msra.mxu1 %v9404_v37  ;;  %v4628_v14 = vadd.f32 %v7359_v40, %v9379_v0  ;;  %v4651_v20 = vmax.f32 %v4627_v36, 0.0 }
 0x4b9   : > { %v4649_v31 = vmax.f32 %v4625_v7, 0.0  ;;  %v4626_v46 = vadd.f32 %v9379_v0, %v4551_v53  ;;  %7385 = vmatprep.subr.bf16.mxu1 %v8170_v38 }
 0x4ba   : > { %v4652_v62 = vmax.f32 %v4628_v14, 0.0 }
 0x4bb   : > { %v4669_v33 = vmax.f32 %v4661_v59, %v4649_v31  ;;  %v4650_v50 = vmax.f32 %v4626_v46, 0.0 }
 0x4bd   : > { %v4670_v17 = vmax.f32 %v4662_v27, %v4650_v50  ;;  %v7362_v13 = vpop.f32.mrb[92].mxu1 }
 0x4be   : > { %v4564_v32 = vpop.f32.mrb[93].mxu1  ;;  %v4631_v8 = vadd.f32 %v7362_v13, %v9379_v0 }
 0x4bf   : > { %v4675_v18 = vpack.c.bf16 %v4670_v17, %v4669_v33  ;;  %v4629_v19 = vadd.f32 %v9379_v0, %v4564_v32  ;;  %v7363_v21 = vpop.f32.mrb[94].mxu1 }
 0x4c0   : > { %v4567_v57 = vpop.f32.mrb[95].mxu1  ;;  %v4632_v34 = vadd.f32 %v7363_v21, %v9379_v0  ;;  %v4655_v35 = vmax.f32 %v4631_v8, 0.0 }
 0x4c1   : > { %v4653_v52 = vmax.f32 %v4629_v19, 0.0  ;;  %v4630_v48 = vadd.f32 %v9379_v0, %v4567_v57  ;;  %7370 = vmatprep.mubr.msk.bf16.mxu1 %vm3620_vm2, %v4675_v18  ;;  %v6513_v0 = vld [vmem:[%s9701_s8 + $0x2] ss:$0 sm:$0xff] }
 0x4c2   : > { %v4656_v63 = vmax.f32 %v4632_v34, 0.0 }
 0x4c3   : > { %v4663_v49 = vmax.f32 %v4651_v20, %v4653_v52  ;;  %v4654_v39 = vmax.f32 %v4630_v48, 0.0 }
 0x4c5   : > { %v4671_v4 = vmax.f32 %v4663_v49, %v4655_v35  ;;  %v4664_v41 = vmax.f32 %v4652_v62, %v4654_v39 }
 0x4c7   : > { %v4672_v1 = vmax.f32 %v4664_v41, %v4656_v63 }
 0x4c9   : > { %v4676_v15 = vpack.c.bf16 %v4672_v1, %v4671_v4 }
 0x4cb   : > { %7371 = vmatmul.mubr.msk.bf16.gmra.mrb[100].mxu1 %vm3620_vm2, %v4676_v15 }
 0x4cc   : > { %7382 = vmatprep.mubr.f32.mxu1 %v8170_v38 }
 0x4d3   : > { %7383 = vmatmul.mubr.f32.vlgmr.msra.gmra.mrb[104].mxu1 %v8170_v38 }
 0x4d4   : > { %7387 = vmatprep.mubr.msk.bf16.mxu1 %vm8174_vm3, %v8170_v38 }
 0x586   : > { %v7368_v2 = vpop.f32.mrb[96].mxu1 }
 0x587   : > { %v9426_v16 = vadd.f32 %v7368_v2, %v6513_v0  ;;  %v4738_v22 = vpop.f32.mrb[97].mxu1 }
 0x588   : > { %v7369_v24 = vpop.f32.mrb[98].mxu1  ;;  %v9434_v45 = vadd.f32 %v6513_v0, %v4738_v22 }
 0x589   : > { %v9428_v11 = vadd.f32 %v7369_v24, %v6513_v0  ;;  %v4741_v26 = vpop.f32.mrb[99].mxu1 }
 0x58a   : > { %v9439_v3 = vadd.f32 %v6513_v0, %v4741_v26 }
 0x59e   : > { %v7372_v58 = vpop.f32.mrb[100].mxu1 }
 0x59f   : > { %v4754_v28 = vpop.f32.mrb[101].mxu1  ;;  %v9436_v47 = vadd.f32 %v7372_v58, %v6513_v0 }
 0x5a0   : > { %v9430_v25 = vadd.f32 %v6513_v0, %v4754_v28  ;;  %v7373_v42 = vpop.f32.mrb[102].mxu1  ;;  %v8009_v28 = vld [vmem:[%s9698_s5] sm:$0xff]  }
 0x5a1   : > { %v4757_v43 = vpop.f32.mrb[103].mxu1  ;;  %v9442_v56 = vadd.f32 %v7373_v42, %v6513_v0  ;;  %7386 = vmatpush3.bf16.msra.mxu1 %v8009_v28 }
 0x5a2   : > { %v9432_v54 = vadd.f32 %v6513_v0, %v4757_v43  ;;  %7391 = vmatprep.subr.bf16.mxu1 %v8170_v38 }
 0x5a6   : > { %v7384_v44 = vpop.f32.mrb[104].mxu1 }
 0x5a7   : > { %v4858_v5 = vpop.f32.mrb[105].mxu1  ;;  %v4870_v61 = vadd.f32 %v7384_v44, %v9439_v3  ;;  %v4874_v9 = vadd.f32 %v7384_v44, %v9442_v56 }
 0x5a8   : > { %v4869_v6 = vadd.f32 %v4858_v5, %v9434_v45  ;;  %v4873_v29 = vadd.f32 %v4858_v5, %v9436_v47 }
 0x5a9   : > { %v6521_v27 = vmul.f32 -1.442695, %v4870_v61  ;;  %v6523_v55 = vmul.f32 -1.442695, %v4874_v9 }
 0x5aa   : > { %8017 = vtanh.f32 %v4869_v6  ;;  %v6520_v23 = vmul.f32 -1.442695, %v4869_v6  ;;  %v6522_v60 = vmul.f32 -1.442695, %v4873_v29 }
 0x5ab   : > { %8019 = vtanh.f32 %v4873_v29 }
 0x5ac   : > { %8021 = vtanh.f32 %v4870_v61 }
 0x5ad   : > { %8023 = vtanh.f32 %v4874_v9 }
 0x5ae   : > { %8025 = vpow2.f32 %v6520_v23 }
 0x5af   : > { %8027 = vpow2.f32 %v6521_v27 }
 0x5b0   : > { %8029 = vpow2.f32 %v6522_v60 }
 0x5b1   : > { %8031 = vpow2.f32 %v6523_v55 }
 0x5b4   : > { %v8018_v10 = vpop.eup %8017 }
 0x5b5   : > { %4893 = vrot.lane.b32.xlu0 %v8018_v10, %s8171_s14  ;;  %v8020_v30 = vpop.eup %8019 }
 0x5b6   : > { %4941 = vrot.lane.b32.xlu1 %v8020_v30, %s8171_s14  ;;  %v8022_v51 = vpop.eup %8021 }
 0x5b7   : > { %v8024_v59 = vpop.eup %8023 }
 0x5b8   : > { %v8026_v7 = vpop.eup %8025 }
 0x5b9   : > { %4895 = vrot.lane.b32.xlu0 %v8022_v51, %s8171_s14  ;;  %v8028_v40 = vpop.eup %8027  ;;  %v4881_v53 = vadd.f32 1.0, %v8026_v7  ;;  %v8010_v51 = vld [vmem:[%s9698_s5 + $0x38] sm:$0xff]  }
 0x5ba   : > { %4943 = vrot.lane.b32.xlu1 %v8024_v59, %s8171_s14  ;;  %v8030_v31 = vpop.eup %8029  ;;  %v4882_v46 = vadd.f32 1.0, %v8028_v40 }
 0x5bb   : > { %8033 = vrcp.f32 %v4881_v53  ;;  %v4929_v33 = vadd.f32 1.0, %v8030_v31  ;;  %v8032_v50 = vpop.eup %8031 }
 0x5bc   : > { %8035 = vrcp.f32 %v4882_v46  ;;  %v4930_v36 = vadd.f32 1.0, %v8032_v50 }
 0x5bd   : > { %8037 = vrcp.f32 %v4929_v33 }
 0x5be   : > { %8039 = vrcp.f32 %v4930_v36 }
 0x5c5   : > { %v8034_v17 = vpop.eup %8033 }
 0x5c6   : > { %v8036_v18 = vpop.eup %8035  ;;  %v4889_v48 = vmul.f32 0.0, %v8034_v17 }
 0x5c7   : > { %v8038_v8 = vpop.eup %8037  ;;  %v4890_v49 = vmul.f32 0.0, %v8036_v18 }
 0x5c8   : > { %v8040_v52 = vpop.eup %8039  ;;  %v4937_v39 = vmul.f32 0.0, %v8038_v8 }
 0x5c9   : > { %v4938_v15 = vmul.f32 0.0, %v8040_v52 }
 0x627   : > { %v4894_v13 = vpop.permute.xlu0 %4893 }
 0x628   : > { %v4899_v32 = vmul.f32 %v8034_v17, %v4894_v13  ;;  %v4942_v14 = vpop.permute.xlu1 %4941 }
 0x629   : > { %v4947_v21 = vmul.f32 %v8038_v8, %v4942_v14 }
 0x62a   : > { %4903 = vrot.lane.b32.xlu0 %v4899_v32, %s8172_s15 }
 0x62b   : > { %v4896_v19 = vpop.permute.xlu0 %4895 }
 0x62c   : > { %v4900_v57 = vmul.f32 %v8036_v18, %v4896_v19  ;;  %v4944_v20 = vpop.permute.xlu1 %4943 }
 0x62d   : > { %v4948_v34 = vmul.f32 %v8040_v52, %v4944_v20 }
 0x62e   : > { %4905 = vrot.lane.b32.xlu1 %v4900_v57, %s8172_s15  ;;  %4951 = vrot.lane.b32.xlu0 %v4947_v21, %s8172_s15 }
 0x632   : > { %4953 = vrot.lane.b32.xlu1 %v4948_v34, %s8172_s15 }
 0x69c   : > { %v4904_v62 = vpop.permute.xlu0 %4903 }
 0x69d   : > { %v9454_v35 = vadd.f32 %v4904_v62, %v4889_v48 }
 0x69f   : > { %8041 = vtanh.f32 %v9454_v35 }
 0x6a0   : > { %v4906_v4 = vpop.permute.xlu1 %4905  ;;  %v4952_v63 = vpop.permute.xlu0 %4951 }
 0x6a1   : > { %v9457_v41 = vadd.f32 %v4906_v4, %v4890_v49  ;;  %v9459_v1 = vadd.f32 %v4952_v63, %v4937_v39 }
 0x6a3   : > { %8043 = vtanh.f32 %v9457_v41 }
 0x6a4   : > { %8045 = vtanh.f32 %v9459_v1  ;;  %v4954_v0 = vpop.permute.xlu1 %4953 }
 0x6a5   : > { %v9463_v2 = vadd.f32 %v4954_v0, %v4938_v15 }
 0x6a7   : > { %8047 = vtanh.f32 %v9463_v2 }
 0x6a9   : > { %v8042_v22 = vpop.eup %8041 }
 0x6aa   : > { %4915 = vrot.lane.b32.xlu0 %v8042_v22, %s8173_s17 }
 0x6ad   : > { %v8044_v24 = vpop.eup %8043 }
 0x6ae   : > { %v8046_v26 = vpop.eup %8045  ;;  %4917 = vrot.lane.b32.xlu1 %v8044_v24, %s8173_s17 }
 0x6af   : > { %4963 = vrot.lane.b32.xlu0 %v8046_v26, %s8173_s17 }
 0x6b1   : > { %v8048_v58 = vpop.eup %8047 }
 0x6b2   : > { %4965 = vrot.lane.b32.xlu1 %v8048_v58, %s8173_s17 }
 0x71c   : > { %v4916_v42 = vpop.permute.xlu0 %4915 }
 0x71d   : > { %v4921_v44 = vmul.f32 %v8034_v17, %v4916_v42 }
 0x720   : > { %v4918_v43 = vpop.permute.xlu1 %4917 }
 0x721   : > { %v4922_v5 = vmul.f32 %v8036_v18, %v4918_v43  ;;  %v4964_v6 = vpop.permute.xlu0 %4963 }
 0x722   : > { %v4969_v9 = vmul.f32 %v8038_v8, %v4964_v6 }
 0x723   : > { %v4971_v29 = vpack.c.bf16 %v4922_v5, %v4921_v44 }
 0x724   : > { %v4966_v61 = vpop.permute.xlu1 %4965 }
 0x725   : > { %v4970_v10 = vmul.f32 %v8040_v52, %v4966_v61  ;;  %4975 = vrot.lane.b32.xlu0 %v4971_v29, %s8175_s20 }
 0x727   : > { %v5029_v30 = vpack.c.bf16 %v4970_v10, %v4969_v9 }
 0x729   : > { %5089 = vrot.lane.b32.xlu0 %v4921_v44, %s8175_s20  ;;  %5033 = vrot.lane.b32.xlu1 %v5029_v30, %s8172_s15 }
 0x72d   : > { %5091 = vrot.lane.b32.xlu0 %v4922_v5, %s8175_s20  ;;  %5097 = vrot.lane.b32.xlu1 %v4969_v9, %s8173_s17 }
 0x731   : > { %5099 = vrot.lane.b32.xlu1 %v4970_v10, %s8173_s17 }
 0x797   : > { %v4976_v59 = vpop.permute.xlu0 %4975 }
 0x798   : > { %7388 = vmatmul.mubr.msk.bf16.vlgmr.msra.gmra.mrb[108].mxu1 %vm3620_vm2, %v4976_v59 }
 0x799   : > { %7392 = vmatpush3.bf16.msra.mxu1 %v8010_v51  ;;  %7393 = vmatprep.mubr.msk.bf16.mxu1 %vm8174_vm3, %v8170_v38 }
 0x79a   : > { %7487 = vmatprep.subr.bf16.mxu1 %v9373_v12 }
 0x79b   : > { %v5034_v23 = vpop.permute.xlu1 %5033  ;;  %v5090_v60 = vpop.permute.xlu0 %5089 }
 0x79f   : > { %v5098_v27 = vpop.permute.xlu1 %5097  ;;  %v5092_v40 = vpop.permute.xlu0 %5091 }
 0x7a0   : > { %v5103_v55 = vsel %vm3620_vm2, %v5090_v60, %v5098_v27 }
 0x7a3   : > { %v5100_v7 = vpop.permute.xlu1 %5099 }
 0x7a4   : > { %7394 = vmatmul.mubr.msk.bf16.vlgmr.msra.gmra.mrb[108].mxu1 %vm3620_vm2, %v5034_v23  ;;  %v5104_v53 = vsel %vm3620_vm2, %v5092_v40, %v5100_v7  ;;  %v8011_v40 = vld [vmem:[%s9698_s5 + $0x10] sm:$0xff]  }
 0x7a5   : > { %7489 = vmatpush3.bf16.msra.mxu1 %v9373_v12  ;;  %7405 = vmatprep.mubr.msk.f32.mxu1 %vm4788_vm4, %v5103_v55 }
 0x7a6   : > { %7491 = vmatprep.subr.bf16.mxu1 %v9404_v37 }
 0x7a9   : > { %7493 = vmatpush3.bf16.msra.mxu1 %v9404_v37 }
 0x7aa   : > { %7408 = vmatprep.subr.bf16.mxu1 %v8170_v38 }
 0x7ac   : > { %7406 = vmatmul.mubr.msk.f32.vlgmr.msra.gmra.mrb[106].mxu1 %vm4788_vm4, %v5104_v53 }
 0x7ad   : > { %7410 = vmatprep.mubr.msk.bf16.mxu1 %vm8174_vm3, %v8170_v38  ;;  %7409 = vmatpush3.bf16.msra.mxu1 %v8011_v40 }
 0x7ae   : > { %7414 = vmatprep.subr.bf16.mxu1 %v8170_v38 }
 0x87f   : > { %v7407_v31 = vpop.f32.mrb[106].mxu1 }
 0x880   : > { %v5189_v46 = vadd.f32 %v7407_v31, %v9428_v11  ;;  %v5177_v33 = vpop.f32.mrb[107].mxu1  ;;  %v5193_v50 = vadd.f32 %v7407_v31, %v9432_v54 }
 0x881   : > { %v5188_v36 = vadd.f32 %v5177_v33, %v9426_v16  ;;  %v5192_v17 = vadd.f32 %v5177_v33, %v9430_v25 }
 0x882   : > { %8049 = vtanh.f32 %v5189_v46  ;;  %v6531_v8 = vmul.f32 -1.442695, %v5189_v46  ;;  %v6533_v19 = vmul.f32 -1.442695, %v5193_v50 }
 0x883   : > { %8051 = vtanh.f32 %v5193_v50  ;;  %v6530_v21 = vmul.f32 -1.442695, %v5188_v36  ;;  %v6532_v57 = vmul.f32 -1.442695, %v5192_v17 }
 0x884   : > { %8053 = vtanh.f32 %v5188_v36 }
 0x885   : > { %8055 = vtanh.f32 %v5192_v17 }
 0x886   : > { %8057 = vpow2.f32 %v6531_v8 }
 0x887   : > { %8059 = vpow2.f32 %v6533_v19 }
 0x888   : > { %8061 = vpow2.f32 %v6530_v21 }
 0x889   : > { %8063 = vpow2.f32 %v6532_v57 }
 0x88c   : > { %v8050_v13 = vpop.eup %8049 }
 0x88d   : > { %5214 = vrot.lane.b32.xlu1 %v8050_v13, %s8171_s14  ;;  %v8052_v32 = vpop.eup %8051 }
 0x88e   : > { %v8054_v14 = vpop.eup %8053 }
 0x88f   : > { %5212 = vrot.lane.b32.xlu0 %v8054_v14, %s8171_s14  ;;  %v8056_v18 = vpop.eup %8055  ;;  %v8012_v14 = vld [vmem:[%s9698_s5 + $0x28] sm:$0xff]  }
 0x890   : > { %v8058_v20 = vpop.eup %8057 }
 0x891   : > { %5262 = vrot.lane.b32.xlu1 %v8052_v32, %s8171_s14  ;;  %v5201_v52 = vadd.f32 1.0, %v8058_v20  ;;  %v8060_v34 = vpop.eup %8059 }
 0x892   : > { %v8062_v48 = vpop.eup %8061  ;;  %v5249_v62 = vadd.f32 1.0, %v8060_v34 }
 0x893   : > { %5260 = vrot.lane.b32.xlu0 %v8056_v18, %s8171_s14  ;;  %8065 = vrcp.f32 %v5201_v52  ;;  %v5200_v49 = vadd.f32 1.0, %v8062_v48  ;;  %v8064_v39 = vpop.eup %8063 }
 0x894   : > { %8067 = vrcp.f32 %v5249_v62  ;;  %v5248_v4 = vadd.f32 1.0, %v8064_v39 }
 0x895   : > { %8069 = vrcp.f32 %v5200_v49 }
 0x896   : > { %8071 = vrcp.f32 %v5248_v4 }
 0x89d   : > { %v8066_v63 = vpop.eup %8065 }
 0x89e   : > { %v8068_v22 = vpop.eup %8067  ;;  %v5209_v6 = vmul.f32 %v8066_v63, %v9457_v41 }
 0x89f   : > { %v8070_v26 = vpop.eup %8069  ;;  %v5257_v9 = vmul.f32 %v8068_v22, %v9463_v2 }
 0x8a0   : > { %v8072_v43 = vpop.eup %8071  ;;  %v5208_v10 = vmul.f32 %v8070_v26, %v9454_v35 }
 0x8a1   : > { %v5256_v41 = vmul.f32 %v8072_v43, %v9459_v1 }
 0x8ff   : > { %v5215_v15 = vpop.permute.xlu1 %5214 }
 0x900   : > { %v5219_v0 = vmul.f32 %v8066_v63, %v5215_v15 }
 0x901   : > { %v5213_v58 = vpop.permute.xlu0 %5212 }
 0x902   : > { %5224 = vrot.lane.b32.xlu1 %v5219_v0, %s8172_s15  ;;  %v5218_v42 = vmul.f32 %v8070_v26, %v5213_v58 }
 0x903   : > { %v5263_v24 = vpop.permute.xlu1 %5262 }
 0x904   : > { %v5267_v28 = vmul.f32 %v8068_v22, %v5263_v24  ;;  %5222 = vrot.lane.b32.xlu0 %v5218_v42, %s8172_s15 }
 0x905   : > { %v5261_v44 = vpop.permute.xlu0 %5260 }
 0x906   : > { %5272 = vrot.lane.b32.xlu1 %v5267_v28, %s8172_s15  ;;  %v5266_v5 = vmul.f32 %v8072_v43, %v5261_v44 }
 0x908   : > { %5270 = vrot.lane.b32.xlu0 %v5266_v5, %s8172_s15 }
 0x974   : > { %v5225_v29 = vpop.permute.xlu1 %5224 }
 0x975   : > { %v9513_v61 = vadd.f32 %v5225_v29, %v5209_v6 }
 0x976   : > { %v5223_v51 = vpop.permute.xlu0 %5222 }
 0x977   : > { %8073 = vtanh.f32 %v9513_v61  ;;  %v9520_v23 = vadd.f32 %v5223_v51, %v5208_v10 }
 0x978   : > { %v5273_v30 = vpop.permute.xlu1 %5272 }
 0x979   : > { %v9518_v59 = vadd.f32 %v5273_v30, %v5257_v9 }
 0x97a   : > { %v5271_v27 = vpop.permute.xlu0 %5270 }
 0x97b   : > { %8075 = vtanh.f32 %v9518_v59  ;;  %v9525_v60 = vadd.f32 %v5271_v27, %v5256_v41 }
 0x97c   : > { %8077 = vtanh.f32 %v9520_v23 }
 0x97d   : > { %8079 = vtanh.f32 %v9525_v60 }
 0x981   : > { %v8074_v2 = vpop.eup %8073 }
 0x982   : > { %5236 = vrot.lane.b32.xlu1 %v8074_v2, %s8173_s17 }
 0x985   : > { %v8076_v35 = vpop.eup %8075 }
 0x986   : > { %v8078_v55 = vpop.eup %8077  ;;  %5284 = vrot.lane.b32.xlu1 %v8076_v35, %s8173_s17 }
 0x987   : > { %5234 = vrot.lane.b32.xlu0 %v8078_v55, %s8173_s17  ;;  %v8080_v7 = vpop.eup %8079 }
 0x98b   : > { %5282 = vrot.lane.b32.xlu0 %v8080_v7, %s8173_s17 }
 0x9f4   : > { %v5237_v1 = vpop.permute.xlu1 %5236 }
 0x9f5   : > { %v5241_v53 = vmul.f32 %v8066_v63, %v5237_v1 }
 0x9f8   : > { %v5285_v46 = vpop.permute.xlu1 %5284 }
 0x9f9   : > { %v5235_v31 = vpop.permute.xlu0 %5234  ;;  %v5289_v36 = vmul.f32 %v8068_v22, %v5285_v46 }
 0x9fa   : > { %v5240_v33 = vmul.f32 %v8070_v26, %v5235_v31 }
 0x9fc   : > { %v5290_v50 = vpack.c.bf16 %v5241_v53, %v5240_v33 }
 0x9fd   : > { %v5283_v17 = vpop.permute.xlu0 %5282 }
 0x9fe   : > { %v5288_v13 = vmul.f32 %v8072_v43, %v5283_v17  ;;  %5294 = vrot.lane.b32.xlu0 %v5290_v50, %s8175_s20 }
 0xa00   : > { %v5348_v32 = vpack.c.bf16 %v5289_v36, %v5288_v13 }
 0xa02   : > { %5408 = vrot.lane.b32.xlu0 %v5240_v33, %s8175_s20  ;;  %5352 = vrot.lane.b32.xlu1 %v5348_v32, %s8172_s15 }
 0xa06   : > { %5410 = vrot.lane.b32.xlu0 %v5241_v53, %s8175_s20  ;;  %5416 = vrot.lane.b32.xlu1 %v5288_v13, %s8173_s17 }
 0xa0a   : > { %5418 = vrot.lane.b32.xlu1 %v5289_v36, %s8173_s17 }
 0xa70   : > { %v5295_v18 = vpop.permute.xlu0 %5294 }
 0xa71   : > { %7411 = vmatmul.mubr.msk.bf16.vlgmr.msra.gmra.mrb[108].mxu1 %vm3620_vm2, %v5295_v18 }
 0xa72   : > { %7415 = vmatpush3.bf16.msra.mxu1 %v8012_v14  ;;  %7416 = vmatprep.mubr.msk.bf16.mxu1 %vm8174_vm3, %v8170_v38 }
 0xa73   : > { %7495 = vmatprep.subr.bf16.mxu1 %v9373_v12 }
 0xa74   : > { %v5353_v8 = vpop.permute.xlu1 %5352  ;;  %v5409_v21 = vpop.permute.xlu0 %5408 }
 0xa78   : > { %v5417_v19 = vpop.permute.xlu1 %5416  ;;  %v5411_v52 = vpop.permute.xlu0 %5410 }
 0xa79   : > { %v5422_v57 = vsel %vm3620_vm2, %v5409_v21, %v5417_v19  ;;  %v8013_v19 = vld [vmem:[%s9698_s5 + $0x20] sm:$0xff]  }
 0xa7c   : > { %v5419_v20 = vpop.permute.xlu1 %5418 }
 0xa7d   : > { %7417 = vmatmul.mubr.msk.bf16.vlgmr.msra.gmra.mrb[108].mxu1 %vm3620_vm2, %v5353_v8  ;;  %v5423_v34 = vsel %vm3620_vm2, %v5411_v52, %v5419_v20 }
 0xa7e   : > { %7497 = vmatpush3.bf16.msra.mxu1 %v9373_v12  ;;  %7428 = vmatprep.mubr.msk.f32.mxu1 %vm4788_vm4, %v5422_v57 }
 0xa7f   : > { %7499 = vmatprep.subr.bf16.mxu1 %v9404_v37 }
 0xa82   : > { %7501 = vmatpush3.bf16.msra.mxu1 %v9404_v37 }
 0xa83   : > { %7431 = vmatprep.subr.bf16.mxu1 %v8170_v38 }
 0xa85   : > { %7429 = vmatmul.mubr.msk.f32.vlgmr.msra.gmra.mrb[112].mxu1 %vm4788_vm4, %v5423_v34 }
 0xa86   : > { %7433 = vmatprep.mubr.msk.bf16.mxu1 %vm8174_vm3, %v8170_v38  ;;  %7432 = vmatpush3.bf16.msra.mxu1 %v8013_v19 }
 0xa87   : > { %7437 = vmatprep.subr.bf16.mxu1 %v8170_v38 }
 0xb58   : > { %v7430_v48 = vpop.f32.mrb[112].mxu1 }
 0xb59   : > { %v5506_v62 = vadd.f32 %v7430_v48, %v9432_v54  ;;  %v5496_v49 = vpop.f32.mrb[113].mxu1  ;;  %v5508_v39 = vadd.f32 %v7430_v48, %v9428_v11 }
 0xb5a   : > { %v5505_v4 = vadd.f32 %v5496_v49, %v9430_v25  ;;  %v5507_v63 = vadd.f32 %v5496_v49, %v9426_v16 }
 0xb5b   : > { %8081 = vtanh.f32 %v5506_v62  ;;  %v6541_v11 = vmul.f32 -1.442695, %v5506_v62  ;;  %v6543_v25 = vmul.f32 -1.442695, %v5508_v39 }
 0xb5c   : > { %8083 = vtanh.f32 %v5508_v39  ;;  %v6540_v24 = vmul.f32 -1.442695, %v5505_v4  ;;  %v6542_v16 = vmul.f32 -1.442695, %v5507_v63 }
 0xb5d   : > { %8085 = vtanh.f32 %v5505_v4  ;;  %v8014_v4 = vld [vmem:[%s9698_s5 + $0x18] sm:$0xff]  }
 0xb5e   : > { %8087 = vtanh.f32 %v5507_v63 }
 0xb5f   : > { %8089 = vpow2.f32 %v6541_v11 }
 0xb60   : > { %8091 = vpow2.f32 %v6543_v25 }
 0xb61   : > { %8093 = vpow2.f32 %v6540_v24 }
 0xb62   : > { %8095 = vpow2.f32 %v6542_v16 }
 0xb65   : > { %v8082_v15 = vpop.eup %8081 }
 0xb66   : > { %5529 = vrot.lane.b32.xlu1 %v8082_v15, %s8171_s14  ;;  %v8084_v0 = vpop.eup %8083 }
 0xb67   : > { %v8086_v22 = vpop.eup %8085 }
 0xb68   : > { %5527 = vrot.lane.b32.xlu0 %v8086_v22, %s8171_s14  ;;  %v8088_v54 = vpop.eup %8087 }
 0xb69   : > { %v8090_v26 = vpop.eup %8089 }
 0xb6a   : > { %5577 = vrot.lane.b32.xlu1 %v8084_v0, %s8171_s14  ;;  %v5516_v58 = vadd.f32 1.0, %v8090_v26  ;;  %v8092_v28 = vpop.eup %8091 }
 0xb6b   : > { %v8094_v42 = vpop.eup %8093  ;;  %v5564_v43 = vadd.f32 1.0, %v8092_v28 }
 0xb6c   : > { %5575 = vrot.lane.b32.xlu0 %v8088_v54, %s8171_s14  ;;  %8097 = vrcp.f32 %v5516_v58  ;;  %v5515_v44 = vadd.f32 1.0, %v8094_v42  ;;  %v8096_v5 = vpop.eup %8095 }
 0xb6d   : > { %8099 = vrcp.f32 %v5564_v43  ;;  %v5563_v6 = vadd.f32 1.0, %v8096_v5 }
 0xb6e   : > { %8101 = vrcp.f32 %v5515_v44 }
 0xb6f   : > { %8103 = vrcp.f32 %v5563_v6 }
 0xb76   : > { %v8098_v29 = vpop.eup %8097 }
 0xb77   : > { %v8100_v30 = vpop.eup %8099  ;;  %v5524_v1 = vmul.f32 %v8098_v29, %v9513_v61 }
 0xb78   : > { %v8102_v41 = vpop.eup %8101  ;;  %v5572_v46 = vmul.f32 %v8100_v30, %v9518_v59 }
 0xb79   : > { %v8104_v55 = vpop.eup %8103  ;;  %v5523_v33 = vmul.f32 %v8102_v41, %v9520_v23 }
 0xb7a   : > { %v5571_v61 = vmul.f32 %v8104_v55, %v9525_v60 }
 0xbd8   : > { %v5530_v9 = vpop.permute.xlu1 %5529 }
 0xbd9   : > { %v5534_v10 = vmul.f32 %v8098_v29, %v5530_v9 }
 0xbda   : > { %v5528_v27 = vpop.permute.xlu0 %5527 }
 0xbdb   : > { %5539 = vrot.lane.b32.xlu1 %v5534_v10, %s8172_s15  ;;  %v5533_v35 = vmul.f32 %v8102_v41, %v5528_v27 }
 0xbdc   : > { %v5578_v51 = vpop.permute.xlu1 %5577 }
 0xbdd   : > { %v5582_v2 = vmul.f32 %v8100_v30, %v5578_v51  ;;  %5537 = vrot.lane.b32.xlu0 %v5533_v35, %s8172_s15 }
 0xbde   : > { %v5576_v7 = vpop.permute.xlu0 %5575 }
 0xbdf   : > { %5587 = vrot.lane.b32.xlu1 %v5582_v2, %s8172_s15  ;;  %v5581_v40 = vmul.f32 %v8104_v55, %v5576_v7 }
 0xbe1   : > { %5585 = vrot.lane.b32.xlu0 %v5581_v40, %s8172_s15 }
 0xc4d   : > { %v5540_v53 = vpop.permute.xlu1 %5539 }
 0xc4e   : > { %v9573_v31 = vadd.f32 %v5540_v53, %v5524_v1 }
 0xc4f   : > { %v5538_v36 = vpop.permute.xlu0 %5537 }
 0xc50   : > { %8105 = vtanh.f32 %v9573_v31  ;;  %v9580_v13 = vadd.f32 %v5538_v36, %v5523_v33 }
 0xc51   : > { %v5588_v50 = vpop.permute.xlu1 %5587 }
 0xc52   : > { %v9578_v17 = vadd.f32 %v5588_v50, %v5572_v46 }
 0xc53   : > { %v5586_v32 = vpop.permute.xlu0 %5585 }
 0xc54   : > { %8107 = vtanh.f32 %v9578_v17  ;;  %v9585_v14 = vadd.f32 %v5586_v32, %v5571_v61 }
 0xc55   : > { %8109 = vtanh.f32 %v9580_v13 }
 0xc56   : > { %8111 = vtanh.f32 %v9585_v14 }
 0xc5a   : > { %v8106_v59 = vpop.eup %8105 }
 0xc5b   : > { %5551 = vrot.lane.b32.xlu1 %v8106_v59, %s8173_s17 }
 0xc5e   : > { %v8108_v23 = vpop.eup %8107 }
 0xc5f   : > { %v8110_v18 = vpop.eup %8109  ;;  %5599 = vrot.lane.b32.xlu1 %v8108_v23, %s8173_s17 }
 0xc60   : > { %5549 = vrot.lane.b32.xlu0 %v8110_v18, %s8173_s17  ;;  %v8112_v8 = vpop.eup %8111 }
 0xc64   : > { %5597 = vrot.lane.b32.xlu0 %v8112_v8, %s8173_s17 }
 0xccd   : > { %v5552_v60 = vpop.permute.xlu1 %5551 }
 0xcce   : > { %v5556_v21 = vmul.f32 %v8098_v29, %v5552_v60 }
 0xcd1   : > { %v5600_v20 = vpop.permute.xlu1 %5599 }
 0xcd2   : > { %v5550_v57 = vpop.permute.xlu0 %5549  ;;  %v5604_v48 = vmul.f32 %v8100_v30, %v5600_v20 }
 0xcd3   : > { %v5555_v52 = vmul.f32 %v8102_v41, %v5550_v57 }
 0xcd5   : > { %v5605_v34 = vpack.c.bf16 %v5556_v21, %v5555_v52 }
 0xcd6   : > { %v5598_v62 = vpop.permute.xlu0 %5597 }
 0xcd7   : > { %v5603_v49 = vmul.f32 %v8104_v55, %v5598_v62  ;;  %5609 = vrot.lane.b32.xlu0 %v5605_v34, %s8175_s20 }
 0xcd9   : > { %v5663_v39 = vpack.c.bf16 %v5604_v48, %v5603_v49 }
 0xcdb   : > { %5723 = vrot.lane.b32.xlu0 %v5555_v52, %s8175_s20  ;;  %5667 = vrot.lane.b32.xlu1 %v5663_v39, %s8172_s15 }
 0xcdf   : > { %5725 = vrot.lane.b32.xlu0 %v5556_v21, %s8175_s20  ;;  %5731 = vrot.lane.b32.xlu1 %v5603_v49, %s8173_s17 }
 0xce3   : > { %5733 = vrot.lane.b32.xlu1 %v5604_v48, %s8173_s17 }
 0xd49   : > { %v5610_v63 = vpop.permute.xlu0 %5609 }
 0xd4a   : > { %7434 = vmatmul.mubr.msk.bf16.vlgmr.msra.gmra.mrb[108].mxu1 %vm3620_vm2, %v5610_v63 }
 0xd4b   : > { %7438 = vmatpush3.bf16.msra.mxu1 %v8014_v4  ;;  %7439 = vmatprep.mubr.msk.bf16.mxu1 %vm8174_vm3, %v8170_v38 }
 0xd4c   : > { %7503 = vmatprep.subr.bf16.mxu1 %v9373_v12 }
 0xd4d   : > { %v5668_v15 = vpop.permute.xlu1 %5667  ;;  %v5724_v22 = vpop.permute.xlu0 %5723 }
 0xd51   : > { %v5732_v0 = vpop.permute.xlu1 %5731  ;;  %v5726_v25 = vpop.permute.xlu0 %5725 }
 0xd52   : > { %v5737_v54 = vsel %vm3620_vm2, %v5724_v22, %v5732_v0 }
 0xd55   : > { %v5734_v11 = vpop.permute.xlu1 %5733 }
 0xd56   : > { %7440 = vmatmul.mubr.msk.bf16.vlgmr.msra.gmra.mrb[108].mxu1 %vm3620_vm2, %v5668_v15  ;;  %v5738_v24 = vsel %vm3620_vm2, %v5726_v25, %v5734_v11  ;;  %v8016_v25 = vld [vmem:[%s9698_s5 + $0x8] sm:$0xff]  }
 0xd57   : > { %7505 = vmatpush3.bf16.msra.mxu1 %v9373_v12  ;;  %7451 = vmatprep.mubr.msk.f32.mxu1 %vm4788_vm4, %v5737_v54 }
 0xd58   : > { %7507 = vmatprep.subr.bf16.mxu1 %v9404_v37 }
 0xd5b   : > { %7509 = vmatpush3.bf16.msra.mxu1 %v9404_v37 }
 0xd5c   : > { %7454 = vmatprep.subr.bf16.mxu1 %v8170_v38 }
 0xd5e   : > { %7452 = vmatmul.mubr.msk.f32.vlgmr.msra.gmra.mrb[114].mxu1 %vm4788_vm4, %v5738_v24 }
 0xd5f   : > { %7456 = vmatprep.mubr.msk.bf16.mxu1 %vm8174_vm3, %v8170_v38 }
 0xe31   : > { %v7453_v16 = vpop.f32.mrb[114].mxu1 }
 0xe32   : > { %v5821_v12 = vadd.f32 %v7453_v16, %v9442_v56  ;;  %v5811_v26 = vpop.f32.mrb[115].mxu1  ;;  %v5823_v58 = vadd.f32 %v7453_v16, %v9439_v3 }
 0xe33   : > { %v5820_v28 = vadd.f32 %v5811_v26, %v9436_v47  ;;  %v5822_v37 = vadd.f32 %v5811_v26, %v9434_v45 }
 0xe34   : > { %8113 = vtanh.f32 %v5821_v12  ;;  %v6551_v3 = vmul.f32 -1.442695, %v5821_v12  ;;  %v6553_v47 = vmul.f32 -1.442695, %v5823_v58  ;;  %v6039_v12 = vld [vmem:[%s9699_s6] sm:$0xf] }
 0xe35   : > { %8115 = vtanh.f32 %v5823_v58  ;;  %v6550_v5 = vmul.f32 -1.442695, %v5820_v28  ;;  %v6552_v45 = vmul.f32 -1.442695, %v5822_v37  ;;  %v6053_v26 = vsel %vm6051_vm5, %v6039_v12, 0 }
 0xe36   : > { %8117 = vtanh.f32 %v5820_v28  ;;  %v6519_v58 = vld [vmem:[%s9701_s8 + $0x3] ss:$0 sm:$0xff] }
 0xe37   : > { %8119 = vtanh.f32 %v5822_v37 }
 0xe38   : > { %8121 = vpow2.f32 %v6551_v3 }
 0xe39   : > { %8123 = vpow2.f32 %v6553_v47 }
 0xe3a   : > { %8125 = vpow2.f32 %v6550_v5 }
 0xe3b   : > { %8127 = vpow2.f32 %v6552_v45  ;;  %v6099_v45 = vld [vmem:[%s9700_s7] sm:$0xf] }
 0xe3e   : > { %v8114_v42 = vpop.eup %8113 }
 0xe3f   : > { %5844 = vrot.lane.b32.xlu1 %v8114_v42, %s8171_s14  ;;  %v8116_v43 = vpop.eup %8115 }
 0xe40   : > { %v8118_v44 = vpop.eup %8117 }
 0xe41   : > { %5842 = vrot.lane.b32.xlu0 %v8118_v44, %s8171_s14  ;;  %v8120_v56 = vpop.eup %8119 }
 0xe42   : > { %v8122_v6 = vpop.eup %8121 }
 0xe43   : > { %5892 = vrot.lane.b32.xlu1 %v8116_v43, %s8171_s14  ;;  %v5831_v29 = vadd.f32 1.0, %v8122_v6  ;;  %v8124_v9 = vpop.eup %8123  ;;  %v6111_v6 = vsel %vm6051_vm5, %v6099_v45, 0 }
 0xe44   : > { %v8126_v10 = vpop.eup %8125  ;;  %v5879_v30 = vadd.f32 1.0, %v8124_v9 }
 0xe45   : > { %5890 = vrot.lane.b32.xlu0 %v8120_v56, %s8171_s14  ;;  %8129 = vrcp.f32 %v5831_v29  ;;  %v5830_v51 = vadd.f32 1.0, %v8126_v10  ;;  %v8128_v41 = vpop.eup %8127  ;;  %v6558_v29 = vld [vmem:[%s9701_s8 + $0x4] ss:$0 sm:$0xff] }
 0xe46   : > { %8131 = vrcp.f32 %v5879_v30  ;;  %v5878_v27 = vadd.f32 1.0, %v8128_v41 }
 0xe47   : > { %8133 = vrcp.f32 %v5830_v51 }
 0xe48   : > { %8135 = vrcp.f32 %v5878_v27 }
 0xe4f   : > { %v8130_v2 = vpop.eup %8129 }
 0xe50   : > { %v8132_v7 = vpop.eup %8131  ;;  %v5839_v32 = vmul.f32 %v8130_v2, %v9573_v31  ;;  %v8015_v31 = vld [vmem:[%s9698_s5 + $0x30] sm:$0xff]  }
 0xe51   : > { %v8134_v1 = vpop.eup %8133  ;;  %v5887_v18 = vmul.f32 %v8132_v7, %v9578_v17  ;;  %7455 = vmatpush3.bf16.msra.mxu1 %v8015_v31 }
 0xe52   : > { %v8136_v50 = vpop.eup %8135  ;;  %v5838_v8 = vmul.f32 %v8134_v1, %v9580_v13  ;;  %7460 = vmatprep.subr.bf16.mxu1 %v8170_v38 }
 0xe53   : > { %v5886_v20 = vmul.f32 %v8136_v50, %v9585_v14 }
 0xeb1   : > { %v5845_v35 = vpop.permute.xlu1 %5844 }
 0xeb2   : > { %v5849_v55 = vmul.f32 %v8130_v2, %v5845_v35 }
 0xeb3   : > { %v5843_v53 = vpop.permute.xlu0 %5842 }
 0xeb4   : > { %5854 = vrot.lane.b32.xlu1 %v5849_v55, %s8172_s15  ;;  %v5848_v33 = vmul.f32 %v8134_v1, %v5843_v53  ;;  %v6560_v55 = vld [vmem:[%s9701_s8 + $0x5] ss:$0 sm:$0xff] }
 0xeb5   : > { %v5893_v40 = vpop.permute.xlu1 %5892 }
 0xeb6   : > { %v5897_v46 = vmul.f32 %v8132_v7, %v5893_v40  ;;  %5852 = vrot.lane.b32.xlu0 %v5848_v33, %s8172_s15 }
 0xeb7   : > { %v5891_v36 = vpop.permute.xlu0 %5890 }
 0xeb8   : > { %5902 = vrot.lane.b32.xlu1 %v5897_v46, %s8172_s15  ;;  %v5896_v61 = vmul.f32 %v8136_v50, %v5891_v36 }
 0xeba   : > { %5900 = vrot.lane.b32.xlu0 %v5896_v61, %s8172_s15 }
 0xf26   : > { %v5855_v59 = vpop.permute.xlu1 %5854 }
 0xf27   : > { %v5859_v23 = vadd.f32 %v5855_v59, %v5839_v32 }
 0xf28   : > { %v5853_v60 = vpop.permute.xlu0 %5852 }
 0xf29   : > { %8137 = vtanh.f32 %v5859_v23  ;;  %v5858_v57 = vadd.f32 %v5853_v60, %v5838_v8 }
 0xf2a   : > { %v5903_v19 = vpop.permute.xlu1 %5902 }
 0xf2b   : > { %v5907_v21 = vadd.f32 %v5903_v19, %v5887_v18 }
 0xf2c   : > { %v5901_v52 = vpop.permute.xlu0 %5900 }
 0xf2d   : > { %8139 = vtanh.f32 %v5907_v21  ;;  %v5906_v34 = vadd.f32 %v5901_v52, %v5886_v20 }
 0xf2e   : > { %8141 = vtanh.f32 %v5858_v57 }
 0xf2f   : > { %8143 = vtanh.f32 %v5906_v34 }
 0xf33   : > { %v8138_v48 = vpop.eup %8137 }
 0xf34   : > { %5866 = vrot.lane.b32.xlu1 %v8138_v48, %s8173_s17 }
 0xf37   : > { %v8140_v17 = vpop.eup %8139 }
 0xf38   : > { %v8142_v13 = vpop.eup %8141  ;;  %5914 = vrot.lane.b32.xlu1 %v8140_v17, %s8173_s17 }
 0xf39   : > { %5864 = vrot.lane.b32.xlu0 %v8142_v13, %s8173_s17  ;;  %v8144_v14 = vpop.eup %8143 }
 0xf3d   : > { %5912 = vrot.lane.b32.xlu0 %v8144_v14, %s8173_s17 }
 0xfa6   : > { %v5867_v62 = vpop.permute.xlu1 %5866 }
 0xfa7   : > { %v5871_v49 = vmul.f32 %v8130_v2, %v5867_v62 }
 0xfaa   : > { %v5915_v4 = vpop.permute.xlu1 %5914 }
 0xfab   : > { %v5865_v39 = vpop.permute.xlu0 %5864  ;;  %v5919_v0 = vmul.f32 %v8132_v7, %v5915_v4 }
 0xfac   : > { %v5870_v63 = vmul.f32 %v8134_v1, %v5865_v39 }
 0xfae   : > { %v5920_v15 = vpack.c.bf16 %v5871_v49, %v5870_v63 }
 0xfaf   : > { %v5913_v22 = vpop.permute.xlu0 %5912 }
 0xfb0   : > { %v5918_v54 = vmul.f32 %v8136_v50, %v5913_v22  ;;  %5924 = vrot.lane.b32.xlu0 %v5920_v15, %s8175_s20 }
 0xfb2   : > { %v5978_v11 = vpack.c.bf16 %v5919_v0, %v5918_v54 }
 0xfb4   : > { %5982 = vrot.lane.b32.xlu1 %v5978_v11, %s8172_s15 }
0x1022   : > { %v5925_v24 = vpop.permute.xlu0 %5924 }
0x1023   : > { %7457 = vmatmul.mubr.msk.bf16.vlgmr.msra.gmra.mrb[108].mxu1 %vm3620_vm2, %v5925_v24 }
0x1024   : > { %7461 = vmatpush3.bf16.msra.mxu1 %v8016_v25  ;;  %7462 = vmatprep.mubr.msk.bf16.mxu1 %vm8174_vm3, %v8170_v38 }
0x1025   : > { %7466 = vmatprep.subr.bf16.mxu1 %v8170_v38 }
0x1026   : > { %v5983_v16 = vpop.permute.xlu1 %5982 }
0x102f   : > { %7463 = vmatmul.mubr.msk.bf16.vlgmr.msra.gmra.mrb[108].mxu1 %vm3620_vm2, %v5983_v16 }
0x1030   : > { %7468 = vmatprep.mubr.msk.bf16.mxu1 %vm8174_vm3, %v8170_v38  ;;  %7467 = vmatpush3.bf16.msra.mxu1 %v6053_v26 }
0x1031   : > { %7472 = vmatprep.subr.bf16.mxu1 %v8170_v38 }
0x1102   : > { %v6027_v28 = vpop.f32.mrb[108].mxu1 }
0x1103   : > { %v7584_v37 = vadd.f32 %v6519_v58, %v6027_v28  ;;  %v7464_v42 = vpop.f32.mrb[109].mxu1 }
0x1104   : > { %v6030_v43 = vpop.f32.mrb[110].mxu1 }
0x1105   : > { %v7585_v44 = vadd.f32 %v6519_v58, %v6030_v43  ;;  %v7465_v56 = vpop.f32.mrb[111].mxu1  ;;  %v6036_v3 = vmax.f32 %v7584_v37, 0.0 }
0x1107   : > { %v6037_v47 = vmax.f32 %v7585_v44, 0.0 }
0x1109   : > { %v6038_v5 = vpack.c.bf16 %v6037_v47, %v6036_v3 }
0x110b   : > { %7469 = vmatmul.mubr.msk.bf16.vlgmr.msra.gmra.mrb[116].mxu1 %vm6047_vm6, %v6038_v5 }
0x110c   : > { %7474 = vmatprep.mubr.msk.bf16.mxu1 %vm8174_vm3, %v8170_v38  ;;  %7473 = vmatpush3.bf16.msra.mxu1 %v6111_v6 }
0x11de   : > { %v6089_v9 = vpop.f32.mrb[116].mxu1 }
0x11df   : > { %v6090_v10 = vadd.f32 %v6558_v29, %v6089_v9  ;;  %v7470_v30 = vpop.f32.mrb[117].mxu1 }
0x11e0   : > { %v6092_v51 = vpop.f32.mrb[118].mxu1 }
0x11e1   : > { %v6093_v41 = vadd.f32 %v6558_v29, %v6092_v51  ;;  %v7471_v27 = vpop.f32.mrb[119].mxu1  ;;  %v6096_v2 = vmax.f32 %v6090_v10, 0.0 }
0x11e3   : > { %v6097_v35 = vmax.f32 %v6093_v41, 0.0 }
0x11e5   : > { %v6098_v38 = vpack.c.bf16 %v6097_v35, %v6096_v2 }
0x11e7   : > { %7475 = vmatmul.mubr.msk.bf16.vlgmr.msra.gmra.mrb[120].mxu1 %vm6047_vm6, %v6098_v38 }
0x12ba   : > { %v6147_v7 = vpop.f32.mrb[120].mxu1 }
0x12bb   : > { %v6148_v40 = vadd.f32 %v6560_v55, %v6147_v7  ;;  %v7476_v1 = vpop.f32.mrb[121].mxu1 }
0x12bc   : > { %v6150_v53 = vpop.f32.mrb[122].mxu1 }
0x12bd   : > { %6155 = vst.msk [vmem:[%s659_s19] sm:$0xff] %vm6154_vm7, %v6148_v40  ;;  %v6151_v46 = vadd.f32 %v6560_v55, %v6150_v53  ;;  %v7477_v33 = vpop.f32.mrb[123].mxu1 }
0x12bf   : > { %6156 = vst.msk [vmem:[%s659_s19 + $0x8] sm:$0xff] %vm6154_vm7, %v6151_v46 }
0x12c0 PF: > { %p16_p9 = scmp.ge.s32.totalorder %s8243_s13, 4   ;;  %s9758_s30 = smov %s8163_s10 }
0x12c1   : > { %s9759_s10 = smov %s8252_s16  ;;  %s9760_s11 = smov %s8243_s13 }
0x12c2   :  { %18 = sbr.rel (!%p16_p9) target bundleno = 2 (0x2), region = 132 }

</bundles_post_ra>
